<compile_context>
chip_gen: v6e
topology: v6e:2x2x1
jax: 0.10.0
libtpu: 0.0.40
codegen_flags: <defaults>
</compile_context>

<pallas_src>
import functools

import jax
import jax.numpy as jnp
from jax.experimental import pallas as pl
from jax.experimental.pallas import tpu as pltpu


def _round_up(x, m):
    return (x + m - 1) // m * m


def _gn(h, gamma, beta, eps=1e-5):
    """GroupNorm with a single group (ng=1) over the channel (lane) axis.

    var = E[x^2] - E[x]^2 saves one full elementwise pass vs E[(x-mean)^2];
    rsqrt lands on the EUP slot.
    """
    mean = jnp.mean(h, axis=-1, keepdims=True)
    var = jnp.mean(h * h, axis=-1, keepdims=True) - mean * mean
    return (h - mean) * jax.lax.rsqrt(var + eps) * gamma + beta


def prednet_kernel(xa_ref,
                   w_big_ref, b_big_ref,
                   w_d2_ref, g_d2_ref, be_d2_ref,
                   w_agt_ref, g_agt_ref, be_agt_ref,
                   w_l1_ref, g_l1_ref, be_l1_ref,
                   w_l2_ref, g_l2_ref, be_l2_ref,
                   w_ct_ref, b_c_ref,
                   out_ref,
                   *, num_mods, D, K, K_pad):
    # xa = [actor features | cx | cy]  -- (TN, D+2) bf16
    xa = xa_ref[...]

    # One wide bf16 matmul (f32 accumulate) for everything that consumes x:
    #   lanes [0, K_pad)        : pred heads (+ centers via the 2 selector rows),
    #                             padded lanes exactly zero
    #   lanes [K_pad, K_pad+D)  : mode-invariant actor half of AttDest.agt
    #   lanes [K_pad+D, ...)    : per-mode AttDest dist Linear(2,D) pre-acts
    big = jnp.dot(xa, w_big_ref[...],
                  preferred_element_type=jnp.float32) + b_big_ref[...]

    out_ref[...] = big[:, :K_pad]                 # lane-dense reg slab store
    x_proj = big[:, K_pad:K_pad + D]              # (TN, D), shared by all modes

    for m in range(num_mods):                     # small static unroll
        lo = K_pad + D + m * D
        # AttDest.dist layer 1: Linear(2, D) + ReLU (already folded into `big`)
        h = jnp.maximum(big[:, lo:lo + D], 0.0)
        # AttDest.dist layer 2: Linear(D, D, GN(ng=1)) + ReLU
        h = jnp.dot(h.astype(jnp.bfloat16), w_d2_ref[...],
                    preferred_element_type=jnp.float32)
        h = jnp.maximum(_gn(h, g_d2_ref[...], be_d2_ref[...]), 0.0)
        # AttDest.agt: Linear(2D, D, GN) on cat(dist_feat, actor_feat);
        # the actor half (x_proj) is mode-invariant and reused.
        feat = jnp.dot(h.astype(jnp.bfloat16), w_agt_ref[...],
                       preferred_element_type=jnp.float32) + x_proj
        feat = jnp.maximum(_gn(feat, g_agt_ref[...], be_agt_ref[...]), 0.0)
        # cls head: LinearRes(D, D) with identity shortcut (n_in == n_out)
        o = jnp.dot(feat.astype(jnp.bfloat16), w_l1_ref[...],
                    preferred_element_type=jnp.float32)
        o = jnp.maximum(_gn(o, g_l1_ref[...], be_l1_ref[...]), 0.0)
        o = jnp.dot(o.astype(jnp.bfloat16), w_l2_ref[...],
                    preferred_element_type=jnp.float32)
        o = _gn(o, g_l2_ref[...], be_l2_ref[...])
        o = jnp.maximum(o + feat, 0.0)
        # final Linear(D, 1): VPU multiply + lane reduction (no 1-lane matmul)
        cls_m = jnp.sum(o * w_ct_ref[...], axis=-1, keepdims=True) + b_c_ref[...]
        # drop the mode score into an unused padded lane of the reg slab
        out_ref[:, K + m:K + m + 1] = cls_m


def _build_fused_weights(params, *, num_mods, num_preds, D, K, K_pad):
    """Fold (pred heads | actor-proj | AttDest dist layer 1) into one matrix."""
    w_pred, b_pred = params['w_pred'], params['b_pred']        # (D, K), (1, K)
    w_d1, b_d1 = params['w_d1'], params['b_d1']                # (2, D), (1, D)
    w_agt = params['w_agt']                                    # (2D, D)

    W = K_pad + D + num_mods * D
    w_big = jnp.zeros((D + 2, W), jnp.float32)
    b_big = jnp.zeros((1, W), jnp.float32)

    # pred heads (+ bias) in lanes [0, K); lanes [K, K_pad) stay zero
    w_big = w_big.at[:D, :K].set(w_pred)
    b_big = b_big.at[:, :K].set(b_pred)
    # center add folded in: the last two LHS columns are (cx, cy); their weight
    # rows select the even / odd reg lanes (xy innermost)
    parity = (jnp.arange(K) % 2 == 0).astype(jnp.float32)
    w_big = w_big.at[D, :K].set(parity)
    w_big = w_big.at[D + 1, :K].set(1.0 - parity)
    # mode-invariant actor half of AttDest.agt
    w_big = w_big.at[:D, K_pad:K_pad + D].set(w_agt[D:, :])
    # AttDest.dist layer 1 folded through the per-mode dest columns:
    #   dist_m = ctr - dest_m = -(x @ w_dest_m + b_dest_m)     (centers cancel)
    #   h1_m   = dist_m @ w_d1 + b_d1
    #          = x @ (-(w_dest_m @ w_d1)) + (b_d1 - b_dest_m @ w_d1)
    two_p = 2 * num_preds
    for m in range(num_mods):
        c0 = m * two_p + two_p - 2
        w_dest = w_pred[:, c0:c0 + 2]                          # (D, 2)
        b_dest = b_pred[:, c0:c0 + 2]                          # (1, 2)
        lo = K_pad + D + m * D
        w_big = w_big.at[:D, lo:lo + D].set(-(w_dest @ w_d1))
        b_big = b_big.at[:, lo:lo + D].set(b_d1 - b_dest @ w_d1)
    return w_big, b_big


def prednet_forward(actors, actor_idcs, actor_ctrs, params, *,
                    num_mods, num_preds, tile_n=512, return_raw=False):
    N, D = actors.shape
    assert D % 128 == 0, "n_actor must be a multiple of 128 (lane-aligned slices)"
    ctrs = jnp.concatenate(actor_ctrs, axis=0)

    K = num_mods * 2 * num_preds
    K_pad = _round_up(K + num_mods, 128)   # reg lanes + room for the cls scores

    # Tile rows: as large as requested but keep >= 4 grid steps (>= 2 pipelined
    # steps per v7x TensorCore); multiple of 16 for the bf16 input block.
    tile_n = max(16, min(_round_up(tile_n, 16), _round_up(pl.cdiv(N, 4), 16)))
    N_pad = _round_up(N, tile_n)

    # actors and centers fused into one bf16 LHS -> no narrow ctrs DMA stream
    xa = jnp.concatenate([actors, ctrs], axis=1).astype(jnp.bfloat16)
    xa = jnp.pad(xa, ((0, N_pad - N), (0, 0)))

    w_big, b_big = _build_fused_weights(params, num_mods=num_mods,
                                        num_preds=num_preds, D=D, K=K, K_pad=K_pad)

    bf = lambda a: a.astype(jnp.bfloat16)   # MXU operands; GN params stay f32
    weights = [bf(w_big), b_big,
               bf(params['w_d2']), params['g_d2'], params['be_d2'],
               bf(params['w_agt'][:D, :]), params['g_agt'], params['be_agt'],
               bf(params['w_l1']), params['g_l1'], params['be_l1'],
               bf(params['w_l2']), params['g_l2'], params['be_l2'],
               params['w_c'].T, params['b_c']]

    def full_spec(arr):
        return pl.BlockSpec(arr.shape, lambda i: (0, 0))

    in_specs = ([pl.BlockSpec((tile_n, D + 2), lambda i: (i, 0))]
                + [full_spec(w) for w in weights])
    out_specs = pl.BlockSpec((tile_n, K_pad), lambda i: (i, 0))
    out_shape = jax.ShapeDtypeStruct((N_pad, K_pad), jnp.float32)

    kernel = functools.partial(prednet_kernel, num_mods=num_mods,
                               D=D, K=K, K_pad=K_pad)
    slab = pl.pallas_call(
        kernel,
        grid=(N_pad // tile_n,),
        in_specs=in_specs,
        out_specs=out_specs,
        out_shape=out_shape,
        compiler_params=pltpu.CompilerParams(dimension_semantics=("parallel",)),
    )(xa, *weights)

    slab = slab[:N]
    reg = slab[:, :K].reshape(N, num_mods, num_preds, 2)
    cls_raw = slab[:, K:K + num_mods]

    # sort modes by cls descending, reorder reg accordingly (glue, not hot path)
    sort_idcs = jnp.argsort(-cls_raw, axis=1)
    cls_sorted = jnp.take_along_axis(cls_raw, sort_idcs, axis=1)
    reg_sorted = jnp.take_along_axis(reg, sort_idcs[:, :, None, None], axis=1)

    out = {'cls': [], 'reg': []}
    for idcs in actor_idcs:
        out['cls'].append(cls_sorted[idcs])
        out['reg'].append(reg_sorted[idcs])
    if return_raw:
        return out, (cls_raw, reg)
    return out


def prednet_reference(actors, actor_idcs, actor_ctrs, params, *,
                      num_mods, num_preds, return_raw=False):
    """Pure-JAX f32 reference mirroring the PyTorch forward pass."""
    N, D = actors.shape
    ctrs = jnp.concatenate(actor_ctrs, axis=0)
    reg = actors @ params['w_pred'] + params['b_pred']
    reg = reg.reshape(N, num_mods, num_preds, 2) + ctrs[:, None, None, :]
    dest = reg[:, :, -1, :]                                  # (N, M, 2)
    dist = (ctrs[:, None, :] - dest).reshape(-1, 2)          # (N*M, 2)
    h = jnp.maximum(dist @ params['w_d1'] + params['b_d1'], 0.0)
    h = jnp.maximum(_gn(h @ params['w_d2'], params['g_d2'], params['be_d2']), 0.0)
    agts = jnp.repeat(actors[:, None, :], num_mods, axis=1).reshape(-1, D)
    feat = jnp.concatenate([h, agts], axis=1) @ params['w_agt']
    feat = jnp.maximum(_gn(feat, params['g_agt'], params['be_agt']), 0.0)
    o = jnp.maximum(_gn(feat @ params['w_l1'], params['g_l1'], params['be_l1']), 0.0)
    o = _gn(o @ params['w_l2'], params['g_l2'], params['be_l2'])
    o = jnp.maximum(o + feat, 0.0)
    cls = (o @ params['w_c'] + params['b_c']).reshape(N, num_mods)
    sort_idcs = jnp.argsort(-cls, axis=1)
    cls_sorted = jnp.take_along_axis(cls, sort_idcs, axis=1)
    reg_sorted = jnp.take_along_axis(reg, sort_idcs[:, :, None, None], axis=1)
    out = {'cls': [], 'reg': []}
    for idcs in actor_idcs:
        out['cls'].append(cls_sorted[idcs])
        out['reg'].append(reg_sorted[idcs])
    if return_raw:
        return out, (cls, reg)
    return out


def init_params(key, n_actor, num_mods, num_preds):
    # NOTE: in a real port, w_pred/b_pred are the per-mode pred heads' weights
    # concatenated along the output-column axis (mode-major, xy innermost).
    D = n_actor
    K = num_mods * 2 * num_preds
    ks = jax.random.split(key, 16)

    def w(k, shape, scale=0.1):
        return (scale * jax.random.normal(k, shape)).astype(jnp.float32)

    return dict(
        w_pred=w(ks[0], (D, K)),  b_pred=w(ks[1], (1, K)),
        w_d1=w(ks[2], (2, D)),    b_d1=w(ks[3], (1, D)),
        w_d2=w(ks[4], (D, D)),
        g_d2=1.0 + w(ks[5], (1, D)),  be_d2=w(ks[6], (1, D)),
        w_agt=w(ks[7], (2 * D, D)),
        g_agt=1.0 + w(ks[8], (1, D)), be_agt=w(ks[9], (1, D)),
        w_l1=w(ks[10], (D, D)),
        g_l1=1.0 + w(ks[11], (1, D)), be_l1=jnp.zeros((1, D), jnp.float32),
        w_l2=w(ks[12], (D, D)),
        g_l2=1.0 + w(ks[13], (1, D)), be_l2=jnp.zeros((1, D), jnp.float32),
        w_c=w(ks[14], (D, 1)),    b_c=w(ks[15], (1, 1)),
    )


if __name__ == "__main__":
    # Real LaneGCN uses n_actor=128; demo keeps mods/preds small and uses an
    # actor count that exercises the padding / multi-tile path.
    n_actor, num_mods, num_preds = 128, 3, 6
    N = 200  # total actors across 2 "batches" (not a multiple of the tile)

    key = jax.random.PRNGKey(0)
    k_act, k_ctr, k_par = jax.random.split(key, 3)
    actors = jax.random.normal(k_act, (N, n_actor), jnp.float32)
    ctrs_all = jax.random.normal(k_ctr, (N, 2), jnp.float32)
    actor_idcs = [jnp.arange(0, 120), jnp.arange(120, N)]
    actor_ctrs = [ctrs_all[:120], ctrs_all[120:]]
    params = init_params(k_par, n_actor, num_mods, num_preds)

    out, (cls_k, reg_k) = prednet_forward(
        actors, actor_idcs, actor_ctrs, params,
        num_mods=num_mods, num_preds=num_preds, tile_n=512, return_raw=True)
    jax.block_until_ready(out)

    ref, (cls_r, reg_r) = prednet_reference(
        actors, actor_idcs, actor_ctrs, params,
        num_mods=num_mods, num_preds=num_preds, return_raw=True)

    # Compare the kernel's raw (pre-sort) outputs: bf16 MXU operands can flip
    # the descending sort for near-tied mode scores, which would permute
    # reg_sorted even though every individual number matches to tolerance.
    tol = dict(atol=5e-2, rtol=5e-2)   # bf16 matmuls vs f32 reference
    assert jnp.allclose(reg_k, reg_r, **tol), "reg mismatch"
    assert jnp.allclose(cls_k, cls_r, **tol), "cls mismatch"
    # Sorted cls *values* are order-insensitive -> safe end-to-end check.
    for a, b in zip(out['cls'], ref['cls']):
        assert jnp.allclose(a, b, **tol), "sorted cls mismatch"

    print("KERNEL_OK")
</pallas_src>

<mosaic_0001>
module attributes {stable_mosaic.version = 11 : i64} {
  func.func @prednet_kernel(%arg0: i32, %arg1: memref<64x130xbf16, #tpu.memory_space<vmem>>, %arg2: memref<130x640xbf16, #tpu.memory_space<vmem>>, %arg3: memref<1x640xf32, #tpu.memory_space<vmem>>, %arg4: memref<128x128xbf16, #tpu.memory_space<vmem>>, %arg5: memref<1x128xf32, #tpu.memory_space<vmem>>, %arg6: memref<1x128xf32, #tpu.memory_space<vmem>>, %arg7: memref<128x128xbf16, #tpu.memory_space<vmem>>, %arg8: memref<1x128xf32, #tpu.memory_space<vmem>>, %arg9: memref<1x128xf32, #tpu.memory_space<vmem>>, %arg10: memref<128x128xbf16, #tpu.memory_space<vmem>>, %arg11: memref<1x128xf32, #tpu.memory_space<vmem>>, %arg12: memref<1x128xf32, #tpu.memory_space<vmem>>, %arg13: memref<128x128xbf16, #tpu.memory_space<vmem>>, %arg14: memref<1x128xf32, #tpu.memory_space<vmem>>, %arg15: memref<1x128xf32, #tpu.memory_space<vmem>>, %arg16: memref<1x128xf32, #tpu.memory_space<vmem>>, %arg17: memref<1x1xf32, #tpu.memory_space<vmem>>, %arg18: memref<64x128xf32, #tpu.memory_space<vmem>>) attributes {dimension_semantics = [#tpu.dimension_semantics<parallel>], iteration_bounds = array<i64: 4>, scalar_prefetch = 0 : i64, scratch_operands = 0 : i64, tpu.core_type = #tpu.core_type<tc>, window_params = [{transform_indices = @transform_0, window_bounds = array<i64: 64, 130>}, {pipeline_mode = #tpu.pipeline_mode<synchronous>, transform_indices = @transform_1, window_bounds = array<i64: 130, 640>}, {pipeline_mode = #tpu.pipeline_mode<synchronous>, transform_indices = @transform_2, window_bounds = array<i64: 1, 640>}, {pipeline_mode = #tpu.pipeline_mode<synchronous>, transform_indices = @transform_3, window_bounds = array<i64: 128, 128>}, {pipeline_mode = #tpu.pipeline_mode<synchronous>, transform_indices = @transform_4, window_bounds = array<i64: 1, 128>}, {pipeline_mode = #tpu.pipeline_mode<synchronous>, transform_indices = @transform_5, window_bounds = array<i64: 1, 128>}, {pipeline_mode = #tpu.pipeline_mode<synchronous>, transform_indices = @transform_6, window_bounds = array<i64: 128, 128>}, {pipeline_mode = #tpu.pipeline_mode<synchronous>, transform_indices = @transform_7, window_bounds = array<i64: 1, 128>}, {pipeline_mode = #tpu.pipeline_mode<synchronous>, transform_indices = @transform_8, window_bounds = array<i64: 1, 128>}, {pipeline_mode = #tpu.pipeline_mode<synchronous>, transform_indices = @transform_9, window_bounds = array<i64: 128, 128>}, {pipeline_mode = #tpu.pipeline_mode<synchronous>, transform_indices = @transform_10, window_bounds = array<i64: 1, 128>}, {pipeline_mode = #tpu.pipeline_mode<synchronous>, transform_indices = @transform_11, window_bounds = array<i64: 1, 128>}, {pipeline_mode = #tpu.pipeline_mode<synchronous>, transform_indices = @transform_12, window_bounds = array<i64: 128, 128>}, {pipeline_mode = #tpu.pipeline_mode<synchronous>, transform_indices = @transform_13, window_bounds = array<i64: 1, 128>}, {pipeline_mode = #tpu.pipeline_mode<synchronous>, transform_indices = @transform_14, window_bounds = array<i64: 1, 128>}, {pipeline_mode = #tpu.pipeline_mode<synchronous>, transform_indices = @transform_15, window_bounds = array<i64: 1, 128>}, {pipeline_mode = #tpu.pipeline_mode<synchronous>, transform_indices = @transform_16, window_bounds = array<i64: 1, 1>}, {transform_indices = @transform_17, window_bounds = array<i64: 64, 128>}]} {
    %c0 = arith.constant 0 : index
    %c0_0 = arith.constant 0 : index
    %0 = vector.load %arg1[%c0, %c0_0] : memref<64x130xbf16, #tpu.memory_space<vmem>>, vector<64x130xbf16>
    %c0_1 = arith.constant 0 : index
    %c0_2 = arith.constant 0 : index
    %1 = vector.load %arg2[%c0_1, %c0_2] : memref<130x640xbf16, #tpu.memory_space<vmem>>, vector<130x640xbf16>
    %cst = arith.constant dense<0.000000e+00> : vector<64x640xf32>
    %2 = tpu.matmul %0, %1, %cst {dimension_numbers = #tpu.dot_dimension_numbers<[1], [0], [0], [1], [0, 0, 1, 1], [], []>} : vector<64x130xbf16>, vector<130x640xbf16>, vector<64x640xf32> -> vector<64x640xf32>
    %c0_3 = arith.constant 0 : index
    %c0_4 = arith.constant 0 : index
    %3 = vector.load %arg3[%c0_3, %c0_4] : memref<1x640xf32, #tpu.memory_space<vmem>>, vector<1x640xf32>
    %4 = vector.broadcast %3 : vector<1x640xf32> to vector<64x640xf32>
    %5 = arith.addf %2, %4 : vector<64x640xf32>
    %6 = vector.extract_strided_slice %5 {offsets = [0, 0], sizes = [64, 128], strides = [1, 1]} : vector<64x640xf32> to vector<64x128xf32>
    %c0_5 = arith.constant 0 : index
    %c0_6 = arith.constant 0 : index
    %7 = vector.load %arg18[%c0_5, %c0_6] : memref<64x128xf32, #tpu.memory_space<vmem>>, vector<64x128xf32>
    tpu.vector_store %arg18[%c0_5, %c0_6], %6 {strides = array<i32>} : memref<64x128xf32, #tpu.memory_space<vmem>>, vector<64x128xf32>,
    %8 = vector.extract_strided_slice %5 {offsets = [0, 128], sizes = [64, 128], strides = [1, 1]} : vector<64x640xf32> to vector<64x128xf32>
    %9 = vector.extract_strided_slice %5 {offsets = [0, 256], sizes = [64, 128], strides = [1, 1]} : vector<64x640xf32> to vector<64x128xf32>
    %cst_7 = arith.constant 0.000000e+00 : f32
    %10 = vector.broadcast %cst_7 : f32 to vector<64x128xf32>
    %11 = arith.maximumf %9, %10 : vector<64x128xf32>
    %12 = arith.truncf %11 : vector<64x128xf32> to vector<64x128xbf16>
    %c0_8 = arith.constant 0 : index
    %c0_9 = arith.constant 0 : index
    %13 = vector.load %arg4[%c0_8, %c0_9] : memref<128x128xbf16, #tpu.memory_space<vmem>>, vector<128x128xbf16>
    %cst_10 = arith.constant dense<0.000000e+00> : vector<64x128xf32>
    %14 = tpu.matmul %12, %13, %cst_10 {dimension_numbers = #tpu.dot_dimension_numbers<[1], [0], [0], [1], [0, 0, 1, 1], [], []>} : vector<64x128xbf16>, vector<128x128xbf16>, vector<64x128xf32> -> vector<64x128xf32>
    %c0_11 = arith.constant 0 : index
    %c0_12 = arith.constant 0 : index
    %15 = vector.load %arg5[%c0_11, %c0_12] : memref<1x128xf32, #tpu.memory_space<vmem>>, vector<1x128xf32>
    %c0_13 = arith.constant 0 : index
    %c0_14 = arith.constant 0 : index
    %16 = vector.load %arg6[%c0_13, %c0_14] : memref<1x128xf32, #tpu.memory_space<vmem>>, vector<1x128xf32>
    %cst_15 = arith.constant dense<0.000000e+00> : vector<64xf32>
    %17 = vector.multi_reduction <add>, %14, %cst_15 [1] : vector<64x128xf32> to vector<64xf32>
    %18 = vector.shape_cast %17 : vector<64xf32> to vector<64x1xf32>
    %cst_16 = arith.constant 1.280000e+02 : f32
    %19 = vector.broadcast %cst_16 : f32 to vector<64x1xf32>
    %20 = arith.divf %18, %19 : vector<64x1xf32>
    %21 = arith.mulf %14, %14 : vector<64x128xf32>
    %cst_17 = arith.constant dense<0.000000e+00> : vector<64xf32>
    %22 = vector.multi_reduction <add>, %21, %cst_17 [1] : vector<64x128xf32> to vector<64xf32>
    %23 = vector.shape_cast %22 : vector<64xf32> to vector<64x1xf32>
    %cst_18 = arith.constant 1.280000e+02 : f32
    %24 = vector.broadcast %cst_18 : f32 to vector<64x1xf32>
    %25 = arith.divf %23, %24 : vector<64x1xf32>
    %26 = arith.mulf %20, %20 : vector<64x1xf32>
    %27 = arith.subf %25, %26 : vector<64x1xf32>
    %28 = vector.broadcast %20 : vector<64x1xf32> to vector<64x128xf32>
    %29 = arith.subf %14, %28 : vector<64x128xf32>
    %cst_19 = arith.constant 9.99999974E-6 : f32
    %30 = vector.broadcast %cst_19 : f32 to vector<64x1xf32>
    %31 = arith.addf %27, %30 : vector<64x1xf32>
    %32 = math.rsqrt %31 : vector<64x1xf32>
    %33 = vector.broadcast %32 : vector<64x1xf32> to vector<64x128xf32>
    %34 = arith.mulf %29, %33 : vector<64x128xf32>
    %35 = vector.broadcast %15 : vector<1x128xf32> to vector<64x128xf32>
    %36 = arith.mulf %34, %35 : vector<64x128xf32>
    %37 = vector.broadcast %16 : vector<1x128xf32> to vector<64x128xf32>
    %38 = arith.addf %36, %37 : vector<64x128xf32>
    %cst_20 = arith.constant 0.000000e+00 : f32
    %39 = vector.broadcast %cst_20 : f32 to vector<64x128xf32>
    %40 = arith.maximumf %38, %39 : vector<64x128xf32>
    %41 = arith.truncf %40 : vector<64x128xf32> to vector<64x128xbf16>
    %c0_21 = arith.constant 0 : index
    %c0_22 = arith.constant 0 : index
    %42 = vector.load %arg7[%c0_21, %c0_22] : memref<128x128xbf16, #tpu.memory_space<vmem>>, vector<128x128xbf16>
    %cst_23 = arith.constant dense<0.000000e+00> : vector<64x128xf32>
    %43 = tpu.matmul %41, %42, %cst_23 {dimension_numbers = #tpu.dot_dimension_numbers<[1], [0], [0], [1], [0, 0, 1, 1], [], []>} : vector<64x128xbf16>, vector<128x128xbf16>, vector<64x128xf32> -> vector<64x128xf32>
    %44 = arith.addf %43, %8 : vector<64x128xf32>
    %c0_24 = arith.constant 0 : index
    %c0_25 = arith.constant 0 : index
    %45 = vector.load %arg8[%c0_24, %c0_25] : memref<1x128xf32, #tpu.memory_space<vmem>>, vector<1x128xf32>
    %c0_26 = arith.constant 0 : index
    %c0_27 = arith.constant 0 : index
    %46 = vector.load %arg9[%c0_26, %c0_27] : memref<1x128xf32, #tpu.memory_space<vmem>>, vector<1x128xf32>
    %cst_28 = arith.constant dense<0.000000e+00> : vector<64xf32>
    %47 = vector.multi_reduction <add>, %44, %cst_28 [1] : vector<64x128xf32> to vector<64xf32>
    %48 = vector.shape_cast %47 : vector<64xf32> to vector<64x1xf32>
    %cst_29 = arith.constant 1.280000e+02 : f32
    %49 = vector.broadcast %cst_29 : f32 to vector<64x1xf32>
    %50 = arith.divf %48, %49 : vector<64x1xf32>
    %51 = arith.mulf %44, %44 : vector<64x128xf32>
    %cst_30 = arith.constant dense<0.000000e+00> : vector<64xf32>
    %52 = vector.multi_reduction <add>, %51, %cst_30 [1] : vector<64x128xf32> to vector<64xf32>
    %53 = vector.shape_cast %52 : vector<64xf32> to vector<64x1xf32>
    %cst_31 = arith.constant 1.280000e+02 : f32
    %54 = vector.broadcast %cst_31 : f32 to vector<64x1xf32>
    %55 = arith.divf %53, %54 : vector<64x1xf32>
    %56 = arith.mulf %50, %50 : vector<64x1xf32>
    %57 = arith.subf %55, %56 : vector<64x1xf32>
    %58 = vector.broadcast %50 : vector<64x1xf32> to vector<64x128xf32>
    %59 = arith.subf %44, %58 : vector<64x128xf32>
    %cst_32 = arith.constant 9.99999974E-6 : f32
    %60 = vector.broadcast %cst_32 : f32 to vector<64x1xf32>
    %61 = arith.addf %57, %60 : vector<64x1xf32>
    %62 = math.rsqrt %61 : vector<64x1xf32>
    %63 = vector.broadcast %62 : vector<64x1xf32> to vector<64x128xf32>
    %64 = arith.mulf %59, %63 : vector<64x128xf32>
    %65 = vector.broadcast %45 : vector<1x128xf32> to vector<64x128xf32>
    %66 = arith.mulf %64, %65 : vector<64x128xf32>
    %67 = vector.broadcast %46 : vector<1x128xf32> to vector<64x128xf32>
    %68 = arith.addf %66, %67 : vector<64x128xf32>
    %cst_33 = arith.constant 0.000000e+00 : f32
    %69 = vector.broadcast %cst_33 : f32 to vector<64x128xf32>
    %70 = arith.maximumf %68, %69 : vector<64x128xf32>
    %71 = arith.truncf %70 : vector<64x128xf32> to vector<64x128xbf16>
    %c0_34 = arith.constant 0 : index
    %c0_35 = arith.constant 0 : index
    %72 = vector.load %arg10[%c0_34, %c0_35] : memref<128x128xbf16, #tpu.memory_space<vmem>>, vector<128x128xbf16>
    %cst_36 = arith.constant dense<0.000000e+00> : vector<64x128xf32>
    %73 = tpu.matmul %71, %72, %cst_36 {dimension_numbers = #tpu.dot_dimension_numbers<[1], [0], [0], [1], [0, 0, 1, 1], [], []>} : vector<64x128xbf16>, vector<128x128xbf16>, vector<64x128xf32> -> vector<64x128xf32>
    %c0_37 = arith.constant 0 : index
    %c0_38 = arith.constant 0 : index
    %74 = vector.load %arg11[%c0_37, %c0_38] : memref<1x128xf32, #tpu.memory_space<vmem>>, vector<1x128xf32>
    %c0_39 = arith.constant 0 : index
    %c0_40 = arith.constant 0 : index
    %75 = vector.load %arg12[%c0_39, %c0_40] : memref<1x128xf32, #tpu.memory_space<vmem>>, vector<1x128xf32>
    %cst_41 = arith.constant dense<0.000000e+00> : vector<64xf32>
    %76 = vector.multi_reduction <add>, %73, %cst_41 [1] : vector<64x128xf32> to vector<64xf32>
    %77 = vector.shape_cast %76 : vector<64xf32> to vector<64x1xf32>
    %cst_42 = arith.constant 1.280000e+02 : f32
    %78 = vector.broadcast %cst_42 : f32 to vector<64x1xf32>
    %79 = arith.divf %77, %78 : vector<64x1xf32>
    %80 = arith.mulf %73, %73 : vector<64x128xf32>
    %cst_43 = arith.constant dense<0.000000e+00> : vector<64xf32>
    %81 = vector.multi_reduction <add>, %80, %cst_43 [1] : vector<64x128xf32> to vector<64xf32>
    %82 = vector.shape_cast %81 : vector<64xf32> to vector<64x1xf32>
    %cst_44 = arith.constant 1.280000e+02 : f32
    %83 = vector.broadcast %cst_44 : f32 to vector<64x1xf32>
    %84 = arith.divf %82, %83 : vector<64x1xf32>
    %85 = arith.mulf %79, %79 : vector<64x1xf32>
    %86 = arith.subf %84, %85 : vector<64x1xf32>
    %87 = vector.broadcast %79 : vector<64x1xf32> to vector<64x128xf32>
    %88 = arith.subf %73, %87 : vector<64x128xf32>
    %cst_45 = arith.constant 9.99999974E-6 : f32
    %89 = vector.broadcast %cst_45 : f32 to vector<64x1xf32>
    %90 = arith.addf %86, %89 : vector<64x1xf32>
    %91 = math.rsqrt %90 : vector<64x1xf32>
    %92 = vector.broadcast %91 : vector<64x1xf32> to vector<64x128xf32>
    %93 = arith.mulf %88, %92 : vector<64x128xf32>
    %94 = vector.broadcast %74 : vector<1x128xf32> to vector<64x128xf32>
    %95 = arith.mulf %93, %94 : vector<64x128xf32>
    %96 = vector.broadcast %75 : vector<1x128xf32> to vector<64x128xf32>
    %97 = arith.addf %95, %96 : vector<64x128xf32>
    %cst_46 = arith.constant 0.000000e+00 : f32
    %98 = vector.broadcast %cst_46 : f32 to vector<64x128xf32>
    %99 = arith.maximumf %97, %98 : vector<64x128xf32>
    %100 = arith.truncf %99 : vector<64x128xf32> to vector<64x128xbf16>
    %c0_47 = arith.constant 0 : index
    %c0_48 = arith.constant 0 : index
    %101 = vector.load %arg13[%c0_47, %c0_48] : memref<128x128xbf16, #tpu.memory_space<vmem>>, vector<128x128xbf16>
    %cst_49 = arith.constant dense<0.000000e+00> : vector<64x128xf32>
    %102 = tpu.matmul %100, %101, %cst_49 {dimension_numbers = #tpu.dot_dimension_numbers<[1], [0], [0], [1], [0, 0, 1, 1], [], []>} : vector<64x128xbf16>, vector<128x128xbf16>, vector<64x128xf32> -> vector<64x128xf32>
    %c0_50 = arith.constant 0 : index
    %c0_51 = arith.constant 0 : index
    %103 = vector.load %arg14[%c0_50, %c0_51] : memref<1x128xf32, #tpu.memory_space<vmem>>, vector<1x128xf32>
    %c0_52 = arith.constant 0 : index
    %c0_53 = arith.constant 0 : index
    %104 = vector.load %arg15[%c0_52, %c0_53] : memref<1x128xf32, #tpu.memory_space<vmem>>, vector<1x128xf32>
    %cst_54 = arith.constant dense<0.000000e+00> : vector<64xf32>
    %105 = vector.multi_reduction <add>, %102, %cst_54 [1] : vector<64x128xf32> to vector<64xf32>
    %106 = vector.shape_cast %105 : vector<64xf32> to vector<64x1xf32>
    %cst_55 = arith.constant 1.280000e+02 : f32
    %107 = vector.broadcast %cst_55 : f32 to vector<64x1xf32>
    %108 = arith.divf %106, %107 : vector<64x1xf32>
    %109 = arith.mulf %102, %102 : vector<64x128xf32>
    %cst_56 = arith.constant dense<0.000000e+00> : vector<64xf32>
    %110 = vector.multi_reduction <add>, %109, %cst_56 [1] : vector<64x128xf32> to vector<64xf32>
    %111 = vector.shape_cast %110 : vector<64xf32> to vector<64x1xf32>
    %cst_57 = arith.constant 1.280000e+02 : f32
    %112 = vector.broadcast %cst_57 : f32 to vector<64x1xf32>
    %113 = arith.divf %111, %112 : vector<64x1xf32>
    %114 = arith.mulf %108, %108 : vector<64x1xf32>
    %115 = arith.subf %113, %114 : vector<64x1xf32>
    %116 = vector.broadcast %108 : vector<64x1xf32> to vector<64x128xf32>
    %117 = arith.subf %102, %116 : vector<64x128xf32>
    %cst_58 = arith.constant 9.99999974E-6 : f32
    %118 = vector.broadcast %cst_58 : f32 to vector<64x1xf32>
    %119 = arith.addf %115, %118 : vector<64x1xf32>
    %120 = math.rsqrt %119 : vector<64x1xf32>
    %121 = vector.broadcast %120 : vector<64x1xf32> to vector<64x128xf32>
    %122 = arith.mulf %117, %121 : vector<64x128xf32>
    %123 = vector.broadcast %103 : vector<1x128xf32> to vector<64x128xf32>
    %124 = arith.mulf %122, %123 : vector<64x128xf32>
    %125 = vector.broadcast %104 : vector<1x128xf32> to vector<64x128xf32>
    %126 = arith.addf %124, %125 : vector<64x128xf32>
    %127 = arith.addf %126, %70 : vector<64x128xf32>
    %cst_59 = arith.constant 0.000000e+00 : f32
    %128 = vector.broadcast %cst_59 : f32 to vector<64x128xf32>
    %129 = arith.maximumf %127, %128 : vector<64x128xf32>
    %c0_60 = arith.constant 0 : index
    %c0_61 = arith.constant 0 : index
    %130 = vector.load %arg16[%c0_60, %c0_61] : memref<1x128xf32, #tpu.memory_space<vmem>>, vector<1x128xf32>
    %131 = vector.broadcast %130 : vector<1x128xf32> to vector<64x128xf32>
    %132 = arith.mulf %129, %131 : vector<64x128xf32>
    %cst_62 = arith.constant dense<0.000000e+00> : vector<64xf32>
    %133 = vector.multi_reduction <add>, %132, %cst_62 [1] : vector<64x128xf32> to vector<64xf32>
    %134 = vector.shape_cast %133 : vector<64xf32> to vector<64x1xf32>
    %c0_63 = arith.constant 0 : index
    %c0_64 = arith.constant 0 : index
    %135 = vector.load %arg17[%c0_63, %c0_64] : memref<1x1xf32, #tpu.memory_space<vmem>>, vector<1x1xf32>
    %136 = vector.broadcast %135 : vector<1x1xf32> to vector<64x1xf32>
    %137 = arith.addf %134, %136 : vector<64x1xf32>
    %c0_65 = arith.constant 0 : index
    %c36 = arith.constant 36 : index
    %138 = vector.load %arg18[%c0_65, %c36] : memref<64x128xf32, #tpu.memory_space<vmem>>, vector<64x1xf32>
    tpu.vector_store %arg18[%c0_65, %c36], %137 {strides = array<i32>} : memref<64x128xf32, #tpu.memory_space<vmem>>, vector<64x1xf32>,
    %139 = vector.extract_strided_slice %5 {offsets = [0, 384], sizes = [64, 128], strides = [1, 1]} : vector<64x640xf32> to vector<64x128xf32>
    %cst_66 = arith.constant 0.000000e+00 : f32
    %140 = vector.broadcast %cst_66 : f32 to vector<64x128xf32>
    %141 = arith.maximumf %139, %140 : vector<64x128xf32>
    %142 = arith.truncf %141 : vector<64x128xf32> to vector<64x128xbf16>
    %c0_67 = arith.constant 0 : index
    %c0_68 = arith.constant 0 : index
    %143 = vector.load %arg4[%c0_67, %c0_68] : memref<128x128xbf16, #tpu.memory_space<vmem>>, vector<128x128xbf16>
    %cst_69 = arith.constant dense<0.000000e+00> : vector<64x128xf32>
    %144 = tpu.matmul %142, %143, %cst_69 {dimension_numbers = #tpu.dot_dimension_numbers<[1], [0], [0], [1], [0, 0, 1, 1], [], []>} : vector<64x128xbf16>, vector<128x128xbf16>, vector<64x128xf32> -> vector<64x128xf32>
    %c0_70 = arith.constant 0 : index
    %c0_71 = arith.constant 0 : index
    %145 = vector.load %arg5[%c0_70, %c0_71] : memref<1x128xf32, #tpu.memory_space<vmem>>, vector<1x128xf32>
    %c0_72 = arith.constant 0 : index
    %c0_73 = arith.constant 0 : index
    %146 = vector.load %arg6[%c0_72, %c0_73] : memref<1x128xf32, #tpu.memory_space<vmem>>, vector<1x128xf32>
    %cst_74 = arith.constant dense<0.000000e+00> : vector<64xf32>
    %147 = vector.multi_reduction <add>, %144, %cst_74 [1] : vector<64x128xf32> to vector<64xf32>
    %148 = vector.shape_cast %147 : vector<64xf32> to vector<64x1xf32>
    %cst_75 = arith.constant 1.280000e+02 : f32
    %149 = vector.broadcast %cst_75 : f32 to vector<64x1xf32>
    %150 = arith.divf %148, %149 : vector<64x1xf32>
    %151 = arith.mulf %144, %144 : vector<64x128xf32>
    %cst_76 = arith.constant dense<0.000000e+00> : vector<64xf32>
    %152 = vector.multi_reduction <add>, %151, %cst_76 [1] : vector<64x128xf32> to vector<64xf32>
    %153 = vector.shape_cast %152 : vector<64xf32> to vector<64x1xf32>
    %cst_77 = arith.constant 1.280000e+02 : f32
    %154 = vector.broadcast %cst_77 : f32 to vector<64x1xf32>
    %155 = arith.divf %153, %154 : vector<64x1xf32>
    %156 = arith.mulf %150, %150 : vector<64x1xf32>
    %157 = arith.subf %155, %156 : vector<64x1xf32>
    %158 = vector.broadcast %150 : vector<64x1xf32> to vector<64x128xf32>
    %159 = arith.subf %144, %158 : vector<64x128xf32>
    %cst_78 = arith.constant 9.99999974E-6 : f32
    %160 = vector.broadcast %cst_78 : f32 to vector<64x1xf32>
    %161 = arith.addf %157, %160 : vector<64x1xf32>
    %162 = math.rsqrt %161 : vector<64x1xf32>
    %163 = vector.broadcast %162 : vector<64x1xf32> to vector<64x128xf32>
    %164 = arith.mulf %159, %163 : vector<64x128xf32>
    %165 = vector.broadcast %145 : vector<1x128xf32> to vector<64x128xf32>
    %166 = arith.mulf %164, %165 : vector<64x128xf32>
    %167 = vector.broadcast %146 : vector<1x128xf32> to vector<64x128xf32>
    %168 = arith.addf %166, %167 : vector<64x128xf32>
    %cst_79 = arith.constant 0.000000e+00 : f32
    %169 = vector.broadcast %cst_79 : f32 to vector<64x128xf32>
    %170 = arith.maximumf %168, %169 : vector<64x128xf32>
    %171 = arith.truncf %170 : vector<64x128xf32> to vector<64x128xbf16>
    %c0_80 = arith.constant 0 : index
    %c0_81 = arith.constant 0 : index
    %172 = vector.load %arg7[%c0_80, %c0_81] : memref<128x128xbf16, #tpu.memory_space<vmem>>, vector<128x128xbf16>
    %cst_82 = arith.constant dense<0.000000e+00> : vector<64x128xf32>
    %173 = tpu.matmul %171, %172, %cst_82 {dimension_numbers = #tpu.dot_dimension_numbers<[1], [0], [0], [1], [0, 0, 1, 1], [], []>} : vector<64x128xbf16>, vector<128x128xbf16>, vector<64x128xf32> -> vector<64x128xf32>
    %174 = arith.addf %173, %8 : vector<64x128xf32>
    %c0_83 = arith.constant 0 : index
    %c0_84 = arith.constant 0 : index
    %175 = vector.load %arg8[%c0_83, %c0_84] : memref<1x128xf32, #tpu.memory_space<vmem>>, vector<1x128xf32>
    %c0_85 = arith.constant 0 : index
    %c0_86 = arith.constant 0 : index
    %176 = vector.load %arg9[%c0_85, %c0_86] : memref<1x128xf32, #tpu.memory_space<vmem>>, vector<1x128xf32>
    %cst_87 = arith.constant dense<0.000000e+00> : vector<64xf32>
    %177 = vector.multi_reduction <add>, %174, %cst_87 [1] : vector<64x128xf32> to vector<64xf32>
    %178 = vector.shape_cast %177 : vector<64xf32> to vector<64x1xf32>
    %cst_88 = arith.constant 1.280000e+02 : f32
    %179 = vector.broadcast %cst_88 : f32 to vector<64x1xf32>
    %180 = arith.divf %178, %179 : vector<64x1xf32>
    %181 = arith.mulf %174, %174 : vector<64x128xf32>
    %cst_89 = arith.constant dense<0.000000e+00> : vector<64xf32>
    %182 = vector.multi_reduction <add>, %181, %cst_89 [1] : vector<64x128xf32> to vector<64xf32>
    %183 = vector.shape_cast %182 : vector<64xf32> to vector<64x1xf32>
    %cst_90 = arith.constant 1.280000e+02 : f32
    %184 = vector.broadcast %cst_90 : f32 to vector<64x1xf32>
    %185 = arith.divf %183, %184 : vector<64x1xf32>
    %186 = arith.mulf %180, %180 : vector<64x1xf32>
    %187 = arith.subf %185, %186 : vector<64x1xf32>
    %188 = vector.broadcast %180 : vector<64x1xf32> to vector<64x128xf32>
    %189 = arith.subf %174, %188 : vector<64x128xf32>
    %cst_91 = arith.constant 9.99999974E-6 : f32
    %190 = vector.broadcast %cst_91 : f32 to vector<64x1xf32>
    %191 = arith.addf %187, %190 : vector<64x1xf32>
    %192 = math.rsqrt %191 : vector<64x1xf32>
    %193 = vector.broadcast %192 : vector<64x1xf32> to vector<64x128xf32>
    %194 = arith.mulf %189, %193 : vector<64x128xf32>
    %195 = vector.broadcast %175 : vector<1x128xf32> to vector<64x128xf32>
    %196 = arith.mulf %194, %195 : vector<64x128xf32>
    %197 = vector.broadcast %176 : vector<1x128xf32> to vector<64x128xf32>
    %198 = arith.addf %196, %197 : vector<64x128xf32>
    %cst_92 = arith.constant 0.000000e+00 : f32
    %199 = vector.broadcast %cst_92 : f32 to vector<64x128xf32>
    %200 = arith.maximumf %198, %199 : vector<64x128xf32>
    %201 = arith.truncf %200 : vector<64x128xf32> to vector<64x128xbf16>
    %c0_93 = arith.constant 0 : index
    %c0_94 = arith.constant 0 : index
    %202 = vector.load %arg10[%c0_93, %c0_94] : memref<128x128xbf16, #tpu.memory_space<vmem>>, vector<128x128xbf16>
    %cst_95 = arith.constant dense<0.000000e+00> : vector<64x128xf32>
    %203 = tpu.matmul %201, %202, %cst_95 {dimension_numbers = #tpu.dot_dimension_numbers<[1], [0], [0], [1], [0, 0, 1, 1], [], []>} : vector<64x128xbf16>, vector<128x128xbf16>, vector<64x128xf32> -> vector<64x128xf32>
    %c0_96 = arith.constant 0 : index
    %c0_97 = arith.constant 0 : index
    %204 = vector.load %arg11[%c0_96, %c0_97] : memref<1x128xf32, #tpu.memory_space<vmem>>, vector<1x128xf32>
    %c0_98 = arith.constant 0 : index
    %c0_99 = arith.constant 0 : index
    %205 = vector.load %arg12[%c0_98, %c0_99] : memref<1x128xf32, #tpu.memory_space<vmem>>, vector<1x128xf32>
    %cst_100 = arith.constant dense<0.000000e+00> : vector<64xf32>
    %206 = vector.multi_reduction <add>, %203, %cst_100 [1] : vector<64x128xf32> to vector<64xf32>
    %207 = vector.shape_cast %206 : vector<64xf32> to vector<64x1xf32>
    %cst_101 = arith.constant 1.280000e+02 : f32
    %208 = vector.broadcast %cst_101 : f32 to vector<64x1xf32>
    %209 = arith.divf %207, %208 : vector<64x1xf32>
    %210 = arith.mulf %203, %203 : vector<64x128xf32>
    %cst_102 = arith.constant dense<0.000000e+00> : vector<64xf32>
    %211 = vector.multi_reduction <add>, %210, %cst_102 [1] : vector<64x128xf32> to vector<64xf32>
    %212 = vector.shape_cast %211 : vector<64xf32> to vector<64x1xf32>
    %cst_103 = arith.constant 1.280000e+02 : f32
    %213 = vector.broadcast %cst_103 : f32 to vector<64x1xf32>
    %214 = arith.divf %212, %213 : vector<64x1xf32>
    %215 = arith.mulf %209, %209 : vector<64x1xf32>
    %216 = arith.subf %214, %215 : vector<64x1xf32>
    %217 = vector.broadcast %209 : vector<64x1xf32> to vector<64x128xf32>
    %218 = arith.subf %203, %217 : vector<64x128xf32>
    %cst_104 = arith.constant 9.99999974E-6 : f32
    %219 = vector.broadcast %cst_104 : f32 to vector<64x1xf32>
    %220 = arith.addf %216, %219 : vector<64x1xf32>
    %221 = math.rsqrt %220 : vector<64x1xf32>
    %222 = vector.broadcast %221 : vector<64x1xf32> to vector<64x128xf32>
    %223 = arith.mulf %218, %222 : vector<64x128xf32>
    %224 = vector.broadcast %204 : vector<1x128xf32> to vector<64x128xf32>
    %225 = arith.mulf %223, %224 : vector<64x128xf32>
    %226 = vector.broadcast %205 : vector<1x128xf32> to vector<64x128xf32>
    %227 = arith.addf %225, %226 : vector<64x128xf32>
    %cst_105 = arith.constant 0.000000e+00 : f32
    %228 = vector.broadcast %cst_105 : f32 to vector<64x128xf32>
    %229 = arith.maximumf %227, %228 : vector<64x128xf32>
    %230 = arith.truncf %229 : vector<64x128xf32> to vector<64x128xbf16>
    %c0_106 = arith.constant 0 : index
    %c0_107 = arith.constant 0 : index
    %231 = vector.load %arg13[%c0_106, %c0_107] : memref<128x128xbf16, #tpu.memory_space<vmem>>, vector<128x128xbf16>
    %cst_108 = arith.constant dense<0.000000e+00> : vector<64x128xf32>
    %232 = tpu.matmul %230, %231, %cst_108 {dimension_numbers = #tpu.dot_dimension_numbers<[1], [0], [0], [1], [0, 0, 1, 1], [], []>} : vector<64x128xbf16>, vector<128x128xbf16>, vector<64x128xf32> -> vector<64x128xf32>
    %c0_109 = arith.constant 0 : index
    %c0_110 = arith.constant 0 : index
    %233 = vector.load %arg14[%c0_109, %c0_110] : memref<1x128xf32, #tpu.memory_space<vmem>>, vector<1x128xf32>
    %c0_111 = arith.constant 0 : index
    %c0_112 = arith.constant 0 : index
    %234 = vector.load %arg15[%c0_111, %c0_112] : memref<1x128xf32, #tpu.memory_space<vmem>>, vector<1x128xf32>
    %cst_113 = arith.constant dense<0.000000e+00> : vector<64xf32>
    %235 = vector.multi_reduction <add>, %232, %cst_113 [1] : vector<64x128xf32> to vector<64xf32>
    %236 = vector.shape_cast %235 : vector<64xf32> to vector<64x1xf32>
    %cst_114 = arith.constant 1.280000e+02 : f32
    %237 = vector.broadcast %cst_114 : f32 to vector<64x1xf32>
    %238 = arith.divf %236, %237 : vector<64x1xf32>
    %239 = arith.mulf %232, %232 : vector<64x128xf32>
    %cst_115 = arith.constant dense<0.000000e+00> : vector<64xf32>
    %240 = vector.multi_reduction <add>, %239, %cst_115 [1] : vector<64x128xf32> to vector<64xf32>
    %241 = vector.shape_cast %240 : vector<64xf32> to vector<64x1xf32>
    %cst_116 = arith.constant 1.280000e+02 : f32
    %242 = vector.broadcast %cst_116 : f32 to vector<64x1xf32>
    %243 = arith.divf %241, %242 : vector<64x1xf32>
    %244 = arith.mulf %238, %238 : vector<64x1xf32>
    %245 = arith.subf %243, %244 : vector<64x1xf32>
    %246 = vector.broadcast %238 : vector<64x1xf32> to vector<64x128xf32>
    %247 = arith.subf %232, %246 : vector<64x128xf32>
    %cst_117 = arith.constant 9.99999974E-6 : f32
    %248 = vector.broadcast %cst_117 : f32 to vector<64x1xf32>
    %249 = arith.addf %245, %248 : vector<64x1xf32>
    %250 = math.rsqrt %249 : vector<64x1xf32>
    %251 = vector.broadcast %250 : vector<64x1xf32> to vector<64x128xf32>
    %252 = arith.mulf %247, %251 : vector<64x128xf32>
    %253 = vector.broadcast %233 : vector<1x128xf32> to vector<64x128xf32>
    %254 = arith.mulf %252, %253 : vector<64x128xf32>
    %255 = vector.broadcast %234 : vector<1x128xf32> to vector<64x128xf32>
    %256 = arith.addf %254, %255 : vector<64x128xf32>
    %257 = arith.addf %256, %200 : vector<64x128xf32>
    %cst_118 = arith.constant 0.000000e+00 : f32
    %258 = vector.broadcast %cst_118 : f32 to vector<64x128xf32>
    %259 = arith.maximumf %257, %258 : vector<64x128xf32>
    %c0_119 = arith.constant 0 : index
    %c0_120 = arith.constant 0 : index
    %260 = vector.load %arg16[%c0_119, %c0_120] : memref<1x128xf32, #tpu.memory_space<vmem>>, vector<1x128xf32>
    %261 = vector.broadcast %260 : vector<1x128xf32> to vector<64x128xf32>
    %262 = arith.mulf %259, %261 : vector<64x128xf32>
    %cst_121 = arith.constant dense<0.000000e+00> : vector<64xf32>
    %263 = vector.multi_reduction <add>, %262, %cst_121 [1] : vector<64x128xf32> to vector<64xf32>
    %264 = vector.shape_cast %263 : vector<64xf32> to vector<64x1xf32>
    %c0_122 = arith.constant 0 : index
    %c0_123 = arith.constant 0 : index
    %265 = vector.load %arg17[%c0_122, %c0_123] : memref<1x1xf32, #tpu.memory_space<vmem>>, vector<1x1xf32>
    %266 = vector.broadcast %265 : vector<1x1xf32> to vector<64x1xf32>
    %267 = arith.addf %264, %266 : vector<64x1xf32>
    %c0_124 = arith.constant 0 : index
    %c37 = arith.constant 37 : index
    %268 = vector.load %arg18[%c0_124, %c37] : memref<64x128xf32, #tpu.memory_space<vmem>>, vector<64x1xf32>
    tpu.vector_store %arg18[%c0_124, %c37], %267 {strides = array<i32>} : memref<64x128xf32, #tpu.memory_space<vmem>>, vector<64x1xf32>,
    %269 = vector.extract_strided_slice %5 {offsets = [0, 512], sizes = [64, 128], strides = [1, 1]} : vector<64x640xf32> to vector<64x128xf32>
    %cst_125 = arith.constant 0.000000e+00 : f32
    %270 = vector.broadcast %cst_125 : f32 to vector<64x128xf32>
    %271 = arith.maximumf %269, %270 : vector<64x128xf32>
    %272 = arith.truncf %271 : vector<64x128xf32> to vector<64x128xbf16>
    %c0_126 = arith.constant 0 : index
    %c0_127 = arith.constant 0 : index
    %273 = vector.load %arg4[%c0_126, %c0_127] : memref<128x128xbf16, #tpu.memory_space<vmem>>, vector<128x128xbf16>
    %cst_128 = arith.constant dense<0.000000e+00> : vector<64x128xf32>
    %274 = tpu.matmul %272, %273, %cst_128 {dimension_numbers = #tpu.dot_dimension_numbers<[1], [0], [0], [1], [0, 0, 1, 1], [], []>} : vector<64x128xbf16>, vector<128x128xbf16>, vector<64x128xf32> -> vector<64x128xf32>
    %c0_129 = arith.constant 0 : index
    %c0_130 = arith.constant 0 : index
    %275 = vector.load %arg5[%c0_129, %c0_130] : memref<1x128xf32, #tpu.memory_space<vmem>>, vector<1x128xf32>
    %c0_131 = arith.constant 0 : index
    %c0_132 = arith.constant 0 : index
    %276 = vector.load %arg6[%c0_131, %c0_132] : memref<1x128xf32, #tpu.memory_space<vmem>>, vector<1x128xf32>
    %cst_133 = arith.constant dense<0.000000e+00> : vector<64xf32>
    %277 = vector.multi_reduction <add>, %274, %cst_133 [1] : vector<64x128xf32> to vector<64xf32>
    %278 = vector.shape_cast %277 : vector<64xf32> to vector<64x1xf32>
    %cst_134 = arith.constant 1.280000e+02 : f32
    %279 = vector.broadcast %cst_134 : f32 to vector<64x1xf32>
    %280 = arith.divf %278, %279 : vector<64x1xf32>
    %281 = arith.mulf %274, %274 : vector<64x128xf32>
    %cst_135 = arith.constant dense<0.000000e+00> : vector<64xf32>
    %282 = vector.multi_reduction <add>, %281, %cst_135 [1] : vector<64x128xf32> to vector<64xf32>
    %283 = vector.shape_cast %282 : vector<64xf32> to vector<64x1xf32>
    %cst_136 = arith.constant 1.280000e+02 : f32
    %284 = vector.broadcast %cst_136 : f32 to vector<64x1xf32>
    %285 = arith.divf %283, %284 : vector<64x1xf32>
    %286 = arith.mulf %280, %280 : vector<64x1xf32>
    %287 = arith.subf %285, %286 : vector<64x1xf32>
    %288 = vector.broadcast %280 : vector<64x1xf32> to vector<64x128xf32>
    %289 = arith.subf %274, %288 : vector<64x128xf32>
    %cst_137 = arith.constant 9.99999974E-6 : f32
    %290 = vector.broadcast %cst_137 : f32 to vector<64x1xf32>
    %291 = arith.addf %287, %290 : vector<64x1xf32>
    %292 = math.rsqrt %291 : vector<64x1xf32>
    %293 = vector.broadcast %292 : vector<64x1xf32> to vector<64x128xf32>
    %294 = arith.mulf %289, %293 : vector<64x128xf32>
    %295 = vector.broadcast %275 : vector<1x128xf32> to vector<64x128xf32>
    %296 = arith.mulf %294, %295 : vector<64x128xf32>
    %297 = vector.broadcast %276 : vector<1x128xf32> to vector<64x128xf32>
    %298 = arith.addf %296, %297 : vector<64x128xf32>
    %cst_138 = arith.constant 0.000000e+00 : f32
    %299 = vector.broadcast %cst_138 : f32 to vector<64x128xf32>
    %300 = arith.maximumf %298, %299 : vector<64x128xf32>
    %301 = arith.truncf %300 : vector<64x128xf32> to vector<64x128xbf16>
    %c0_139 = arith.constant 0 : index
    %c0_140 = arith.constant 0 : index
    %302 = vector.load %arg7[%c0_139, %c0_140] : memref<128x128xbf16, #tpu.memory_space<vmem>>, vector<128x128xbf16>
    %cst_141 = arith.constant dense<0.000000e+00> : vector<64x128xf32>
    %303 = tpu.matmul %301, %302, %cst_141 {dimension_numbers = #tpu.dot_dimension_numbers<[1], [0], [0], [1], [0, 0, 1, 1], [], []>} : vector<64x128xbf16>, vector<128x128xbf16>, vector<64x128xf32> -> vector<64x128xf32>
    %304 = arith.addf %303, %8 : vector<64x128xf32>
    %c0_142 = arith.constant 0 : index
    %c0_143 = arith.constant 0 : index
    %305 = vector.load %arg8[%c0_142, %c0_143] : memref<1x128xf32, #tpu.memory_space<vmem>>, vector<1x128xf32>
    %c0_144 = arith.constant 0 : index
    %c0_145 = arith.constant 0 : index
    %306 = vector.load %arg9[%c0_144, %c0_145] : memref<1x128xf32, #tpu.memory_space<vmem>>, vector<1x128xf32>
    %cst_146 = arith.constant dense<0.000000e+00> : vector<64xf32>
    %307 = vector.multi_reduction <add>, %304, %cst_146 [1] : vector<64x128xf32> to vector<64xf32>
    %308 = vector.shape_cast %307 : vector<64xf32> to vector<64x1xf32>
    %cst_147 = arith.constant 1.280000e+02 : f32
    %309 = vector.broadcast %cst_147 : f32 to vector<64x1xf32>
    %310 = arith.divf %308, %309 : vector<64x1xf32>
    %311 = arith.mulf %304, %304 : vector<64x128xf32>
    %cst_148 = arith.constant dense<0.000000e+00> : vector<64xf32>
    %312 = vector.multi_reduction <add>, %311, %cst_148 [1] : vector<64x128xf32> to vector<64xf32>
    %313 = vector.shape_cast %312 : vector<64xf32> to vector<64x1xf32>
    %cst_149 = arith.constant 1.280000e+02 : f32
    %314 = vector.broadcast %cst_149 : f32 to vector<64x1xf32>
    %315 = arith.divf %313, %314 : vector<64x1xf32>
    %316 = arith.mulf %310, %310 : vector<64x1xf32>
    %317 = arith.subf %315, %316 : vector<64x1xf32>
    %318 = vector.broadcast %310 : vector<64x1xf32> to vector<64x128xf32>
    %319 = arith.subf %304, %318 : vector<64x128xf32>
    %cst_150 = arith.constant 9.99999974E-6 : f32
    %320 = vector.broadcast %cst_150 : f32 to vector<64x1xf32>
    %321 = arith.addf %317, %320 : vector<64x1xf32>
    %322 = math.rsqrt %321 : vector<64x1xf32>
    %323 = vector.broadcast %322 : vector<64x1xf32> to vector<64x128xf32>
    %324 = arith.mulf %319, %323 : vector<64x128xf32>
    %325 = vector.broadcast %305 : vector<1x128xf32> to vector<64x128xf32>
    %326 = arith.mulf %324, %325 : vector<64x128xf32>
    %327 = vector.broadcast %306 : vector<1x128xf32> to vector<64x128xf32>
    %328 = arith.addf %326, %327 : vector<64x128xf32>
    %cst_151 = arith.constant 0.000000e+00 : f32
    %329 = vector.broadcast %cst_151 : f32 to vector<64x128xf32>
    %330 = arith.maximumf %328, %329 : vector<64x128xf32>
    %331 = arith.truncf %330 : vector<64x128xf32> to vector<64x128xbf16>
    %c0_152 = arith.constant 0 : index
    %c0_153 = arith.constant 0 : index
    %332 = vector.load %arg10[%c0_152, %c0_153] : memref<128x128xbf16, #tpu.memory_space<vmem>>, vector<128x128xbf16>
    %cst_154 = arith.constant dense<0.000000e+00> : vector<64x128xf32>
    %333 = tpu.matmul %331, %332, %cst_154 {dimension_numbers = #tpu.dot_dimension_numbers<[1], [0], [0], [1], [0, 0, 1, 1], [], []>} : vector<64x128xbf16>, vector<128x128xbf16>, vector<64x128xf32> -> vector<64x128xf32>
    %c0_155 = arith.constant 0 : index
    %c0_156 = arith.constant 0 : index
    %334 = vector.load %arg11[%c0_155, %c0_156] : memref<1x128xf32, #tpu.memory_space<vmem>>, vector<1x128xf32>
    %c0_157 = arith.constant 0 : index
    %c0_158 = arith.constant 0 : index
    %335 = vector.load %arg12[%c0_157, %c0_158] : memref<1x128xf32, #tpu.memory_space<vmem>>, vector<1x128xf32>
    %cst_159 = arith.constant dense<0.000000e+00> : vector<64xf32>
    %336 = vector.multi_reduction <add>, %333, %cst_159 [1] : vector<64x128xf32> to vector<64xf32>
    %337 = vector.shape_cast %336 : vector<64xf32> to vector<64x1xf32>
    %cst_160 = arith.constant 1.280000e+02 : f32
    %338 = vector.broadcast %cst_160 : f32 to vector<64x1xf32>
    %339 = arith.divf %337, %338 : vector<64x1xf32>
    %340 = arith.mulf %333, %333 : vector<64x128xf32>
    %cst_161 = arith.constant dense<0.000000e+00> : vector<64xf32>
    %341 = vector.multi_reduction <add>, %340, %cst_161 [1] : vector<64x128xf32> to vector<64xf32>
    %342 = vector.shape_cast %341 : vector<64xf32> to vector<64x1xf32>
    %cst_162 = arith.constant 1.280000e+02 : f32
    %343 = vector.broadcast %cst_162 : f32 to vector<64x1xf32>
    %344 = arith.divf %342, %343 : vector<64x1xf32>
    %345 = arith.mulf %339, %339 : vector<64x1xf32>
    %346 = arith.subf %344, %345 : vector<64x1xf32>
    %347 = vector.broadcast %339 : vector<64x1xf32> to vector<64x128xf32>
    %348 = arith.subf %333, %347 : vector<64x128xf32>
    %cst_163 = arith.constant 9.99999974E-6 : f32
    %349 = vector.broadcast %cst_163 : f32 to vector<64x1xf32>
    %350 = arith.addf %346, %349 : vector<64x1xf32>
    %351 = math.rsqrt %350 : vector<64x1xf32>
    %352 = vector.broadcast %351 : vector<64x1xf32> to vector<64x128xf32>
    %353 = arith.mulf %348, %352 : vector<64x128xf32>
    %354 = vector.broadcast %334 : vector<1x128xf32> to vector<64x128xf32>
    %355 = arith.mulf %353, %354 : vector<64x128xf32>
    %356 = vector.broadcast %335 : vector<1x128xf32> to vector<64x128xf32>
    %357 = arith.addf %355, %356 : vector<64x128xf32>
    %cst_164 = arith.constant 0.000000e+00 : f32
    %358 = vector.broadcast %cst_164 : f32 to vector<64x128xf32>
    %359 = arith.maximumf %357, %358 : vector<64x128xf32>
    %360 = arith.truncf %359 : vector<64x128xf32> to vector<64x128xbf16>
    %c0_165 = arith.constant 0 : index
    %c0_166 = arith.constant 0 : index
    %361 = vector.load %arg13[%c0_165, %c0_166] : memref<128x128xbf16, #tpu.memory_space<vmem>>, vector<128x128xbf16>
    %cst_167 = arith.constant dense<0.000000e+00> : vector<64x128xf32>
    %362 = tpu.matmul %360, %361, %cst_167 {dimension_numbers = #tpu.dot_dimension_numbers<[1], [0], [0], [1], [0, 0, 1, 1], [], []>} : vector<64x128xbf16>, vector<128x128xbf16>, vector<64x128xf32> -> vector<64x128xf32>
    %c0_168 = arith.constant 0 : index
    %c0_169 = arith.constant 0 : index
    %363 = vector.load %arg14[%c0_168, %c0_169] : memref<1x128xf32, #tpu.memory_space<vmem>>, vector<1x128xf32>
    %c0_170 = arith.constant 0 : index
    %c0_171 = arith.constant 0 : index
    %364 = vector.load %arg15[%c0_170, %c0_171] : memref<1x128xf32, #tpu.memory_space<vmem>>, vector<1x128xf32>
    %cst_172 = arith.constant dense<0.000000e+00> : vector<64xf32>
    %365 = vector.multi_reduction <add>, %362, %cst_172 [1] : vector<64x128xf32> to vector<64xf32>
    %366 = vector.shape_cast %365 : vector<64xf32> to vector<64x1xf32>
    %cst_173 = arith.constant 1.280000e+02 : f32
    %367 = vector.broadcast %cst_173 : f32 to vector<64x1xf32>
    %368 = arith.divf %366, %367 : vector<64x1xf32>
    %369 = arith.mulf %362, %362 : vector<64x128xf32>
    %cst_174 = arith.constant dense<0.000000e+00> : vector<64xf32>
    %370 = vector.multi_reduction <add>, %369, %cst_174 [1] : vector<64x128xf32> to vector<64xf32>
    %371 = vector.shape_cast %370 : vector<64xf32> to vector<64x1xf32>
    %cst_175 = arith.constant 1.280000e+02 : f32
    %372 = vector.broadcast %cst_175 : f32 to vector<64x1xf32>
    %373 = arith.divf %371, %372 : vector<64x1xf32>
    %374 = arith.mulf %368, %368 : vector<64x1xf32>
    %375 = arith.subf %373, %374 : vector<64x1xf32>
    %376 = vector.broadcast %368 : vector<64x1xf32> to vector<64x128xf32>
    %377 = arith.subf %362, %376 : vector<64x128xf32>
    %cst_176 = arith.constant 9.99999974E-6 : f32
    %378 = vector.broadcast %cst_176 : f32 to vector<64x1xf32>
    %379 = arith.addf %375, %378 : vector<64x1xf32>
    %380 = math.rsqrt %379 : vector<64x1xf32>
    %381 = vector.broadcast %380 : vector<64x1xf32> to vector<64x128xf32>
    %382 = arith.mulf %377, %381 : vector<64x128xf32>
    %383 = vector.broadcast %363 : vector<1x128xf32> to vector<64x128xf32>
    %384 = arith.mulf %382, %383 : vector<64x128xf32>
    %385 = vector.broadcast %364 : vector<1x128xf32> to vector<64x128xf32>
    %386 = arith.addf %384, %385 : vector<64x128xf32>
    %387 = arith.addf %386, %330 : vector<64x128xf32>
    %cst_177 = arith.constant 0.000000e+00 : f32
    %388 = vector.broadcast %cst_177 : f32 to vector<64x128xf32>
    %389 = arith.maximumf %387, %388 : vector<64x128xf32>
    %c0_178 = arith.constant 0 : index
    %c0_179 = arith.constant 0 : index
    %390 = vector.load %arg16[%c0_178, %c0_179] : memref<1x128xf32, #tpu.memory_space<vmem>>, vector<1x128xf32>
    %391 = vector.broadcast %390 : vector<1x128xf32> to vector<64x128xf32>
    %392 = arith.mulf %389, %391 : vector<64x128xf32>
    %cst_180 = arith.constant dense<0.000000e+00> : vector<64xf32>
    %393 = vector.multi_reduction <add>, %392, %cst_180 [1] : vector<64x128xf32> to vector<64xf32>
    %394 = vector.shape_cast %393 : vector<64xf32> to vector<64x1xf32>
    %c0_181 = arith.constant 0 : index
    %c0_182 = arith.constant 0 : index
    %395 = vector.load %arg17[%c0_181, %c0_182] : memref<1x1xf32, #tpu.memory_space<vmem>>, vector<1x1xf32>
    %396 = vector.broadcast %395 : vector<1x1xf32> to vector<64x1xf32>
    %397 = arith.addf %394, %396 : vector<64x1xf32>
    %c0_183 = arith.constant 0 : index
    %c38 = arith.constant 38 : index
    %398 = vector.load %arg18[%c0_183, %c38] : memref<64x128xf32, #tpu.memory_space<vmem>>, vector<64x1xf32>
    tpu.vector_store %arg18[%c0_183, %c38], %397 {strides = array<i32>} : memref<64x128xf32, #tpu.memory_space<vmem>>, vector<64x1xf32>,
    return
  }
  func.func @transform_0(%arg0: i32) -> (i32, i32) {
    %c0_i32 = arith.constant 0 : i32
    %c0_i32_0 = arith.constant 0 : i32
    return %arg0, %c0_i32 : i32, i32
  }
  func.func @transform_1(%arg0: i32) -> (i32, i32) {
    %c0_i32 = arith.constant 0 : i32
    %c0_i32_0 = arith.constant 0 : i32
    %c0_i32_1 = arith.constant 0 : i32
    return %c0_i32, %c0_i32_0 : i32, i32
  }
  func.func @transform_2(%arg0: i32) -> (i32, i32) {
    %c0_i32 = arith.constant 0 : i32
    %c0_i32_0 = arith.constant 0 : i32
    %c0_i32_1 = arith.constant 0 : i32
    return %c0_i32, %c0_i32_0 : i32, i32
  }
  func.func @transform_3(%arg0: i32) -> (i32, i32) {
    %c0_i32 = arith.constant 0 : i32
    %c0_i32_0 = arith.constant 0 : i32
    %c0_i32_1 = arith.constant 0 : i32
    return %c0_i32, %c0_i32_0 : i32, i32
  }
  func.func @transform_4(%arg0: i32) -> (i32, i32) {
    %c0_i32 = arith.constant 0 : i32
    %c0_i32_0 = arith.constant 0 : i32
    %c0_i32_1 = arith.constant 0 : i32
    return %c0_i32, %c0_i32_0 : i32, i32
  }
  func.func @transform_5(%arg0: i32) -> (i32, i32) {
    %c0_i32 = arith.constant 0 : i32
    %c0_i32_0 = arith.constant 0 : i32
    %c0_i32_1 = arith.constant 0 : i32
    return %c0_i32, %c0_i32_0 : i32, i32
  }
  func.func @transform_6(%arg0: i32) -> (i32, i32) {
    %c0_i32 = arith.constant 0 : i32
    %c0_i32_0 = arith.constant 0 : i32
    %c0_i32_1 = arith.constant 0 : i32
    return %c0_i32, %c0_i32_0 : i32, i32
  }
  func.func @transform_7(%arg0: i32) -> (i32, i32) {
    %c0_i32 = arith.constant 0 : i32
    %c0_i32_0 = arith.constant 0 : i32
    %c0_i32_1 = arith.constant 0 : i32
    return %c0_i32, %c0_i32_0 : i32, i32
  }
  func.func @transform_8(%arg0: i32) -> (i32, i32) {
    %c0_i32 = arith.constant 0 : i32
    %c0_i32_0 = arith.constant 0 : i32
    %c0_i32_1 = arith.constant 0 : i32
    return %c0_i32, %c0_i32_0 : i32, i32
  }
  func.func @transform_9(%arg0: i32) -> (i32, i32) {
    %c0_i32 = arith.constant 0 : i32
    %c0_i32_0 = arith.constant 0 : i32
    %c0_i32_1 = arith.constant 0 : i32
    return %c0_i32, %c0_i32_0 : i32, i32
  }
  func.func @transform_10(%arg0: i32) -> (i32, i32) {
    %c0_i32 = arith.constant 0 : i32
    %c0_i32_0 = arith.constant 0 : i32
    %c0_i32_1 = arith.constant 0 : i32
    return %c0_i32, %c0_i32_0 : i32, i32
  }
  func.func @transform_11(%arg0: i32) -> (i32, i32) {
    %c0_i32 = arith.constant 0 : i32
    %c0_i32_0 = arith.constant 0 : i32
    %c0_i32_1 = arith.constant 0 : i32
    return %c0_i32, %c0_i32_0 : i32, i32
  }
  func.func @transform_12(%arg0: i32) -> (i32, i32) {
    %c0_i32 = arith.constant 0 : i32
    %c0_i32_0 = arith.constant 0 : i32
    %c0_i32_1 = arith.constant 0 : i32
    return %c0_i32, %c0_i32_0 : i32, i32
  }
  func.func @transform_13(%arg0: i32) -> (i32, i32) {
    %c0_i32 = arith.constant 0 : i32
    %c0_i32_0 = arith.constant 0 : i32
    %c0_i32_1 = arith.constant 0 : i32
    return %c0_i32, %c0_i32_0 : i32, i32
  }
  func.func @transform_14(%arg0: i32) -> (i32, i32) {
    %c0_i32 = arith.constant 0 : i32
    %c0_i32_0 = arith.constant 0 : i32
    %c0_i32_1 = arith.constant 0 : i32
    return %c0_i32, %c0_i32_0 : i32, i32
  }
  func.func @transform_15(%arg0: i32) -> (i32, i32) {
    %c0_i32 = arith.constant 0 : i32
    %c0_i32_0 = arith.constant 0 : i32
    %c0_i32_1 = arith.constant 0 : i32
    return %c0_i32, %c0_i32_0 : i32, i32
  }
  func.func @transform_16(%arg0: i32) -> (i32, i32) {
    %c0_i32 = arith.constant 0 : i32
    %c0_i32_0 = arith.constant 0 : i32
    %c0_i32_1 = arith.constant 0 : i32
    return %c0_i32, %c0_i32_0 : i32, i32
  }
  func.func @transform_17(%arg0: i32) -> (i32, i32) {
    %c0_i32 = arith.constant 0 : i32
    %c0_i32_0 = arith.constant 0 : i32
    return %arg0, %c0_i32 : i32, i32
  }
}

</mosaic_0001>

<bundles_post_ra>
// kernel: tpu_custom_call.1
= control target key start
LH: loop header
LB: loop body
LE: loop exit
PB: predicated region body
PF: predicated region fallthrough
CT: control target
= control target key end

     0   :  { %s8472_s0 = inlined_call_operand.vmem [shape: bf16[256,130], index: 0, kind: input, shape index: {}]   ;;  %s8473_s1 = inlined_call_operand.vmem [shape: bf16[130,640], index: 1, kind: input, shape index: {}]   ;;  %s8474_s2 = inlined_call_operand.hbm [shape: f32[1,640], index: 2, kind: input, shape index: {}]   ;;  %s8475_s3 = inlined_call_operand.hbm [shape: bf16[128,128], index: 3, kind: input, shape index: {}]   ;;  %s8476_s4 = inlined_call_operand.vmem [shape: f32[1,128], index: 4, kind: input, shape index: {}]   ;;  %s8477_s5 = inlined_call_operand.vmem [shape: f32[1,128], index: 5, kind: input, shape index: {}]   ;;  %s8478_s6 = inlined_call_operand.hbm [shape: bf16[128,128], index: 6, kind: input, shape index: {}]   ;;  %s8479_s7 = inlined_call_operand.vmem [shape: f32[1,128], index: 7, kind: input, shape index: {}]   ;;  %s8480_s8 = inlined_call_operand.vmem [shape: f32[1,128], index: 8, kind: input, shape index: {}]   ;;  %s8481_s9 = inlined_call_operand.vmem [shape: bf16[128,128], index: 9, kind: input, shape index: {}]   ;;  %s8482_s10 = inlined_call_operand.hbm [shape: f32[1,128], index: 10, kind: input, shape index: {}]   ;;  %s8483_s11 = inlined_call_operand.vmem [shape: f32[1,128], index: 11, kind: input, shape index: {}]   ;;  %s8484_s12 = inlined_call_operand.hbm [shape: bf16[128,128], index: 12, kind: input, shape index: {}]   ;;  %s8485_s13 = inlined_call_operand.vmem [shape: f32[1,128], index: 13, kind: input, shape index: {}]   ;;  %s8486_s14 = inlined_call_operand.vmem [shape: f32[1,128], index: 14, kind: input, shape index: {}]   ;;  %s8487_s15 = inlined_call_operand.vmem [shape: f32[1,128], index: 15, kind: input, shape index: {}]   ;;  %s8488_s16 = inlined_call_operand.<no memory space> [shape: f32[1,1], index: 16, kind: input, shape index: {}]   ;;  %s8489_s17 = inlined_call_operand.hbm [shape: f32[256,128], index: 17, kind: output, shape index: {}]  }
   0x1   :  { %8540 = sst [smem:[#allocation38_spill]] %s8472_s0  ;;  %v22_v0 = vstv %s8488_s16 }
   0x2   :  { %8541 = sst [smem:[#allocation39_spill]] %s8473_s1  ;;  %23 = vst [vmem:[#allocation2] sm:$0x1] %v22_v0 }
   0x3   :  { %8542 = sst [smem:[#allocation40_spill]] %s8474_s2 }
   0x4   :  { %8543 = sst [smem:[#allocation41_spill]] %s8489_s17 }
   0x5   :  { %24 = vsyncpa [#allocation4], 0 }
   0x6   :  { %25 = vsyncpa [#allocation7], 0 }
   0x7   :  { %26 = vsyncpa [#allocation10], 0 }
   0x8   :  { %27 = vsyncpa [#allocation5], 0 }
   0x9   :  { %29 = vsyncpa [#allocation5 + $0x1], 0  ;;  %s6396_s26 = smov 0   ;;  %s6398_s27 = smov 0  }
   0xa   :  { %s6400_s28 = smov 0   ;;  %s6402_s29 = smov 0  }
   0xb LB: > { %8544 = sst [smem:[#allocation17_spill]] %s6275_s26  ;;  %s6417_s16 = sadd.s32 4294967295, %s6287_s29   ;;  %s6287_s29 = sphi %s6402_s29, %s8624_s29   ;;  %s6283_s28 = sphi %s6400_s28, %s8626_s28   ;;  %s6279_s27 = sphi %s6398_s27, %s8628_s27   ;;  %s6275_s26 = sphi %s6396_s26, %s8627_s26  }
   0xc   : > { %8545 = sst [smem:[#allocation18_spill]] %s6283_s28  ;;  %s4952_s0 = sadd.s32 4294967294, %s6287_s29  }
   0xd   : > { %8546 = sst [smem:[#allocation19_spill]] %s6287_s29  ;;  %s6421_s30 = sadd.s32 1, %s6287_s29  }
   0xe   : > { %8547 = sst [smem:[#allocation20_spill]] %s6421_s30  ;;  %s404_s18 = sadd.s32 1, %s6283_s28 }
   0xf   : > { %s401_s19 = ssub.s32 %s6287_s29, %s6421_s30  ;;  %p414_p0 = scmp.ne.s32.totalorder %s6283_s28, %s6279_s27 }
  0x10   : > { %p402_p1 = scmp.eq.s32.totalorder %s401_s19, 0  ;;  %p415_p2 = scmp.eq.s32.totalorder %s6417_s16, 3 }
  0x11   : > { %p420_p3 = scmp.ne.s32.totalorder %s6279_s27, %s6275_s26  ;;  %p421_p4 = scmp.eq.s32.totalorder %s4952_s0, 3 }
  0x12   : > { %s6432_s1 = scalar_select %p402_p1, %s6283_s28, %s404_s18  }
  0x13   : > { %p6434_p5 = por %p415_p2, %p414_p0  ;;  %p6438_p6 = por %p421_p4, %p420_p3 }
  0x14   : > { %8548 = sst [smem:[#allocation21_spill]] %s6432_s1  ;;  %p4953_p7 = scmp.ge.s32.totalorder %s6287_s29, 1 }
  0x15   : > { %s8549_s20 = scalar_select %p6434_p5, 1, 0 }
  0x16   : > { %s8550_s21 = scalar_select %p6438_p6, 1, 0 }
  0x17   : > { %p428_p8 = scmp.lt.s32.totalorder %s6287_s29, 5  ;;  %p8498_p9 = scmp.eq.s32.totalorder %s6417_s16, 0 }
  0x18   : > { %8551 = sst [smem:[#allocation22_spill]] %s8550_s21  ;;  %s6289_s23 = smov [#allocation6]  }
  0x19   : > { %p6445_p10 = pnand %p4953_p7, %p428_p8  ;;  %s454_s24 = sshll.u32 %s6289_s23, 4  ;;  %s455_s24 = int_to_ptr.vmem [resolvable:$true] %s454_s24 }
  0x1a   : > { %s6290_s0 = smov [#allocation9]   ;;  %s6291_s19 = smov [#allocation3]  }
  0x1b   : > { %p5640_p11 = pneg %p6445_p10  ;;  %s496_s18 = sshll.u32 %s6290_s0, 4  ;;  %s497_s18 = int_to_ptr.vmem [resolvable:$true] %s496_s18 }
  0x1c   : > { %s444_s1 = sshll.u32 %s6291_s19, 4  ;;  %s6096_s23 = scalar_lea.vmem %s455_s24, 1024  ;;  %s445_s1 = int_to_ptr.vmem [resolvable:$true] %s444_s1 }
  0x1d   : > { %p6453_p12 = pnand %p8498_p9, %p5640_p11  ;;  %p6097_p0 = scmp.ne.s32.totalorder %s455_s24, %s6096_s23 }
  0x1e   : > { %p6104_p3 = scmp.lt.s32.totalorder %s455_s24, %s455_s24  ;;  %p6105_p4 = scmp.lt.s32.totalorder %s6096_s23, %s6096_s23 }
  0x1f   : > { %p6459_p13 = pneg %p6453_p12 }
  0x20   : > { %p6106_p7 = por %p6105_p4, %p6104_p3 }
  0x21   : > { %p6099_p1 = pnand %p6097_p0, %p6459_p13 }
  0x23   : > { %p6100_p2 = pneg %p6099_p1 }
  0x25   : > { %p6107_p8 = pnand %p6106_p7, %p6100_p2 }
  0x27   : > { %6110 = shalt.err (!%p6107_p8)
}
  0x28   : > { %s8500_s0 = smov 64   ;;  %s6293_s19 = smov 4  }
  0x29   : > { %5646 = dma.hbm_to_vmem [thread:$0]  (!%p6453_p12), %s8475_s3, 1024, %s455_s24, [#allocation7], %s8500_s0, %s8500_s0, %s6293_s19  }
  0x2a   : > { %s6122_s26 = scalar_lea.vmem %s497_s18, 16  ;;  %s6129_s23 = scalar_lea.vmem %s497_s18, 32 }
  0x2b   : > { %p6123_p11 = scmp.ne.s32.totalorder %s497_s18, %s6122_s26  ;;  %p6130_p2 = scmp.lt.s32.totalorder %s497_s18, %s497_s18 }
  0x2c   : > { %p6131_p3 = scmp.lt.s32.totalorder %s6129_s23, %s6122_s26 }
  0x2d   : > { %p6125_p0 = pnand %p6123_p11, %p6459_p13 }
  0x2e   : > { %p6132_p4 = por %p6131_p3, %p6130_p2 }
  0x2f   : > { %p6126_p1 = pneg %p6125_p0 }
  0x31   : > { %p6133_p7 = pnand %p6132_p4, %p6126_p1 }
  0x33   : > { %6136 = shalt.err (!%p6133_p7)
}
  0x34   : > { %5652 = dma.hbm_to_vmem [thread:$0]  (!%p6453_p12), %s8482_s10, 16, %s497_s18, [#allocation10]  }
  0x35   : > { %s6148_s30 = scalar_lea.vmem %s445_s1, 80  ;;  %s6155_s21 = scalar_lea.vmem %s445_s1, 96 }
  0x36   : > { %p6149_p8 = scmp.ne.s32.totalorder %s445_s1, %s6148_s30  ;;  %p6156_p0 = scmp.lt.s32.totalorder %s445_s1, %s445_s1 }
  0x37   : > { %p6157_p6 = scmp.lt.s32.totalorder %s6155_s21, %s6148_s30 }
  0x38   : > { %p6151_p9 = pnand %p6149_p8, %p6459_p13 }
  0x39   : > { %p6158_p5 = por %p6157_p6, %p6156_p0 }
  0x3a   : > { %p6152_p11 = pneg %p6151_p9 }
  0x3c   : > { %p6159_p2 = pnand %p6158_p5, %p6152_p11 }
  0x3e   : > { %6162 = shalt.err (!%p6159_p2)
}
  0x3f   : > { %s8555_s2 = sld [smem:[#allocation40_spill]]  ;;  %s6294_s17 = smov [#allocation8]  }
  0x40   : > { %s473_s29 = sshll.u32 %s6294_s17, 4  ;;  %s6295_s18 = smov [#allocation11]   ;;  %s474_s29 = int_to_ptr.vmem [resolvable:$true] %s473_s29 }
  0x41   : > { %s509_s23 = sshll.u32 %s6295_s18, 4  ;;  %s6174_s0 = scalar_lea.vmem %s474_s29, 1024  ;;  %s510_s23 = int_to_ptr.vmem [resolvable:$true] %s509_s23 }
  0x42   : > { %p6175_p9 = scmp.ne.s32.totalorder %s474_s29, %s6174_s0  ;;  %p6182_p6 = scmp.lt.s32.totalorder %s474_s29, %s474_s29 }
  0x43   : > { %p6183_p5 = scmp.lt.s32.totalorder %s6174_s0, %s6174_s0 }
  0x44   : > { %p6177_p1 = pnand %p6175_p9, %p6459_p13 }
  0x45   : > { %5643 = dma.hbm_to_vmem [thread:$0]  (!%p6453_p12), %s8555_s2, 80, %s445_s1, [#allocation4]  }
  0x46   : > { %p6178_p3 = pneg %p6177_p1  ;;  %p6184_p4 = por %p6183_p5, %p6182_p6 }
  0x48   : > { %p6185_p7 = pnand %p6184_p4, %p6178_p3 }
  0x4a   : > { %6188 = shalt.err (!%p6185_p7)
}
  0x4b   : > { %s8556_s30 = smov 64   ;;  %s6200_s26 = scalar_lea.vmem %s510_s23, 1024 }
  0x4c   : > { %5649 = dma.hbm_to_vmem [thread:$0]  (!%p6453_p12), %s8478_s6, 1024, %s474_s29, [#allocation7], %s8556_s30, %s8556_s30, %s6293_s19  }
  0x4d   : > { %p6201_p8 = scmp.ne.s32.totalorder %s510_s23, %s6200_s26  ;;  %p6208_p2 = scmp.lt.s32.totalorder %s510_s23, %s510_s23 }
  0x4e   : > { %p6209_p9 = scmp.lt.s32.totalorder %s6200_s26, %s6200_s26 }
  0x4f   : > { %p6203_p11 = pnand %p6201_p8, %p6459_p13 }
  0x50   : > { %p6210_p1 = por %p6209_p9, %p6208_p2 }
  0x51   : > { %p6204_p0 = pneg %p6203_p11 }
  0x53   : > { %p6211_p3 = pnand %p6210_p1, %p6204_p0 }
  0x55   : > { %6214 = shalt.err (!%p6211_p3)
}
  0x56   : > { %5655 = dma.hbm_to_vmem [thread:$0]  (!%p6453_p12), %s8484_s12, 1024, %s510_s23, [#allocation10], %s8556_s30, %s8556_s30, %s6293_s19  }
  0x57   : > { %547 = sbr.rel (%p6445_p10) target bundleno = 3796 (0xed4), region = 88 }
  0x5c   : > { %p8557_p13 = scmp.eq.s32.totalorder %s6417_s16, 0 }
  0x5e   : > { %6258 = dma.done.wait (%p8557_p13), [#allocation4], 80   ;;  %p8558_p6 = pmov %p8557_p13 }
  0x60   : > { %6260 = vsyncadd (%p8558_p6), [#allocation4], 4294967216  ;;  %p8559_p5 = pmov %p8558_p6 }
  0x62   : > { %6262 = dma.done.wait (%p8559_p5), [#allocation7], 2048   ;;  %p8560_p4 = pmov %p8559_p5 }
  0x64   : > { %6264 = vsyncadd (%p8560_p4), [#allocation7], 4294965248  ;;  %p8561_p7 = pmov %p8560_p4 }
  0x65   : > { %p8562_p12 = pmov %p8560_p4 }
  0x66   : > { %6266 = dma.done.wait (%p8561_p7), [#allocation10], 1040  }
  0x67   : > { %6268 = vsyncadd (%p8562_p12), [#allocation10], 4294966256  ;;  %s4967_s28 = sshll.u32 %s6417_s16, 3  ;;  %s8563_s19 = sld [smem:[#allocation39_spill]]  ;;  %vm968_vm0 = vcmask 15360   ;;  %vm981_vm1 = vcmask 1040384   ;;  %v686_v37 = vlaneseq }
  0x68   : > { %p617_p10 = scmp.lt.s32.totalorder %s4967_s28, 31  ;;  %s8564_s23 = sld [smem:[#allocation38_spill]]  ;;  %v5754_v22 = vld [vmem:[#allocation6 + $0x38] sm:$0xff]   ;;  %v5755_v25 = vld [vmem:[#allocation6 + $0x30] sm:$0xff]   ;;  %v5756_v26 = vld [vmem:[#allocation6 + $0x28] sm:$0xff]   ;;  %vm2411_vm2 = vcmask 302368  }
  0x69   : > { %v5757_v29 = vld [vmem:[#allocation6 + $0x20] sm:$0xff]   ;;  %v5758_v33 = vld [vmem:[#allocation6 + $0x18] sm:$0xff]   ;;  %v5759_v34 = vld [vmem:[#allocation6 + $0x10] sm:$0xff]   ;;  %v6618_v38 = vshrl.u32 %v686_v37, 7  ;;  %s6298_s1 = smov 37   ;;  %vm3614_vm3 = vcmask 310568  }
  0x6a   : > { %s8630_s28 = smov (!%p617_p10, %s4967_s28), 31  ;;  %v5760_v35 = vld [vmem:[#allocation6 + $0x8] sm:$0xff]   ;;  %v5761_v36 = vld [vmem:[#allocation6] sm:$0xff]   ;;  %v6621_v40 = vld [vmem:[#allocation3] sm:$0x1f]  ;;  %vm4817_vm4 = vcmask 318768  }
  0x6b   : > { %s5168_s0 = sshll.u32 %s8630_s28, 3  ;;  %v696_v39 = vsub.s32 2, %v6618_v38  ;;  %v700_v41 = vsub.s32 3, %v6618_v38  ;;  %s6299_s28 = smov 38  }
  0x6c   : > { %s5169_s21 = sshll.u32 %s6417_s16, 10  ;;  %s8618_s25 = sld [smem:[#allocation41_spill]] }
  0x6d   : > { %v5716_v1 = vld [vmem:[%s8563_s19 + $0x124] ss:$20 sps:$4 sm:$0xff]   ;;  %v5718_v2 = vld [vmem:[%s8563_s19 + $0x120] ss:$20 sps:$4 sm:$0xff]   ;;  %v5719_v3 = vld [vmem:[%s8563_s19 + $0xfc] ss:$20 sps:$4 sm:$0xff]   ;;  %v697_v42 = vrot.slane %v6621_v40, %v696_v39  ;;  %v6626_v44 = vrot.slane %v6621_v40, %v700_v41 }
  0x6e   : > { %1070 = vmatprep.subr.bf16.mxu1 %v5716_v1  ;;  %v5721_v4 = vld [vmem:[%s8563_s19 + $0xf8] ss:$20 sps:$4 sm:$0xff]   ;;  %v5722_v5 = vld [vmem:[%s8563_s19 + $0xd4] ss:$20 sps:$4 sm:$0xff]   ;;  %v5724_v6 = vld [vmem:[%s8563_s19 + $0xd0] ss:$20 sps:$4 sm:$0xff]   ;;  %s6546_s30 = scalar_lea.vmem %s8564_s23, %s5168_s0 }
  0x6f   : > { %1071 = vmatpush1.bf16.msra.mxu1 %v5718_v2  ;;  %v5725_v7 = vld [vmem:[%s8563_s19 + $0xac] ss:$20 sps:$4 sm:$0xff]   ;;  %v5727_v8 = vld [vmem:[%s8563_s19 + $0xa8] ss:$20 sps:$4 sm:$0xff]   ;;  %v5728_v10 = vld [vmem:[%s8563_s19 + $0x84] ss:$20 sps:$4 sm:$0xff]  }
  0x70   : > { %1072 = vmatprep.subr.bf16.mxu1 %v5719_v3  ;;  %v6552_v9 = vld [vmem:[%s6546_s30 + $0x4] ss:$8 sps:$4 sm:$0xff]   ;;  %v5730_v11 = vld [vmem:[%s8563_s19 + $0x80] ss:$20 sps:$4 sm:$0xff]   ;;  %v5731_v12 = vld [vmem:[%s8563_s19 + $0x5c] ss:$20 sps:$4 sm:$0xff]  }
  0x71   : > { %5029 = vmatprep.mubr.msk.bf16.mxu1 %vm968_vm0, %v6552_v9  ;;  %5024 = vmatprep.mubr.msk.bf16.mxu0 %vm968_vm0, %v6552_v9  ;;  %v5733_v13 = vld [vmem:[%s8563_s19 + $0x58] ss:$20 sps:$4 sm:$0xff]   ;;  %v5734_v14 = vld [vmem:[%s8563_s19 + $0x34] ss:$20 sps:$4 sm:$0xff]   ;;  %v5736_v16 = vld [vmem:[%s8563_s19 + $0x30] ss:$20 sps:$4 sm:$0xff]  }
  0x72   : > { %v682_v15 = vld [vmem:[%s8563_s19 + $0x148] sm:$0x11]  ;;  %v6591_v24 = vld [vmem:[%s6546_s30 + $0x14] ss:$8 sps:$4 sm:$0xff]   ;;  %v6597_v27 = vld [vmem:[%s6546_s30 + $0x10] ss:$8 sps:$4 sm:$0xff]  }
  0x73   : > { %1073 = vmatpush1.bf16.msra.mxu1 %v5721_v4  ;;  %v5737_v17 = vld [vmem:[%s8563_s19 + $0xc] ss:$20 sps:$4 sm:$0xff]   ;;  %v5739_v18 = vld [vmem:[%s8563_s19 + $0x8] ss:$20 sps:$4 sm:$0xff]   ;;  %v5020_v19 = vcombine.low %v682_v15, %v682_v15  ;;  %v5021_v20 = vcombine.high %v682_v15, %v682_v15  ;;  %v6615_v32 = vld [vmem:[%s6546_s30 + $0x30] ss:$8 sps:$4 sm:$0xff]  }
  0x74   : > { %1074 = vmatprep.subr.bf16.mxu1 %v5722_v5  ;;  %v6588_v23 = vld [vmem:[%s6546_s30] ss:$8 sps:$4 sm:$0xff]   ;;  %v6600_v28 = vld [vmem:[%s6546_s30 + $0x24] ss:$8 sps:$4 sm:$0xff]   ;;  %v6609_v31 = vld [vmem:[%s6546_s30 + $0x34] ss:$8 sps:$4 sm:$0xff]  }
  0x75   : > { %v989_v21 = vsel %vm981_vm1, %v5020_v19, 0  ;;  %v6606_v30 = vld [vmem:[%s6546_s30 + $0x20] ss:$8 sps:$4 sm:$0xff]   ;;  %v5762_v39 = vld [vmem:[%s8563_s19 + $0x11c] ss:$20 sps:$4 sm:$0xff]   ;;  %s613_s0 = sand.u32 1, %s6279_s27  }
  0x76   : > { %v5764_v41 = vld [vmem:[%s8563_s19 + $0x118] ss:$20 sps:$4 sm:$0xff]   ;;  %997 = vmatprep.subr.bf16.mxu0 %v5762_v39  ;;  %s4966_s24 = sshll.u32 %s613_s0, 6  ;;  %s6297_s23 = smov 36  }
  0x77   : > { %1075 = vmatpush1.bf16.msra.mxu1 %v5724_v6  ;;  %998 = vmatpush1.bf16.msra.mxu0 %v5764_v41  ;;  %s6803_s22 = scalar_lea.vmem [#allocation12], %s4966_s24  ;;  %s8432_s17 = scalar_lea.sflag [#allocation5], %s613_s0 }
  0x78   : > { %1076 = vmatprep.subr.bf16.mxu1 %v5725_v7  ;;  %s4840_s26 = sshll.u32 %s6803_s22, 4  ;;  %p8619_p11 = scmp.ne.s32.totalorder %s8549_s20, 0  ;;  %s8426_s26 = int_to_ptr.vmem [resolvable:$true] %s4840_s26 }
  0x79   : > { %s6215_s16 = scalar_lea.vmem %s8426_s26, 1024  ;;  %s6300_s29 = smov [#allocation12]  }
  0x7a   : > { %p6216_p8 = scmp.ne.s32.totalorder %s8426_s26, %s6215_s16  ;;  %s6219_s18 = sshll.u32 %s6300_s29, 4  ;;  %s6220_s18 = int_to_ptr.vmem [resolvable:$false] %s6219_s18 }
  0x7b   : > { %1077 = vmatpush1.bf16.msra.mxu1 %v5727_v8  ;;  %p6222_p9 = scmp.lt.s32.totalorder %s8426_s26, %s6220_s18 }
  0x7c   : > { %1078 = vmatprep.subr.bf16.mxu1 %v5728_v10  ;;  %p6217_p0 = pnand %p6216_p8, %p8619_p11 }
  0x7e   : > { %p6218_p2 = pneg %p6217_p0 }
  0x7f   : > { %1079 = vmatpush1.bf16.msra.mxu1 %v5730_v11 }
  0x80   : > { %1080 = vmatprep.subr.bf16.mxu1 %v5731_v12 }
  0x83   : > { %1081 = vmatpush1.bf16.msra.mxu1 %v5733_v13 }
  0x84   : > { %1082 = vmatprep.subr.bf16.mxu1 %v5734_v14 }
  0x87   : > { %1083 = vmatpush1.bf16.msra.mxu1 %v5736_v16 }
  0x88   : > { %1084 = vmatprep.subr.bf16.mxu1 %v5737_v17 }
  0x8b   : > { %1085 = vmatpush1.bf16.msra.mxu1 %v5739_v18 }
  0x8c   : > { %5028 = vmatprep.subr.msk.bf16.mxu1 %vm981_vm1, %v5021_v20 }
  0x8f   : > { %1101 = vmatpush2.bf16.msra.mxu1 %v989_v21 }
  0x90   : > { %5314 = vmatprep.subr.bf16.mxu1 %v5754_v22 }
  0x92   : > { %1103 = vmatmul.mubr.bf16.vlgmr.msra.gmra.mxu1 %v6588_v23 }
  0x93   : > { %5030 = vmatprep.mubr.msk.bf16.mxu1 %vm968_vm0, %v6591_v24  ;;  %5315 = vmatpush3.bf16.msra.mxu1 %v5754_v22 }
  0x94   : > { %5316 = vmatprep.subr.bf16.mxu1 %v5755_v25 }
  0x97   : > { %5317 = vmatpush3.bf16.msra.mxu1 %v5755_v25 }
  0x98   : > { %5318 = vmatprep.subr.bf16.mxu1 %v5756_v26 }
  0x9a   : > { %1113 = vmatmul.mubr.bf16.gmra.mxu1 %v6597_v27 }
  0x9b   : > { %5031 = vmatprep.mubr.msk.bf16.mxu1 %vm968_vm0, %v6600_v28  ;;  %5319 = vmatpush3.bf16.msra.mxu1 %v5756_v26 }
  0x9c   : > { %5320 = vmatprep.subr.bf16.mxu1 %v5757_v29 }
  0x9f   : > { %5321 = vmatpush3.bf16.msra.mxu1 %v5757_v29 }
  0xa0   : > { %5322 = vmatprep.subr.bf16.mxu1 %v5758_v33 }
  0xa2   : > { %1123 = vmatmul.mubr.bf16.gmra.mxu1 %v6606_v30 }
  0xa3   : > { %5032 = vmatprep.mubr.msk.bf16.mxu1 %vm968_vm0, %v6609_v31  ;;  %5323 = vmatpush3.bf16.msra.mxu1 %v5758_v33 }
  0xa4   : > { %5324 = vmatprep.subr.bf16.mxu1 %v5759_v34 }
  0xa7   : > { %5325 = vmatpush3.bf16.msra.mxu1 %v5759_v34 }
  0xa8   : > { %5326 = vmatprep.subr.bf16.mxu1 %v5760_v35 }
  0xaa   : > { %1133 = vmatmul.mubr.bf16.gmra.mxu1 %v6615_v32 }
  0xab   : > { %5327 = vmatpush3.bf16.msra.mxu1 %v5760_v35 }
  0xac   : > { %5328 = vmatprep.subr.bf16.mxu1 %v5761_v36 }
  0xaf   : > { %5329 = vmatpush3.bf16.msra.mxu1 %v5761_v36 }
 0x152   : > { %v1104_v43 = vpop.f32.mrf.mxu1 }
 0x153   : > { %v1105_v46 = vadd.f32 %v1104_v43, %v697_v42  ;;  %v5765_v43 = vld [vmem:[%s8563_s19 + $0xf4] ss:$20 sps:$4 sm:$0xff]  }
 0x154   : > { %v1106_v45 = vpop.f32.mrf.mxu1  ;;  %999 = vmatprep.subr.bf16.mxu0 %v5765_v43 }
 0x155   : > { %v1107_v48 = vadd.f32 %v1106_v45, %v6626_v44  ;;  %v1216_v51 = vmax.f32 %v1105_v46, 0.0 }
 0x156   : > { %v1108_v47 = vpop.f32.mrf.mxu1 }
 0x157   : > { %v1109_v49 = vadd.f32 %v1108_v47, %v697_v42  ;;  %v2420_v55 = vmax.f32 %v1107_v48, 0.0 }
 0x158   : > { %v1110_v50 = vpop.f32.mrf.mxu1 }
 0x159   : > { %v1217_v52 = vmax.f32 %v1109_v49, 0.0  ;;  %v1111_v53 = vadd.f32 %v1110_v50, %v6626_v44 }
 0x15a   : > { %v1114_v54 = vpop.f32.mrf.mxu1 }
 0x15b   : > { %v1224_v56 = vpack.c.bf16 %v1217_v52, %v1216_v51  ;;  %v2421_v57 = vmax.f32 %v1111_v53, 0.0  ;;  %v1115_v60 = vadd.f32 %v1114_v54, %v697_v42  ;;  %v5768_v52 = vld [vmem:[%s8563_s19 + $0xcc] ss:$20 sps:$4 sm:$0xff]   ;;  %v5770_v53 = vld [vmem:[%s8563_s19 + $0xc8] ss:$20 sps:$4 sm:$0xff]  }
 0x15c   : > { %v1116_v58 = vpop.f32.mrf.mxu1 }
 0x15d   : > { %v6630_v59 = vpack.c.bf16 %v2421_v57, %v2420_v55  ;;  %5330 = vmatprep.mubr.bf16.mxu1 %v1224_v56  ;;  %v1117_v62 = vadd.f32 %v1116_v58, %v6626_v44  ;;  %v1218_v1 = vmax.f32 %v1115_v60, 0.0  ;;  %v5771_v56 = vld [vmem:[%s8563_s19 + $0xa4] ss:$20 sps:$4 sm:$0xff]   ;;  %v5773_v57 = vld [vmem:[%s8563_s19 + $0xa0] ss:$20 sps:$4 sm:$0xff]  }
 0x15e   : > { %v1118_v61 = vpop.f32.mrf.mxu1  ;;  %v5774_v60 = vld [vmem:[%s8563_s19 + $0x7c] ss:$20 sps:$4 sm:$0xff]  }
 0x15f   : > { %v1119_v63 = vadd.f32 %v1118_v61, %v697_v42  ;;  %v2422_v5 = vmax.f32 %v1117_v62, 0.0  ;;  %v5776_v62 = vld [vmem:[%s8563_s19 + $0x78] ss:$20 sps:$4 sm:$0xff]  }
 0x160   : > { %v1120_v0 = vpop.f32.mrf.mxu1 }
 0x161   : > { %v1219_v2 = vmax.f32 %v1119_v63, 0.0  ;;  %v1121_v3 = vadd.f32 %v1120_v0, %v6626_v44  ;;  %v5777_v0 = vld [vmem:[%s8563_s19 + $0x54] ss:$20 sps:$4 sm:$0xff]  }
 0x162   : > { %v1124_v4 = vpop.f32.mrf.mxu1 }
 0x163   : > { %v1225_v6 = vpack.c.bf16 %v1219_v2, %v1218_v1  ;;  %v2423_v7 = vmax.f32 %v1121_v3, 0.0  ;;  %v1125_v11 = vadd.f32 %v1124_v4, %v697_v42  ;;  %v5779_v1 = vld [vmem:[#allocation8 + $0x38] sm:$0xff]  }
 0x164   : > { %v1126_v8 = vpop.f32.mrf.mxu1  ;;  %v5780_v2 = vld [vmem:[%s8563_s19 + $0x50] ss:$20 sps:$4 sm:$0xff]   ;;  %5338 = vmatprep.subr.bf16.mxu1 %v5779_v1 }
 0x165   : > { %v6634_v10 = vpack.c.bf16 %v2423_v7, %v2422_v5  ;;  %5331 = vmatmul.mubr.bf16.vlgmr.msra.gmra.mxu1 %v1225_v6  ;;  %v1127_v13 = vadd.f32 %v1126_v8, %v6626_v44  ;;  %v1220_v16 = vmax.f32 %v1125_v11, 0.0  ;;  %v5781_v5 = vld [vmem:[%s8563_s19 + $0x2c] ss:$20 sps:$4 sm:$0xff]   ;;  %v5783_v6 = vld [vmem:[#allocation8 + $0x30] sm:$0xff]  }
 0x166   : > { %v1128_v12 = vpop.f32.mrf.mxu1  ;;  %5339 = vmatpush3.bf16.msra.mxu1 %v5779_v1  ;;  %v5784_v8 = vld [vmem:[%s8563_s19 + $0x28] ss:$20 sps:$4 sm:$0xff]  }
 0x167   : > { %v1129_v14 = vadd.f32 %v1128_v12, %v697_v42  ;;  %v2424_v20 = vmax.f32 %v1127_v13, 0.0  ;;  %5340 = vmatprep.subr.bf16.mxu1 %v5783_v6  ;;  %v5785_v12 = vld [vmem:[%s8563_s19 + $0x4] ss:$20 sps:$4 sm:$0xff]   ;;  %v5787_v13 = vld [vmem:[#allocation8 + $0x28] sm:$0xff]  }
 0x168   : > { %v1130_v15 = vpop.f32.mrf.mxu1 }
 0x169   : > { %v1221_v17 = vmax.f32 %v1129_v14, 0.0  ;;  %v1131_v18 = vadd.f32 %v1130_v15, %v6626_v44  ;;  %v5788_v15 = vld [vmem:[%s8563_s19] ss:$20 sps:$4 sm:$0xff]  }
 0x16a   : > { %v1134_v19 = vpop.f32.mrf.mxu1  ;;  %5341 = vmatpush3.bf16.msra.mxu1 %v5783_v6 }
 0x16b   : > { %v1226_v21 = vpack.c.bf16 %v1221_v17, %v1220_v16  ;;  %v2425_v22 = vmax.f32 %v1131_v18, 0.0  ;;  %v1135_v29 = vadd.f32 %v1134_v19, %v697_v42  ;;  %5342 = vmatprep.subr.bf16.mxu1 %v5787_v13  ;;  %v681_v16 = vld [vmem:[%s8563_s19 + $0x140] sm:$0x11]  ;;  %v5790_v18 = vld [vmem:[#allocation8 + $0x20] sm:$0xff]  }
 0x16c   : > { %v6638_v25 = vpop.f32.mrf.mxu1  ;;  %v5019_v17 = vcombine.high %v681_v16, %v681_v16  ;;  %v5018_v19 = vcombine.low %v681_v16, %v681_v16 }
 0x16d   : > { %v6640_v26 = vpack.c.bf16 %v2425_v22, %v2424_v20  ;;  %5334 = vmatprep.mubr.bf16.mxu1 %v1226_v21  ;;  %v1222_v35 = vmax.f32 %v1135_v29, 0.0  ;;  %v5792_v21 = vld [vmem:[#allocation8 + $0x18] sm:$0xff]   ;;  %v5793_v22 = vld [vmem:[#allocation8 + $0x10] sm:$0xff]   ;;  %v5794_v29 = vld [vmem:[#allocation8 + $0x8] sm:$0xff]  }
 0x16e   : > { %v1138_v33 = vpop.f32.mrf.mxu1  ;;  %5343 = vmatpush3.bf16.msra.mxu1 %v5787_v13  ;;  %v983_v20 = vsel %vm981_vm1, %v5018_v19, 0 }
 0x16f   : > { %v1139_v34 = vadd.f32 %v1138_v33, %v697_v42  ;;  %v5767_v42 = vld [vmem:[%s8563_s19 + $0xf0] ss:$20 sps:$4 sm:$0xff]   ;;  %5344 = vmatprep.subr.bf16.mxu1 %v5790_v18 }
 0x170   : > { %1000 = vmatpush1.bf16.msra.mxu0 %v5767_v42  ;;  %v6654_v45 = vpop.f32.mrf.mxu1  ;;  %v5795_v33 = vld [vmem:[#allocation8] sm:$0xff]  }
 0x171   : > { %v1223_v36 = vmax.f32 %v1139_v34, 0.0  ;;  %1001 = vmatprep.subr.bf16.mxu0 %v5768_v52 }
 0x172   : > { %5345 = vmatpush3.bf16.msra.mxu1 %v5790_v18 }
 0x173   : > { %v1227_v37 = vpack.c.bf16 %v1223_v36, %v1222_v35  ;;  %5346 = vmatprep.subr.bf16.mxu1 %v5792_v21 }
 0x174   : > { %1002 = vmatpush1.bf16.msra.mxu0 %v5770_v53 }
 0x175   : > { %5335 = vmatmul.mubr.bf16.gmra.mxu1 %v1227_v37  ;;  %1003 = vmatprep.subr.bf16.mxu0 %v5771_v56 }
 0x176   : > { %5347 = vmatpush3.bf16.msra.mxu1 %v5792_v21 }
 0x177   : > { %5348 = vmatprep.subr.bf16.mxu1 %v5793_v22 }
 0x178   : > { %1004 = vmatpush1.bf16.msra.mxu0 %v5773_v57 }
 0x179   : > { %1005 = vmatprep.subr.bf16.mxu0 %v5774_v60 }
 0x17a   : > { %5349 = vmatpush3.bf16.msra.mxu1 %v5793_v22 }
 0x17b   : > { %5350 = vmatprep.subr.bf16.mxu1 %v5794_v29 }
 0x17c   : > { %1006 = vmatpush1.bf16.msra.mxu0 %v5776_v62 }
 0x17d   : > { %1007 = vmatprep.subr.bf16.mxu0 %v5777_v0 }
 0x17e   : > { %5351 = vmatpush3.bf16.msra.mxu1 %v5794_v29 }
 0x17f   : > { %5352 = vmatprep.subr.bf16.mxu1 %v5795_v33 }
 0x180   : > { %1008 = vmatpush1.bf16.msra.mxu0 %v5780_v2 }
 0x181   : > { %1009 = vmatprep.subr.bf16.mxu0 %v5781_v5 }
 0x182   : > { %5353 = vmatpush3.bf16.msra.mxu1 %v5795_v33 }
 0x184   : > { %1010 = vmatpush1.bf16.msra.mxu0 %v5784_v8 }
 0x185   : > { %1011 = vmatprep.subr.bf16.mxu0 %v5785_v12 }
 0x188   : > { %1012 = vmatpush1.bf16.msra.mxu0 %v5788_v15 }
 0x189   : > { %5023 = vmatprep.subr.msk.bf16.mxu0 %vm981_vm1, %v5019_v17 }
 0x18c   : > { %1028 = vmatpush2.bf16.msra.mxu0 %v983_v20 }
 0x18f   : > { %1030 = vmatmul.mubr.bf16.vlgmr.msra.gmra.mxu0 %v6588_v23 }
 0x190   : > { %5025 = vmatprep.mubr.msk.bf16.mxu0 %vm968_vm0, %v6591_v24 }
 0x197   : > { %1040 = vmatmul.mubr.bf16.gmra.mxu0 %v6597_v27 }
 0x198   : > { %5026 = vmatprep.mubr.msk.bf16.mxu0 %vm968_vm0, %v6600_v28 }
 0x19f   : > { %1050 = vmatmul.mubr.bf16.gmra.mxu0 %v6606_v30 }
 0x1a0   : > { %5027 = vmatprep.mubr.msk.bf16.mxu0 %vm968_vm0, %v6609_v31 }
 0x1a7   : > { %1060 = vmatmul.mubr.bf16.gmra.mxu0 %v6615_v32 }
 0x1a8   : > { %5033 = vmatprep.mubr.msk.bf16.mxu0 %vm968_vm0, %v6552_v9 }
 0x225   : > { %v6656_v46 = vpop.f32.mrf.mxu1 }
 0x226   : > { %1363 = vadd.xlane.f32.xlu1 %v6656_v46  ;;  %v1386_v55 = vmul.f32 %v6656_v46, %v6656_v46 }
 0x227   : > { %v6659_v47 = vpop.f32.mrf.mxu1 }
 0x228   : > { %1359 = vadd.xlane.f32.xlu0 %v6659_v47  ;;  %v1384_v49 = vmul.f32 %v6659_v47, %v6659_v47 }
 0x229   : > { %v6662_v48 = vpop.f32.mrf.mxu1 }
 0x22a   : > { %1365 = vadd.xlane.f32.xlu1 %v6662_v48  ;;  %v1387_v54 = vmul.f32 %v6662_v48, %v6662_v48 }
 0x22b   : > { %v6667_v50 = vpop.f32.mrf.mxu1 }
 0x22c   : > { %1392 = vadd.xlane.f32.xlu0 %v1384_v49  ;;  %v1385_v51 = vmul.f32 %v6667_v50, %v6667_v50 }
 0x22e   : > { %1394 = vadd.xlane.f32.xlu1 %v1385_v51 }
 0x230   : > { %1361 = vadd.xlane.f32.xlu0 %v6667_v50 }
 0x232   : > { %1398 = vadd.xlane.f32.xlu1 %v1387_v54 }
 0x234   : > { %1396 = vadd.xlane.f32.xlu0 %v1386_v55 }
 0x235   : > { %v6688_v58 = vpop.f32.mrf.mxu1 }
 0x236   : > { %v1390_v11 = vmul.f32 %v6688_v58, %v6688_v58 }
 0x237   : > { %v6693_v61 = vpop.f32.mrf.mxu1 }
 0x238   : > { %1371 = vadd.xlane.f32.xlu0 %v6688_v58  ;;  %v1388_v4 = vmul.f32 %v6693_v61, %v6693_v61 }
 0x239   : > { %v6699_v63 = vpop.f32.mrf.mxu1 }
 0x23a   : > { %1373 = vadd.xlane.f32.xlu1 %v6699_v63  ;;  %v1391_v14 = vmul.f32 %v6699_v63, %v6699_v63 }
 0x23b   : > { %v6709_v3 = vpop.f32.mrf.mxu1 }
 0x23c   : > { %1367 = vadd.xlane.f32.xlu0 %v6693_v61  ;;  %v1389_v7 = vmul.f32 %v6709_v3, %v6709_v3 }
 0x23e   : > { %1369 = vadd.xlane.f32.xlu1 %v6709_v3 }
 0x240   : > { %1400 = vadd.xlane.f32.xlu0 %v1388_v4 }
 0x242   : > { %1402 = vadd.xlane.f32.xlu1 %v1389_v7 }
 0x244   : > { %1404 = vadd.xlane.f32.xlu0 %v1390_v11 }
 0x246   : > { %1406 = vadd.xlane.f32.xlu1 %v1391_v14  ;;  %v6765_v14 = vld [vmem:[%s8476_s4] ss:$0 sm:$0xff] }
 0x2af   : > { %v1364_v23 = vpop.xlane.xlu1 %1363 }
 0x2b0   : > { %v6751_v43 = vmul.f32 0.0078125, %v1364_v23 }
 0x2b1   : > { %v1360_v24 = vpop.xlane.xlu0 %1359 }
 0x2b2   : > { %v1376_v27 = vmul.f32 0.0078125, %v1360_v24  ;;  %v1418_v54 = vmul.f32 %v6751_v43, %v6751_v43 }
 0x2b3   : > { %v1366_v34 = vpop.xlane.xlu1 %1365 }
 0x2b4   : > { %v1416_v28 = vmul.f32 %v1376_v27, %v1376_v27  ;;  %v6749_v37 = vmul.f32 0.0078125, %v1366_v34  ;;  %v1432_v8 = vsub.f32 %v6659_v47, %v1376_v27 }
 0x2b5   : > { %v1393_v35 = vpop.xlane.xlu0 %1392 }
 0x2b6   : > { %v1408_v36 = vmul.f32 0.0078125, %v1393_v35  ;;  %v1419_v32 = vmul.f32 %v6749_v37, %v6749_v37 }
 0x2b7   : > { %v1395_v39 = vpop.xlane.xlu1 %1394 }
 0x2b8   : > { %v1424_v41 = vsub.f32 %v1408_v36, %v1416_v28  ;;  %v1409_v49 = vmul.f32 0.0078125, %v1395_v39  ;;  %v5046_v28 = vld [vmem:[%s8477_s5] ss:$0 sm:$0xff]  ;;  %v1434_v39 = vsub.f32 %v6656_v46, %v6751_v43 }
 0x2b9   : > { %v1362_v30 = vpop.xlane.xlu0 %1361 }
 0x2ba   : > { %v1440_v31 = vadd.f32 1e-05, %v1424_v41  ;;  %v1377_v42 = vmul.f32 0.0078125, %v1362_v30 }
 0x2bb   : > { %v1399_v9 = vpop.xlane.xlu1 %1398 }
 0x2bc   : > { %5885 = vrsqrt.f32 %v1440_v31  ;;  %v1417_v51 = vmul.f32 %v1377_v42, %v1377_v42  ;;  %v1411_v52 = vmul.f32 0.0078125, %v1399_v9  ;;  %v1433_v22 = vsub.f32 %v6667_v50, %v1377_v42 }
 0x2bd   : > { %v1397_v53 = vpop.xlane.xlu0 %1396  ;;  %v1435_v50 = vsub.f32 %v6662_v48, %v6749_v37 }
 0x2be   : > { %v1425_v55 = vsub.f32 %v1409_v49, %v1417_v51  ;;  %v1427_v56 = vsub.f32 %v1411_v52, %v1419_v32  ;;  %v1410_v57 = vmul.f32 0.0078125, %v1397_v53 }
 0x2c0   : > { %v1441_v60 = vadd.f32 1e-05, %v1425_v55  ;;  %v1443_v62 = vadd.f32 1e-05, %v1427_v56  ;;  %v1426_v0 = vsub.f32 %v1410_v57, %v1418_v54 }
 0x2c1   : > { %v1372_v1 = vpop.xlane.xlu0 %1371 }
 0x2c2   : > { %5887 = vrsqrt.f32 %v1441_v60  ;;  %v1442_v2 = vadd.f32 1e-05, %v1426_v0  ;;  %v6767_v15 = vmul.f32 0.0078125, %v1372_v1 }
 0x2c3   : > { %5889 = vrsqrt.f32 %v1443_v62  ;;  %v1374_v4 = vpop.xlane.xlu1 %1373 }
 0x2c4   : > { %5891 = vrsqrt.f32 %v1442_v2  ;;  %v1383_v29 = vmul.f32 0.0078125, %v1374_v4  ;;  %v1422_v24 = vmul.f32 %v6767_v15, %v6767_v15 }
 0x2c5   : > { %v1368_v5 = vpop.xlane.xlu0 %1367 }
 0x2c6   : > { %v6757_v6 = vmul.f32 0.0078125, %v1368_v5  ;;  %v1423_v49 = vmul.f32 %v1383_v29, %v1383_v29 }
 0x2c7   : > { %v1370_v7 = vpop.xlane.xlu1 %1369 }
 0x2c8   : > { %v6760_v11 = vmul.f32 0.0078125, %v1370_v7  ;;  %v1420_v16 = vmul.f32 %v6757_v6, %v6757_v6 }
 0x2c9   : > { %v5886_v12 = vpop.eup %5885  ;;  %v1401_v13 = vpop.xlane.xlu0 %1400 }
 0x2ca   : > { %v1412_v17 = vmul.f32 0.0078125, %v1401_v13  ;;  %v1456_v18 = vmul.f32 %v5886_v12, %v1432_v8  ;;  %v1421_v47 = vmul.f32 %v6760_v11, %v6760_v11  ;;  %v1436_v8 = vsub.f32 %v6693_v61, %v6757_v6 }
 0x2cb   : > { %v1403_v19 = vpop.xlane.xlu1 %1402  ;;  %v1437_v13 = vsub.f32 %v6709_v3, %v6760_v11  ;;  %v1439_v61 = vsub.f32 %v6699_v63, %v1383_v29  ;;  %v688_v63 = vsub.s32 0, %v6618_v38 }
 0x2cc   : > { %v1428_v20 = vsub.f32 %v1412_v17, %v1420_v16  ;;  %v1413_v21 = vmul.f32 0.0078125, %v1403_v19  ;;  %v1470_v23 = vmul.f32 %v6765_v14, %v1456_v18  ;;  %v1438_v18 = vsub.f32 %v6688_v58, %v6767_v15 }
 0x2cd   : > { %v1405_v33 = vpop.xlane.xlu0 %1404  ;;  %v689_v29 = vrot.slane %v6621_v40, %v688_v63 }
 0x2ce   : > { %v1444_v27 = vadd.f32 1e-05, %v1428_v20  ;;  %v1429_v34 = vsub.f32 %v1413_v21, %v1421_v47  ;;  %v1414_v35 = vmul.f32 0.0078125, %v1405_v33  ;;  %v1484_v52 = vadd.f32 %v5046_v28, %v1470_v23 }
 0x2cf   : > { %v5888_v36 = vpop.eup %5887  ;;  %v1407_v41 = vpop.xlane.xlu1 %1406 }
 0x2d0   : > { %v5890_v30 = vpop.eup %5889  ;;  %v1457_v31 = vmul.f32 %v5888_v36, %v1433_v22  ;;  %5893 = vrsqrt.f32 %v1444_v27  ;;  %v1445_v42 = vadd.f32 1e-05, %v1429_v34  ;;  %v1430_v32 = vsub.f32 %v1414_v35, %v1422_v24 }
 0x2d1   : > { %v5892_v9 = vpop.eup %5891  ;;  %v1415_v51 = vmul.f32 0.0078125, %v1407_v41  ;;  %v1459_v53 = vmul.f32 %v5890_v30, %v1435_v50  ;;  %v1492_v62 = vmax.f32 %v1484_v52, 0.0  ;;  %v1031_v41 = vpop.f32.mrf.mxu0 }
 0x2d2   : > { %v1471_v54 = vmul.f32 %v6765_v14, %v1457_v31  ;;  %5895 = vrsqrt.f32 %v1445_v42  ;;  %v1446_v55 = vadd.f32 1e-05, %v1430_v32  ;;  %v1458_v56 = vmul.f32 %v5892_v9, %v1434_v39 }
 0x2d3   : > { %v1431_v46 = vsub.f32 %v1415_v51, %v1423_v49  ;;  %v1473_v43 = vmul.f32 %v6765_v14, %v1459_v53  ;;  %v1032_v30 = vadd.f32 %v1031_v41, %v689_v29  ;;  %v1033_v31 = vpop.f32.mrf.mxu0 }
 0x2d4   : > { %5897 = vrsqrt.f32 %v1446_v55  ;;  %v1485_v48 = vadd.f32 %v5046_v28, %v1471_v54  ;;  %v1472_v37 = vmul.f32 %v6765_v14, %v1458_v56 }
 0x2d5   : > { %v1447_v57 = vadd.f32 1e-05, %v1431_v46  ;;  %v1487_v60 = vadd.f32 %v5046_v28, %v1473_v43  ;;  %1208 = vst [vmem:[%s6803_s22] sm:$0xff] %v1032_v30 }
 0x2d6   : > { %v1493_v0 = vmax.f32 %v1485_v48, 0.0  ;;  %v1486_v1 = vadd.f32 %v5046_v28, %v1472_v37 }
 0x2d7   : > { %5899 = vrsqrt.f32 %v1447_v57  ;;  %v1495_v5 = vmax.f32 %v1487_v60, 0.0 }
 0x2d8   : > { %v1500_v2 = vpack.c.bf16 %v1493_v0, %v1492_v62  ;;  %v1494_v4 = vmax.f32 %v1486_v1, 0.0  ;;  %v5796_v1 = vld [vmem:[%s8563_s19 + $0x128] ss:$20 sps:$4 sm:$0xff]  }
 0x2da   : > { %5354 = vmatprep.mubr.bf16.mxu1 %v1500_v2  ;;  %v1501_v7 = vpack.c.bf16 %v1495_v5, %v1494_v4  ;;  %v6296_v2 = vmov 0   ;;  %v5797_v4 = vld [vmem:[%s8563_s19 + $0x100] ss:$20 sps:$4 sm:$0xff]   ;;  %v5798_v5 = vld [vmem:[%s8563_s19 + $0xd8] ss:$20 sps:$4 sm:$0xff]  }
 0x2db   : > { %1143 = vmatprep.subr.bf16.mxu0 %v6296_v2 }
 0x2dc   : > { %5355 = vmatmul.mubr.bf16.vlgmr.msra.gmra.mxu1 %v1501_v7  ;;  %1144 = vmatpush1.bf16.msra.mxu0 %v5796_v1  ;;  %v5799_v7 = vld [vmem:[%s8563_s19 + $0xb0] ss:$20 sps:$4 sm:$0xff]  }
 0x2dd   : > { %v5894_v12 = vpop.eup %5893  ;;  %1145 = vmatprep.subr.bf16.mxu0 %v6296_v2  ;;  %v5810_v1 = vld [vmem:[%s8481_s9 + $0x10] sm:$0xff]  }
 0x2de   : > { %v1460_v16 = vmul.f32 %v5894_v12, %v1436_v8  ;;  %v5800_v8 = vld [vmem:[%s8563_s19 + $0x88] ss:$20 sps:$4 sm:$0xff]   ;;  %v5801_v12 = vld [vmem:[%s8563_s19 + $0x60] ss:$20 sps:$4 sm:$0xff]  }
 0x2df   : > { %v5896_v17 = vpop.eup %5895 }
 0x2e0   : > { %v1461_v19 = vmul.f32 %v5896_v17, %v1437_v13  ;;  %v1474_v47 = vmul.f32 %v6765_v14, %v1460_v16  ;;  %1146 = vmatpush1.bf16.msra.mxu0 %v5797_v4  ;;  %v5802_v13 = vld [vmem:[%s8563_s19 + $0x38] ss:$20 sps:$4 sm:$0xff]   ;;  %v692_v16 = vsub.s32 1, %v6618_v38 }
 0x2e1   : > { %v5898_v20 = vpop.eup %5897  ;;  %1147 = vmatprep.subr.bf16.mxu0 %v6296_v2  ;;  %v5811_v4 = vld [vmem:[%s8481_s9 + $0x8] sm:$0xff]  }
 0x2e2   : > { %v1475_v21 = vmul.f32 %v6765_v14, %v1461_v19  ;;  %v1488_v22 = vadd.f32 %v5046_v28, %v1474_v47  ;;  %v1462_v33 = vmul.f32 %v5898_v20, %v1438_v18  ;;  %v693_v17 = vrot.slane %v6621_v40, %v692_v16 }
 0x2e4   : > { %v5900_v6 = vpop.eup %5899  ;;  %v1489_v23 = vadd.f32 %v5046_v28, %v1475_v21  ;;  %v1476_v3 = vmul.f32 %v6765_v14, %v1462_v33  ;;  %v1496_v24 = vmax.f32 %v1488_v22, 0.0  ;;  %1148 = vmatpush1.bf16.msra.mxu0 %v5798_v5  ;;  %v6845_v21 = vadd.f32 %v1033_v31, %v693_v17  ;;  %v5812_v5 = vld [vmem:[%s8481_s9] sm:$0xff]  }
 0x2e5   : > { %v1463_v11 = vmul.f32 %v5900_v6, %v1439_v61  ;;  %1149 = vmatprep.subr.bf16.mxu0 %v6296_v2 }
 0x2e6   : > { %v1497_v27 = vmax.f32 %v1489_v23, 0.0  ;;  %v1490_v15 = vadd.f32 %v5046_v28, %v1476_v3 }
 0x2e7   : > { %v1477_v58 = vmul.f32 %v6765_v14, %v1463_v11  ;;  %v1035_v14 = vpop.f32.mrf.mxu0 }
 0x2e8   : > { %v1502_v34 = vpack.c.bf16 %v1497_v27, %v1496_v24  ;;  %v1498_v36 = vmax.f32 %v1490_v15, 0.0  ;;  %1150 = vmatpush1.bf16.msra.mxu0 %v5799_v7  ;;  %v6947_v7 = vld [vmem:[#allocation6 + $0x38] sm:$0xff]  }
 0x2e9   : > { %v1491_v35 = vadd.f32 %v5046_v28, %v1477_v58  ;;  %v1036_v28 = vadd.f32 %v1035_v14, %v689_v29  ;;  %v1037_v42 = vpop.f32.mrf.mxu0  ;;  %1151 = vmatprep.subr.bf16.mxu0 %v6296_v2  ;;  %v5803_v58 = vld [vmem:[%s8563_s19 + $0x10] ss:$20 sps:$4 sm:$0xff]  }
 0x2ea   : > { %5358 = vmatprep.mubr.bf16.mxu1 %v1502_v34  ;;  %v6856_v23 = vadd.f32 %v1037_v42, %v693_v17  ;;  %v6077_v42 = vld [vmem:[%s6546_s30] ss:$8 sps:$4 sm:$0xff]  }
 0x2eb   : > { %v1499_v39 = vmax.f32 %v1491_v35, 0.0  ;;  %1209 = vst [vmem:[%s6803_s22 + $0x8] sm:$0xff] %v1036_v28  ;;  %v1041_v32 = vpop.f32.mrf.mxu0  ;;  %v5804_v35 = vld [vmem:[%s8563_s19 + $0x150] ss:$0 sps:$4 sm:$0x11]  }
 0x2ec   : > { %v1042_v9 = vadd.f32 %v1041_v32, %v689_v29  ;;  %1152 = vmatpush1.bf16.msra.mxu0 %v5800_v8  ;;  %v995_v63 = vsel %vm981_vm1, %v5804_v35, 0 }
 0x2ed   : > { %v1503_v50 = vpack.c.bf16 %v1499_v39, %v1498_v36  ;;  %v1043_v49 = vpop.f32.mrf.mxu0  ;;  %1153 = vmatprep.subr.bf16.mxu0 %v6296_v2 }
 0x2ee   : > { %1210 = vst [vmem:[%s6803_s22 + $0x10] sm:$0xff] %v1042_v9  ;;  %v6840_v18 = vadd.f32 %v1043_v49, %v693_v17  ;;  %v5805_v9 = vld [vmem:[%s8481_s9 + $0x38] sm:$0xff]  }
 0x2ef   : > { %5359 = vmatmul.mubr.bf16.gmra.mxu1 %v1503_v50  ;;  %v1045_v51 = vpop.f32.mrf.mxu0  ;;  %v6078_v49 = vld [vmem:[%s6546_s30 + $0x14] ss:$8 sps:$4 sm:$0xff]  }
 0x2f0   : > { %v1046_v52 = vadd.f32 %v1045_v51, %v689_v29  ;;  %1154 = vmatpush1.bf16.msra.mxu0 %v5801_v12 }
 0x2f1   : > { %v1047_v53 = vpop.f32.mrf.mxu0  ;;  %1155 = vmatprep.subr.bf16.mxu0 %v6296_v2 }
 0x2f2   : > { %1211 = vst [vmem:[%s6803_s22 + $0x18] sm:$0xff] %v1046_v52  ;;  %v6847_v22 = vadd.f32 %v1047_v53, %v693_v17 }
 0x2f3   : > { %v1051_v54 = vpop.f32.mrf.mxu0 }
 0x2f4   : > { %v1052_v55 = vadd.f32 %v1051_v54, %v689_v29  ;;  %1156 = vmatpush1.bf16.msra.mxu0 %v5802_v13  ;;  %v5806_v54 = vld [vmem:[%s8481_s9 + $0x30] sm:$0xff]  }
 0x2f5   : > { %v6809_v56 = vpop.f32.mrf.mxu0  ;;  %1157 = vmatprep.subr.bf16.mxu0 %v6296_v2 }
 0x2f6   : > { %1212 = vst [vmem:[%s6803_s22 + $0x20] sm:$0xff] %v1052_v55  ;;  %v6885_v41 = vadd.f32 %v6809_v56, %v693_v17 }
 0x2f7   : > { %v1055_v46 = vpop.f32.mrf.mxu0 }
 0x2f8   : > { %v1056_v43 = vadd.f32 %v1055_v46, %v689_v29  ;;  %1158 = vmatpush1.bf16.msra.mxu0 %v5803_v58  ;;  %v6079_v46 = vld [vmem:[%s6546_s30 + $0x10] ss:$8 sps:$4 sm:$0xff]  }
 0x2f9   : > { %v6812_v48 = vpop.f32.mrf.mxu0  ;;  %1173 = vmatprep.subr.bf16.mxu0 %v6296_v2  ;;  %v6083_v2 = vld [vmem:[%s6546_s30 + $0x30] ss:$8 sps:$4 sm:$0xff]  }
 0x2fa   : > { %1213 = vst [vmem:[%s6803_s22 + $0x28] sm:$0xff] %v1056_v43  ;;  %v6903_v51 = vadd.f32 %v6812_v48, %v693_v17  ;;  %v5807_v43 = vld [vmem:[%s8481_s9 + $0x28] sm:$0xff]  }
 0x2fb   : > { %v1061_v37 = vpop.f32.mrf.mxu0  ;;  %v6080_v48 = vld [vmem:[%s6546_s30 + $0x24] ss:$8 sps:$4 sm:$0xff]  }
 0x2fc   : > { %v1062_v57 = vadd.f32 %v1061_v37, %v689_v29  ;;  %1174 = vmatpush2.bf16.msra.mxu0 %v995_v63 }
 0x2fd   : > { %v1063_v60 = vpop.f32.mrf.mxu0  ;;  %5362 = vmatprep.subr.bf16.mxu0 %v5805_v9 }
 0x2fe   : > { %1214 = vst [vmem:[%s6803_s22 + $0x30] sm:$0xff] %v1062_v57  ;;  %v6875_v34 = vadd.f32 %v1063_v60, %v693_v17  ;;  %v5808_v57 = vld [vmem:[%s8481_s9 + $0x20] sm:$0xff]  }
 0x2ff   : > { %v1065_v62 = vpop.f32.mrf.mxu0  ;;  %1176 = vmatmul.mubr.bf16.vlgmr.msra.gmra.mxu0 %v6077_v42  ;;  %v6081_v60 = vld [vmem:[%s6546_s30 + $0x20] ss:$8 sps:$4 sm:$0xff]  }
 0x300   : > { %v1066_v0 = vadd.f32 %v1065_v62, %v689_v29  ;;  %5034 = vmatprep.mubr.msk.bf16.mxu0 %vm968_vm0, %v6078_v49  ;;  %5363 = vmatpush3.bf16.msra.mxu0 %v5805_v9  ;;  %v5809_v62 = vld [vmem:[%s8481_s9 + $0x18] sm:$0xff]  }
 0x301   : > { %v1067_v36 = vpop.f32.mrf.mxu0  ;;  %5364 = vmatprep.subr.bf16.mxu0 %v5806_v54 }
 0x302   : > { %1215 = vst [vmem:[%s6803_s22 + $0x38] sm:$0xff] %v1066_v0  ;;  %v6887_v30 = vadd.f32 %v1067_v36, %v693_v17  ;;  %v6082_v0 = vld [vmem:[%s6546_s30 + $0x34] ss:$8 sps:$4 sm:$0xff]   ;;  %s8424_s30 = scalar_lea.hbm %s8618_s25, %s5169_s21 }
 0x304   : > { %5365 = vmatpush3.bf16.msra.mxu0 %v5806_v54 }
 0x305   : > { %5366 = vmatprep.subr.bf16.mxu0 %v5807_v43 }
 0x307   : > { %1184 = vmatmul.mubr.bf16.gmra.mxu0 %v6079_v46 }
 0x308   : > { %5035 = vmatprep.mubr.msk.bf16.mxu0 %vm968_vm0, %v6080_v48  ;;  %5367 = vmatpush3.bf16.msra.mxu0 %v5807_v43 }
 0x309   : > { %5368 = vmatprep.subr.bf16.mxu0 %v5808_v57 }
 0x30c   : > { %5369 = vmatpush3.bf16.msra.mxu0 %v5808_v57 }
 0x30d   : > { %5370 = vmatprep.subr.bf16.mxu0 %v5809_v62 }
 0x30f   : > { %1192 = vmatmul.mubr.bf16.gmra.mxu0 %v6081_v60 }
 0x310   : > { %5036 = vmatprep.mubr.msk.bf16.mxu0 %vm968_vm0, %v6082_v0  ;;  %5371 = vmatpush3.bf16.msra.mxu0 %v5809_v62 }
 0x311   : > { %5372 = vmatprep.subr.bf16.mxu0 %v5810_v1 }
 0x314   : > { %5373 = vmatpush3.bf16.msra.mxu0 %v5810_v1 }
 0x315   : > { %5374 = vmatprep.subr.bf16.mxu0 %v5811_v4 }
 0x317   : > { %1200 = vmatmul.mubr.bf16.gmra.mxu0 %v6083_v2 }
 0x318   : > { %5375 = vmatpush3.bf16.msra.mxu0 %v5811_v4 }
 0x319   : > { %5376 = vmatprep.subr.bf16.mxu0 %v5812_v5 }
 0x31c   : > { %5377 = vmatpush3.bf16.msra.mxu0 %v5812_v5 }
 0x31d   : > { %5410 = vmatprep.subr.bf16.mxu0 %v6947_v7 }
 0x39c   : > { %v5356_v19 = vpop.f32.mrf.mxu1 }
 0x39d   : > { %v6843_v47 = vadd.f32 %v5356_v19, %v6840_v18 }
 0x39e   : > { %v1602_v20 = vpop.f32.mrf.mxu1 }
 0x39f   : > { %1639 = vadd.xlane.f32.xlu0 %v6843_v47  ;;  %v6851_v61 = vadd.f32 %v1602_v20, %v6845_v21  ;;  %v1661_v27 = vmul.f32 %v6843_v47, %v6843_v47 }
 0x3a0   : > { %v5357_v33 = vpop.f32.mrf.mxu1 }
 0x3a1   : > { %v6854_v6 = vadd.f32 %v5357_v33, %v6847_v22  ;;  %v1659_v11 = vmul.f32 %v6851_v61, %v6851_v61 }
 0x3a2   : > { %v1605_v40 = vpop.f32.mrf.mxu1 }
 0x3a3   : > { %1641 = vadd.xlane.f32.xlu1 %v6854_v6  ;;  %1635 = vadd.xlane.f32.xlu0 %v6851_v61  ;;  %v6861_v3 = vadd.f32 %v1605_v40, %v6856_v23  ;;  %v1662_v15 = vmul.f32 %v6854_v6, %v6854_v6 }
 0x3a5   : > { %v1660_v24 = vmul.f32 %v6861_v3, %v6861_v3 }
 0x3a7   : > { %1637 = vadd.xlane.f32.xlu1 %v6861_v3  ;;  %1667 = vadd.xlane.f32.xlu0 %v1659_v11 }
 0x3ab   : > { %1669 = vadd.xlane.f32.xlu1 %v1660_v24  ;;  %1671 = vadd.xlane.f32.xlu0 %v1661_v27 }
 0x3af   : > { %v5360_v39 = vpop.f32.mrf.mxu1  ;;  %1673 = vadd.xlane.f32.xlu1 %v1662_v15 }
 0x3b0   : > { %v6881_v50 = vadd.f32 %v5360_v39, %v6875_v34 }
 0x3b1   : > { %v1618_v29 = vpop.f32.mrf.mxu1 }
 0x3b2   : > { %1647 = vadd.xlane.f32.xlu0 %v6881_v50  ;;  %v6891_v14 = vadd.f32 %v1618_v29, %v6885_v41  ;;  %v1665_v56 = vmul.f32 %v6881_v50, %v6881_v50 }
 0x3b3   : > { %v5361_v31 = vpop.f32.mrf.mxu1 }
 0x3b4   : > { %v6894_v28 = vadd.f32 %v5361_v31, %v6887_v30  ;;  %v1663_v53 = vmul.f32 %v6891_v14, %v6891_v14 }
 0x3b5   : > { %v1621_v32 = vpop.f32.mrf.mxu1 }
 0x3b6   : > { %1649 = vadd.xlane.f32.xlu1 %v6894_v28  ;;  %1643 = vadd.xlane.f32.xlu0 %v6891_v14  ;;  %v6908_v52 = vadd.f32 %v1621_v32, %v6903_v51  ;;  %v1666_v37 = vmul.f32 %v6894_v28, %v6894_v28 }
 0x3b8   : > { %v1664_v55 = vmul.f32 %v6908_v52, %v6908_v52 }
 0x3ba   : > { %1645 = vadd.xlane.f32.xlu1 %v6908_v52  ;;  %1675 = vadd.xlane.f32.xlu0 %v1663_v53 }
 0x3be   : > { %1677 = vadd.xlane.f32.xlu1 %v1664_v55  ;;  %1679 = vadd.xlane.f32.xlu0 %v1665_v56 }
 0x3c2   : > { %1681 = vadd.xlane.f32.xlu1 %v1666_v37 }
 0x428   : > { %v1640_v8 = vpop.xlane.xlu0 %1639 }
 0x429   : > { %v6950_v17 = vmul.f32 0.0078125, %v1640_v8  ;;  %v6970_v8 = vld [vmem:[%s8479_s7] ss:$0 sm:$0xff] }
 0x42b   : > { %v1693_v27 = vmul.f32 %v6950_v17, %v6950_v17 }
 0x42c   : > { %v1642_v12 = vpop.xlane.xlu1 %1641  ;;  %v1636_v13 = vpop.xlane.xlu0 %1635 }
 0x42d   : > { %v1651_v16 = vmul.f32 0.0078125, %v1636_v13  ;;  %v6954_v58 = vmul.f32 0.0078125, %v1642_v12 }
 0x42f   : > { %v1691_v33 = vmul.f32 %v1651_v16, %v1651_v16  ;;  %v1694_v9 = vmul.f32 %v6954_v58, %v6954_v58  ;;  %v1707_v57 = vsub.f32 %v6851_v61, %v1651_v16  ;;  %v1709_v61 = vsub.f32 %v6843_v47, %v6950_v17  ;;  %v6977_v16 = vld [vmem:[%s8480_s8] ss:$0 sm:$0xff] }
 0x430   : > { %v1638_v19 = vpop.xlane.xlu1 %1637  ;;  %v1668_v20 = vpop.xlane.xlu0 %1667 }
 0x431   : > { %v1652_v40 = vmul.f32 0.0078125, %v1638_v19  ;;  %v1683_v11 = vmul.f32 0.0078125, %v1668_v20 }
 0x433   : > { %v1699_v24 = vsub.f32 %v1683_v11, %v1691_v33  ;;  %v1692_v36 = vmul.f32 %v1652_v40, %v1652_v40  ;;  %v1708_v19 = vsub.f32 %v6861_v3, %v1652_v40 }
 0x434   : > { %v1670_v15 = vpop.xlane.xlu1 %1669  ;;  %v1672_v35 = vpop.xlane.xlu0 %1671 }
 0x435   : > { %v1715_v39 = vadd.f32 1e-05, %v1699_v24  ;;  %v1684_v63 = vmul.f32 0.0078125, %v1670_v15  ;;  %v1685_v29 = vmul.f32 0.0078125, %v1672_v35 }
 0x437   : > { %5901 = vrsqrt.f32 %v1715_v39  ;;  %v1700_v31 = vsub.f32 %v1684_v63, %v1692_v36  ;;  %v1701_v42 = vsub.f32 %v1685_v29, %v1693_v27 }
 0x438   : > { %v1674_v32 = vpop.xlane.xlu1 %1673 }
 0x439   : > { %v1716_v49 = vadd.f32 1e-05, %v1700_v31  ;;  %v1717_v53 = vadd.f32 1e-05, %v1701_v42  ;;  %v1686_v54 = vmul.f32 0.0078125, %v1674_v32  ;;  %v1710_v42 = vsub.f32 %v6854_v6, %v6954_v58 }
 0x43b   : > { %5903 = vrsqrt.f32 %v1716_v49  ;;  %v1702_v55 = vsub.f32 %v1686_v54, %v1694_v9  ;;  %v1648_v56 = vpop.xlane.xlu0 %1647 }
 0x43c   : > { %5905 = vrsqrt.f32 %v1717_v53  ;;  %v6961_v60 = vmul.f32 0.0078125, %v1648_v56 }
 0x43d   : > { %v1718_v46 = vadd.f32 1e-05, %v1702_v55 }
 0x43e   : > { %v1697_v20 = vmul.f32 %v6961_v60, %v6961_v60 }
 0x43f   : > { %5907 = vrsqrt.f32 %v1718_v46  ;;  %v1650_v43 = vpop.xlane.xlu1 %1649  ;;  %v1644_v48 = vpop.xlane.xlu0 %1643 }
 0x440   : > { %v6958_v37 = vmul.f32 0.0078125, %v1644_v48  ;;  %v6982_v33 = vmul.f32 0.0078125, %v1650_v43 }
 0x442   : > { %v1695_v2 = vmul.f32 %v6958_v37, %v6958_v37  ;;  %v1698_v32 = vmul.f32 %v6982_v33, %v6982_v33 }
 0x443   : > { %v1646_v62 = vpop.xlane.xlu1 %1645  ;;  %v1676_v0 = vpop.xlane.xlu0 %1675 }
 0x444   : > { %v5902_v1 = vpop.eup %5901  ;;  %v6965_v4 = vmul.f32 0.0078125, %v1646_v62  ;;  %v1687_v5 = vmul.f32 0.0078125, %v1676_v0 }
 0x445   : > { %v1731_v12 = vmul.f32 %v5902_v1, %v1707_v57 }
 0x446   : > { %v1703_v13 = vsub.f32 %v1687_v5, %v1695_v2  ;;  %v1696_v47 = vmul.f32 %v6965_v4, %v6965_v4 }
 0x447   : > { %v1678_v11 = vpop.xlane.xlu1 %1677  ;;  %v1680_v24 = vpop.xlane.xlu0 %1679  ;;  %v1745_v27 = vmul.f32 %v6970_v8, %v1731_v12 }
 0x448   : > { %v5904_v15 = vpop.eup %5903  ;;  %v1719_v17 = vadd.f32 1e-05, %v1703_v13  ;;  %v1688_v35 = vmul.f32 0.0078125, %v1678_v11  ;;  %v1689_v36 = vmul.f32 0.0078125, %v1680_v24 }
 0x449   : > { %v5906_v39 = vpop.eup %5905  ;;  %v1732_v63 = vmul.f32 %v5904_v15, %v1708_v19  ;;  %v6988_v3 = vadd.f32 %v6977_v16, %v1745_v27  ;;  %v5814_v19 = vld [vmem:[#allocation6 + $0x30] sm:$0xff]   ;;  %v5815_v27 = vld [vmem:[#allocation6 + $0x28] sm:$0xff]   ;;  %v1712_v15 = vsub.f32 %v6908_v52, %v6965_v4 }
 0x44a   : > { %5909 = vrsqrt.f32 %v1719_v17  ;;  %v1704_v40 = vsub.f32 %v1688_v35, %v1696_v47  ;;  %v1705_v29 = vsub.f32 %v1689_v36, %v1697_v20  ;;  %v1733_v31 = vmul.f32 %v5906_v39, %v1709_v61 }
 0x44b   : > { %8565 = vst [vmem:[#allocation23_spill] sm:$0xff] %v6988_v3  ;;  %v1682_v9 = vpop.xlane.xlu1 %1681  ;;  %v1746_v49 = vmul.f32 %v6970_v8, %v1732_v63  ;;  %v8507_v6 = vmax.f32 %v6988_v3, 0.0  ;;  %v1711_v20 = vsub.f32 %v6891_v14, %v6958_v37  ;;  %v1713_v35 = vsub.f32 %v6881_v50, %v6961_v60  ;;  %v5816_v14 = vld [vmem:[#allocation6 + $0x20] sm:$0xff]  }
 0x44c   : > { %v5908_v53 = vpop.eup %5907  ;;  %v1720_v54 = vadd.f32 1e-05, %v1704_v40  ;;  %v1721_v55 = vadd.f32 1e-05, %v1705_v29  ;;  %v1690_v56 = vmul.f32 0.0078125, %v1682_v9  ;;  %v1747_v46 = vmul.f32 %v6970_v8, %v1733_v31  ;;  %v5817_v29 = vld [vmem:[#allocation6 + $0x18] sm:$0xff]  }
 0x44d   : > { %v6997_v43 = vadd.f32 %v6977_v16, %v1746_v49  ;;  %v1734_v48 = vmul.f32 %v5908_v53, %v1710_v42  ;;  %v5818_v49 = vld [vmem:[#allocation6 + $0x10] sm:$0xff]  }
 0x44e   : > { %5911 = vrsqrt.f32 %v1720_v54  ;;  %v1706_v57 = vsub.f32 %v1690_v56, %v1698_v32  ;;  %v7003_v0 = vadd.f32 %v6977_v16, %v1747_v46  ;;  %v704_v56 = vsub.s32 4, %v6618_v38  ;;  %v6084_v46 = vld [vmem:[#allocation3] sm:$0x1f] }
 0x44f   : > { %5913 = vrsqrt.f32 %v1721_v55  ;;  %v8509_v58 = vmax.f32 %v6997_v43, 0.0  ;;  %v1748_v62 = vmul.f32 %v6970_v8, %v1734_v48  ;;  %v5819_v55 = vld [vmem:[#allocation6 + $0x8] sm:$0xff]  }
 0x450   : > { %8566 = vst [vmem:[#allocation24_spill] sm:$0xff] %v7003_v0  ;;  %v1722_v1 = vadd.f32 1e-05, %v1706_v57  ;;  %v8505_v12 = vmax.f32 %v7003_v0, 0.0  ;;  %v705_v48 = vrot.slane %v6084_v46, %v704_v56  ;;  %v1177_v57 = vpop.f32.mrf.mxu0 }
 0x451   : > { %v1775_v2 = vpack.c.bf16 %v8509_v58, %v8507_v6  ;;  %v7010_v5 = vadd.f32 %v6977_v16, %v1748_v62  ;;  %v1141_v62 = vadd.f32 %v6654_v45, %v6626_v44 }
 0x452   : > { %5915 = vrsqrt.f32 %v1722_v1  ;;  %v1178_v1 = vadd.f32 %v1177_v57, %v705_v48 }
 0x453   : > { %8567 = vst [vmem:[#allocation25_spill] sm:$0xff] %v7010_v5  ;;  %5378 = vmatprep.mubr.bf16.mxu0 %v1775_v2  ;;  %v8508_v61 = vmax.f32 %v7010_v5, 0.0  ;;  %v1179_v2 = vpop.f32.mrf.mxu0  ;;  %v2427_v38 = vmax.f32 %v1141_v62, 0.0 }
 0x455   : > { %v1776_v13 = vpack.c.bf16 %v8508_v61, %v8505_v12 }
 0x457   : > { %v5910_v11 = vpop.eup %5909  ;;  %5379 = vmatmul.mubr.bf16.vlgmr.msra.gmra.mxu0 %v1776_v13  ;;  %v1137_v13 = vadd.f32 %v6638_v25, %v6626_v44 }
 0x458   : > { %5411 = vmatpush3.bf16.msra.mxu0 %v6947_v7  ;;  %v1735_v24 = vmul.f32 %v5910_v11, %v1711_v20  ;;  %v1714_v7 = vsub.f32 %v6894_v28, %v6982_v33 }
 0x459   : > { %5412 = vmatprep.subr.bf16.mxu0 %v5814_v19 }
 0x45a   : > { %v1749_v47 = vmul.f32 %v6970_v8, %v1735_v24  ;;  %v2426_v24 = vmax.f32 %v1137_v13, 0.0 }
 0x45b   : > { %v5912_v17 = vpop.eup %5911 }
 0x45c   : > { %v5914_v36 = vpop.eup %5913  ;;  %5413 = vmatpush3.bf16.msra.mxu0 %v5814_v19  ;;  %v1736_v39 = vmul.f32 %v5912_v17, %v1712_v15  ;;  %v7030_v40 = vadd.f32 %v6977_v16, %v1749_v47  ;;  %v3623_v19 = vmax.f32 %v1178_v1, 0.0  ;;  %v2431_v47 = vpack.c.bf16 %v2427_v38, %v2426_v24 }
 0x45d   : > { %5414 = vmatprep.subr.bf16.mxu0 %v5815_v27  ;;  %v1737_v37 = vmul.f32 %v5914_v36, %v1713_v35 }
 0x45e   : > { %v1750_v63 = vmul.f32 %v6970_v8, %v1736_v39  ;;  %8568 = vst [vmem:[#allocation26_spill] sm:$0xff] %v7030_v40  ;;  %v8503_v31 = vmax.f32 %v7030_v40, 0.0 }
 0x45f   : > { %v5916_v52 = vpop.eup %5915  ;;  %v1751_v4 = vmul.f32 %v6970_v8, %v1737_v37 }
 0x460   : > { %5415 = vmatpush3.bf16.msra.mxu0 %v5815_v27  ;;  %v7034_v50 = vadd.f32 %v6977_v16, %v1750_v63  ;;  %v1738_v60 = vmul.f32 %v5916_v52, %v1714_v7 }
 0x461   : > { %5416 = vmatprep.subr.bf16.mxu0 %v5816_v14  ;;  %v7040_v33 = vadd.f32 %v6977_v16, %v1751_v4 }
 0x462   : > { %8569 = vst [vmem:[#allocation27_spill] sm:$0xff] %v7034_v50  ;;  %v8506_v42 = vmax.f32 %v7034_v50, 0.0  ;;  %v1752_v28 = vmul.f32 %v6970_v8, %v1738_v60  ;;  %v5862_v50 = vld [vmem:[#allocation8 + $0x30] sm:$0xff]  }
 0x463   : > { %8570 = vst [vmem:[#allocation28_spill] sm:$0xff] %v7040_v33  ;;  %v8502_v53 = vmax.f32 %v7040_v33, 0.0 }
 0x464   : > { %5417 = vmatpush3.bf16.msra.mxu0 %v5816_v14  ;;  %v1777_v32 = vpack.c.bf16 %v8506_v42, %v8503_v31  ;;  %v7047_v9 = vadd.f32 %v6977_v16, %v1752_v28  ;;  %v5820_v16 = vld [vmem:[#allocation6] sm:$0xff]  }
 0x465   : > { %5418 = vmatprep.subr.bf16.mxu0 %v5817_v29 }
 0x466   : > { %8571 = vst [vmem:[#allocation29_spill] sm:$0xff] %v7047_v9  ;;  %5382 = vmatprep.mubr.bf16.mxu0 %v1777_v32  ;;  %v8504_v54 = vmax.f32 %v7047_v9, 0.0  ;;  %v7594_v9 = vld [vmem:[#allocation9] ss:$0 sm:$0xff] }
 0x468   : > { %5419 = vmatpush3.bf16.msra.mxu0 %v5817_v29  ;;  %v1778_v8 = vpack.c.bf16 %v8504_v54, %v8502_v53 }
 0x469   : > { %5420 = vmatprep.subr.bf16.mxu0 %v5818_v49 }
 0x46a   : > { %5383 = vmatmul.mubr.bf16.gmra.mxu0 %v1778_v8 }
 0x46b   : > { %5426 = vmatprep.mubr.bf16.mxu0 %v6630_v59  ;;  %v1180_v59 = vpop.f32.mrf.mxu0 }
 0x46c   : > { %5421 = vmatpush3.bf16.msra.mxu0 %v5818_v49  ;;  %v1181_v20 = vadd.f32 %v1180_v59, %v705_v48 }
 0x46d   : > { %5422 = vmatprep.subr.bf16.mxu0 %v5819_v55  ;;  %v1182_v11 = vpop.f32.mrf.mxu0 }
 0x46e   : > { %v3624_v27 = vmax.f32 %v1181_v20, 0.0 }
 0x46f   : > { %v1185_v15 = vpop.f32.mrf.mxu0 }
 0x470   : > { %5423 = vmatpush3.bf16.msra.mxu0 %v5819_v55  ;;  %v7063_v17 = vpack.c.bf16 %v3624_v27, %v3623_v19  ;;  %v1186_v45 = vadd.f32 %v1185_v15, %v705_v48 }
 0x471   : > { %5424 = vmatprep.subr.bf16.mxu0 %v5820_v16  ;;  %v1187_v35 = vpop.f32.mrf.mxu0 }
 0x472   : > { %v3625_v44 = vmax.f32 %v1186_v45, 0.0 }
 0x473   : > { %v1188_v36 = vpop.f32.mrf.mxu0 }
 0x474   : > { %5425 = vmatpush3.bf16.msra.mxu0 %v5820_v16  ;;  %v1189_v25 = vadd.f32 %v1188_v36, %v705_v48 }
 0x476   : > { %v3626_v39 = vmax.f32 %v1189_v25, 0.0 }
 0x477   : > { %5427 = vmatmul.mubr.bf16.vlgmr.msra.gmra.mxu0 %v6634_v10  ;;  %v1190_v10 = vpop.f32.mrf.mxu0 }
 0x478   : > { %5430 = vmatprep.mubr.bf16.mxu0 %v6640_v26  ;;  %v7065_v14 = vpack.c.bf16 %v3626_v39, %v3625_v44  ;;  %v5822_v44 = vld [vmem:[#allocation11 + $0x30] sm:$0xff]   ;;  %v5823_v39 = vld [vmem:[#allocation11 + $0x28] sm:$0xff]  }
 0x479   : > { %v1193_v26 = vpop.f32.mrf.mxu0 }
 0x47a   : > { %v1194_v37 = vadd.f32 %v1193_v26, %v705_v48 }
 0x47b   : > { %v1195_v7 = vpop.f32.mrf.mxu0 }
 0x47c   : > { %v3627_v52 = vmax.f32 %v1194_v37, 0.0  ;;  %v5824_v37 = vld [vmem:[#allocation11 + $0x20] sm:$0xff]  }
 0x47d   : > { %v1196_v63 = vpop.f32.mrf.mxu0 }
 0x47e   : > { %v1197_v4 = vadd.f32 %v1196_v63, %v705_v48 }
 0x47f   : > { %5431 = vmatmul.mubr.bf16.gmra.mxu0 %v2431_v47  ;;  %v1198_v60 = vpop.f32.mrf.mxu0  ;;  %v5821_v47 = vld [vmem:[#allocation11 + $0x38] sm:$0xff]  }
 0x480   : > { %v3628_v29 = vmax.f32 %v1197_v4, 0.0  ;;  %5386 = vmatprep.subr.bf16.mxu1 %v5821_v47 }
 0x481   : > { %v1201_v28 = vpop.f32.mrf.mxu0  ;;  %5387 = vmatpush3.bf16.msra.mxu1 %v5821_v47 }
 0x482   : > { %v7067_v32 = vpack.c.bf16 %v3628_v29, %v3627_v52  ;;  %v1202_v49 = vadd.f32 %v1201_v28, %v705_v48  ;;  %5388 = vmatprep.subr.bf16.mxu1 %v5822_v44  ;;  %v5825_v52 = vld [vmem:[#allocation11 + $0x18] sm:$0xff]   ;;  %v5826_v28 = vld [vmem:[#allocation11 + $0x10] sm:$0xff]  }
 0x483   : > { %v1203_v8 = vpop.f32.mrf.mxu0 }
 0x484   : > { %v3629_v16 = vmax.f32 %v1202_v49, 0.0 }
 0x485   : > { %v1204_v55 = vpop.f32.mrf.mxu0  ;;  %5389 = vmatpush3.bf16.msra.mxu1 %v5822_v44 }
 0x486   : > { %v1205_v56 = vadd.f32 %v1204_v55, %v705_v48  ;;  %5390 = vmatprep.subr.bf16.mxu1 %v5823_v39  ;;  %v5827_v55 = vld [vmem:[#allocation11 + $0x8] sm:$0xff]  }
 0x487   : > { %v1206_v46 = vpop.f32.mrf.mxu0 }
 0x488   : > { %v3630_v57 = vmax.f32 %v1205_v56, 0.0  ;;  %v5828_v56 = vld [vmem:[#allocation11] sm:$0xff]  }
 0x489   : > { %5391 = vmatpush3.bf16.msra.mxu1 %v5823_v39 }
 0x48a   : > { %v7069_v62 = vpack.c.bf16 %v3630_v57, %v3629_v16  ;;  %5392 = vmatprep.subr.bf16.mxu1 %v5824_v37 }
 0x48d   : > { %5393 = vmatpush3.bf16.msra.mxu1 %v5824_v37 }
 0x48e   : > { %5394 = vmatprep.subr.bf16.mxu1 %v5825_v52 }
 0x491   : > { %5395 = vmatpush3.bf16.msra.mxu1 %v5825_v52 }
 0x492   : > { %5396 = vmatprep.subr.bf16.mxu1 %v5826_v28 }
 0x495   : > { %5397 = vmatpush3.bf16.msra.mxu1 %v5826_v28 }
 0x496   : > { %5398 = vmatprep.subr.bf16.mxu1 %v5827_v55 }
 0x499   : > { %5399 = vmatpush3.bf16.msra.mxu1 %v5827_v55 }
 0x49a   : > { %5400 = vmatprep.subr.bf16.mxu1 %v5828_v56 }
 0x49d   : > { %5401 = vmatpush3.bf16.msra.mxu1 %v5828_v56 }
 0x517   : > { %v7071_v1 = vpop.f32.mrf.mxu0 }
 0x518   : > { %1914 = vadd.xlane.f32.xlu0 %v7071_v1  ;;  %v1936_v59 = vmul.f32 %v7071_v1, %v7071_v1 }
 0x519   : > { %v7074_v2 = vpop.f32.mrf.mxu0 }
 0x51a   : > { %v1934_v38 = vmul.f32 %v7074_v2, %v7074_v2 }
 0x51b   : > { %v7076_v13 = vpop.f32.mrf.mxu0 }
 0x51c   : > { %1910 = vadd.xlane.f32.xlu0 %v7074_v2  ;;  %1916 = vadd.xlane.f32.xlu1 %v7076_v13  ;;  %v1937_v19 = vmul.f32 %v7076_v13, %v7076_v13 }
 0x51d   : > { %v7082_v48 = vpop.f32.mrf.mxu0 }
 0x51e   : > { %v1935_v20 = vmul.f32 %v7082_v48, %v7082_v48 }
 0x520   : > { %1946 = vadd.xlane.f32.xlu0 %v1936_v59  ;;  %1912 = vadd.xlane.f32.xlu1 %v7082_v48 }
 0x524   : > { %1942 = vadd.xlane.f32.xlu0 %v1934_v38  ;;  %1948 = vadd.xlane.f32.xlu1 %v1937_v19  ;;  %v7144_v38 = vld [vmem:[#allocation8 + $0x38] sm:$0xff]  }
 0x525   : > { %5434 = vmatprep.subr.bf16.mxu1 %v7144_v38 }
 0x528   : > { %1944 = vadd.xlane.f32.xlu1 %v1935_v20 }
 0x52a   : > { %v7091_v11 = vpop.f32.mrf.mxu0 }
 0x52b   : > { %1922 = vadd.xlane.f32.xlu0 %v7091_v11  ;;  %v1940_v15 = vmul.f32 %v7091_v11, %v7091_v11 }
 0x52c   : > { %v7094_v24 = vpop.f32.mrf.mxu0 }
 0x52d   : > { %v1938_v35 = vmul.f32 %v7094_v24, %v7094_v24 }
 0x52e   : > { %v7096_v27 = vpop.f32.mrf.mxu0 }
 0x52f   : > { %1918 = vadd.xlane.f32.xlu0 %v7094_v24  ;;  %1924 = vadd.xlane.f32.xlu1 %v7096_v27  ;;  %v1941_v36 = vmul.f32 %v7096_v27, %v7096_v27 }
 0x530   : > { %v7102_v45 = vpop.f32.mrf.mxu0 }
 0x531   : > { %v1939_v10 = vmul.f32 %v7102_v45, %v7102_v45 }
 0x533   : > { %1954 = vadd.xlane.f32.xlu0 %v1940_v15  ;;  %1920 = vadd.xlane.f32.xlu1 %v7102_v45 }
 0x537   : > { %1950 = vadd.xlane.f32.xlu0 %v1938_v35  ;;  %1956 = vadd.xlane.f32.xlu1 %v1941_v36  ;;  %v7109_v25 = vpop.f32.mrf.mxu0 }
 0x538   : > { %v2589_v60 = vmul.f32 %v7109_v25, %v7109_v25 }
 0x539   : > { %v7113_v26 = vpop.f32.mrf.mxu0 }
 0x53a   : > { %v2587_v63 = vmul.f32 %v7113_v26, %v7113_v26 }
 0x53b   : > { %2567 = vadd.xlane.f32.xlu0 %v7109_v25  ;;  %1952 = vadd.xlane.f32.xlu1 %v1939_v10  ;;  %v7116_v7 = vpop.f32.mrf.mxu0 }
 0x53c   : > { %v2590_v8 = vmul.f32 %v7116_v7, %v7116_v7 }
 0x53d   : > { %v7122_v4 = vpop.f32.mrf.mxu0 }
 0x53e   : > { %v2588_v29 = vmul.f32 %v7122_v4, %v7122_v4 }
 0x53f   : > { %2563 = vadd.xlane.f32.xlu0 %v7113_v26  ;;  %2569 = vadd.xlane.f32.xlu1 %v7116_v7  ;;  %v7129_v49 = vpop.f32.mrf.mxu0 }
 0x540   : > { %v2593_v19 = vmul.f32 %v7129_v49, %v7129_v49 }
 0x541   : > { %v7133_v16 = vpop.f32.mrf.mxu0 }
 0x542   : > { %v2591_v57 = vmul.f32 %v7133_v16, %v7133_v16 }
 0x543   : > { %2595 = vadd.xlane.f32.xlu0 %v2587_v63  ;;  %2565 = vadd.xlane.f32.xlu1 %v7122_v4  ;;  %v7136_v46 = vpop.f32.mrf.mxu0 }
 0x544   : > { %v2594_v15 = vmul.f32 %v7136_v46, %v7136_v46 }
 0x545   : > { %v7142_v59 = vpop.f32.mrf.mxu0 }
 0x546   : > { %v2592_v20 = vmul.f32 %v7142_v59, %v7142_v59 }
 0x547   : > { %2599 = vadd.xlane.f32.xlu0 %v2589_v60  ;;  %2597 = vadd.xlane.f32.xlu1 %v2588_v29 }
 0x54b   : > { %2575 = vadd.xlane.f32.xlu0 %v7129_v49  ;;  %2601 = vadd.xlane.f32.xlu1 %v2590_v8 }
 0x54f   : > { %2571 = vadd.xlane.f32.xlu0 %v7133_v16  ;;  %2577 = vadd.xlane.f32.xlu1 %v7136_v46 }
 0x553   : > { %2603 = vadd.xlane.f32.xlu0 %v2591_v57  ;;  %2573 = vadd.xlane.f32.xlu1 %v7142_v59 }
 0x557   : > { %2607 = vadd.xlane.f32.xlu0 %v2593_v19  ;;  %2605 = vadd.xlane.f32.xlu1 %v2592_v20 }
 0x55b   : > { %2609 = vadd.xlane.f32.xlu1 %v2594_v15 }
 0x5a1   : > { %v1915_v47 = vpop.xlane.xlu0 %1914 }
 0x5a2   : > { %v1928_v44 = vmul.f32 0.0078125, %v1915_v47 }
 0x5a4   : > { %v1968_v52 = vmul.f32 %v1928_v44, %v1928_v44 }
 0x5a5   : > { %v1917_v35 = vpop.xlane.xlu1 %1916  ;;  %v1911_v36 = vpop.xlane.xlu0 %1910 }
 0x5a6   : > { %v1929_v10 = vmul.f32 0.0078125, %v1917_v35  ;;  %v1926_v39 = vmul.f32 0.0078125, %v1911_v36 }
 0x5a8   : > { %v1969_v28 = vmul.f32 %v1929_v10, %v1929_v10  ;;  %v1966_v8 = vmul.f32 %v1926_v39, %v1926_v39 }
 0x5a9   : > { %v1913_v37 = vpop.xlane.xlu1 %1912  ;;  %v1947_v63 = vpop.xlane.xlu0 %1946 }
 0x5aa   : > { %v1960_v60 = vmul.f32 0.0078125, %v1947_v63  ;;  %v1927_v57 = vmul.f32 0.0078125, %v1913_v37 }
 0x5ac   : > { %v1976_v29 = vsub.f32 %v1960_v60, %v1968_v52  ;;  %v1967_v47 = vmul.f32 %v1927_v57, %v1927_v57 }
 0x5ad   : > { %v1949_v55 = vpop.xlane.xlu1 %1948  ;;  %v1943_v56 = vpop.xlane.xlu0 %1942 }
 0x5ae   : > { %v1992_v19 = vadd.f32 1e-05, %v1976_v29  ;;  %v1961_v20 = vmul.f32 0.0078125, %v1949_v55  ;;  %v1958_v53 = vmul.f32 0.0078125, %v1943_v56 }
 0x5b0   : > { %v1977_v15 = vsub.f32 %v1961_v20, %v1969_v28  ;;  %v1974_v31 = vsub.f32 %v1958_v53, %v1966_v8  ;;  %5917 = vrsqrt.f32 %v1992_v19  ;;  %v1982_v19 = vsub.f32 %v7074_v2, %v1926_v39 }
 0x5b1   : > { %v1945_v54 = vpop.xlane.xlu1 %1944 }
 0x5b2   : > { %v1993_v35 = vadd.f32 1e-05, %v1977_v15  ;;  %v1990_v36 = vadd.f32 1e-05, %v1974_v31  ;;  %v1959_v12 = vmul.f32 0.0078125, %v1945_v54 }
 0x5b4   : > { %5919 = vrsqrt.f32 %v1993_v35  ;;  %v1975_v42 = vsub.f32 %v1959_v12, %v1967_v47  ;;  %v1923_v63 = vpop.xlane.xlu0 %1922  ;;  %v1984_v12 = vsub.f32 %v7071_v1, %v1928_v44 }
 0x5b5   : > { %5921 = vrsqrt.f32 %v1990_v36  ;;  %v7154_v37 = vmul.f32 0.0078125, %v1923_v63 }
 0x5b6   : > { %v1991_v52 = vadd.f32 1e-05, %v1975_v42  ;;  %v1985_v42 = vsub.f32 %v7076_v13, %v1929_v10  ;;  %v7171_v13 = vld [vmem:[#allocation9] ss:$0 sm:$0xff] }
 0x5b7   : > { %v1972_v31 = vmul.f32 %v7154_v37, %v7154_v37 }
 0x5b8   : > { %5923 = vrsqrt.f32 %v1991_v52  ;;  %v1925_v60 = vpop.xlane.xlu1 %1924  ;;  %v1919_v6 = vpop.xlane.xlu0 %1918 }
 0x5b9   : > { %v7156_v29 = vmul.f32 0.0078125, %v1925_v60  ;;  %v7158_v28 = vmul.f32 0.0078125, %v1919_v6 }
 0x5bb   : > { %v1973_v20 = vmul.f32 %v7156_v29, %v7156_v29  ;;  %v1970_v6 = vmul.f32 %v7158_v28, %v7158_v28 }
 0x5bc   : > { %v1921_v53 = vpop.xlane.xlu1 %1920  ;;  %v1955_v8 = vpop.xlane.xlu0 %1954 }
 0x5bd   : > { %v1964_v54 = vmul.f32 0.0078125, %v1955_v8  ;;  %v5918_v55 = vpop.eup %5917  ;;  %v7169_v15 = vmul.f32 0.0078125, %v1921_v53 }
 0x5be   : > { %v2008_v1 = vmul.f32 %v5918_v55, %v1984_v12 }
 0x5bf   : > { %v1980_v56 = vsub.f32 %v1964_v54, %v1972_v31  ;;  %v1983_v31 = vsub.f32 %v7082_v48, %v1927_v57  ;;  %v1971_v53 = vmul.f32 %v7169_v15, %v7169_v15 }
 0x5c0   : > { %v1957_v47 = vpop.xlane.xlu1 %1956  ;;  %v1951_v35 = vpop.xlane.xlu0 %1950  ;;  %v2022_v58 = vmul.f32 %v7171_v13, %v2008_v1 }
 0x5c1   : > { %v5920_v36 = vpop.eup %5919  ;;  %v1996_v63 = vadd.f32 1e-05, %v1980_v56  ;;  %v1965_v52 = vmul.f32 0.0078125, %v1957_v47  ;;  %v1962_v60 = vmul.f32 0.0078125, %v1951_v35 }
 0x5c2   : > { %v5922_v44 = vpop.eup %5921  ;;  %v2009_v10 = vmul.f32 %v5920_v36, %v1985_v42  ;;  %v7181_v42 = vld [vmem:[%s8483_s11] ss:$0 sm:$0xff] }
 0x5c3   : > { %5925 = vrsqrt.f32 %v1996_v63  ;;  %v1981_v2 = vsub.f32 %v1965_v52, %v1973_v20  ;;  %v1978_v39 = vsub.f32 %v1962_v60, %v1970_v6  ;;  %v2006_v8 = vmul.f32 %v5922_v44, %v1982_v19 }
 0x5c4   : > { %v1953_v54 = vpop.xlane.xlu1 %1952  ;;  %v2568_v61 = vpop.xlane.xlu0 %2567  ;;  %v2023_v56 = vmul.f32 %v7171_v13, %v2009_v10  ;;  %v2036_v44 = vadd.f32 %v7181_v42, %v2022_v58 }
 0x5c5   : > { %v5924_v47 = vpop.eup %5923  ;;  %v1997_v35 = vadd.f32 1e-05, %v1981_v2  ;;  %v1994_v55 = vadd.f32 1e-05, %v1978_v39  ;;  %v1963_v12 = vmul.f32 0.0078125, %v1953_v54  ;;  %v2020_v48 = vmul.f32 %v7171_v13, %v2006_v8 }
 0x5c6   : > { %v2007_v19 = vmul.f32 %v5924_v47, %v1983_v31  ;;  %v2037_v20 = vadd.f32 %v7181_v42, %v2023_v56  ;;  %v7191_v39 = vmul.f32 0.0078125, %v2568_v61  ;;  %v1988_v61 = vsub.f32 %v7091_v11, %v7154_v37  ;;  %v5831_v37 = vld [vmem:[#allocation8 + $0x28] sm:$0xff]  }
 0x5c7   : > { %5927 = vrsqrt.f32 %v1997_v35  ;;  %v1979_v57 = vsub.f32 %v1963_v12, %v1971_v53  ;;  %v2034_v52 = vadd.f32 %v7181_v42, %v2020_v48  ;;  %v5830_v48 = vld [vmem:[#allocation8 + $0x30] sm:$0xff]  }
 0x5c8   : > { %5929 = vrsqrt.f32 %v1994_v55  ;;  %v2570_v6 = vpop.xlane.xlu1 %2569  ;;  %v2564_v36 = vpop.xlane.xlu0 %2563  ;;  %v2021_v63 = vmul.f32 %v7171_v13, %v2007_v19  ;;  %v2045_v2 = vmax.f32 %v2037_v20, 0.0  ;;  %v2044_v55 = vmax.f32 %v2036_v44, 0.0 }
 0x5c9   : > { %v1995_v60 = vadd.f32 1e-05, %v1979_v57  ;;  %v7187_v1 = vmul.f32 0.0078125, %v2564_v36  ;;  %v2042_v53 = vmax.f32 %v2034_v52, 0.0  ;;  %v2621_v20 = vmul.f32 %v7191_v39, %v7191_v39 }
 0x5ca   : > { %v2035_v10 = vadd.f32 %v7181_v42, %v2021_v63  ;;  %v2051_v58 = vpack.c.bf16 %v2045_v2, %v2044_v55  ;;  %v7201_v36 = vmul.f32 0.0078125, %v2570_v6 }
 0x5cb   : > { %5931 = vrsqrt.f32 %v1995_v60  ;;  %v2619_v56 = vmul.f32 %v7187_v1, %v7187_v1 }
 0x5cc   : > { %v2566_v8 = vpop.xlane.xlu1 %2565  ;;  %v2596_v31 = vpop.xlane.xlu0 %2595  ;;  %v2043_v54 = vmax.f32 %v2035_v10, 0.0 }
 0x5cd   : > { %v7195_v47 = vmul.f32 0.0078125, %v2566_v8  ;;  %v2611_v35 = vmul.f32 0.0078125, %v2596_v31 }
 0x5ce   : > { %v2050_v12 = vpack.c.bf16 %v2043_v54, %v2042_v53  ;;  %v1989_v53 = vsub.f32 %v7096_v27, %v7156_v29  ;;  %v1986_v54 = vsub.f32 %v7094_v24, %v7158_v28  ;;  %v5832_v29 = vld [vmem:[#allocation8 + $0x20] sm:$0xff]  }
 0x5cf   : > { %v2627_v19 = vsub.f32 %v2611_v35, %v2619_v56  ;;  %v2620_v60 = vmul.f32 %v7195_v47, %v7195_v47 }
 0x5d0   : > { %v5926_v57 = vpop.eup %5925  ;;  %v2598_v63 = vpop.xlane.xlu1 %2597  ;;  %5402 = vmatprep.mubr.bf16.mxu1 %v2050_v12  ;;  %v2622_v12 = vmul.f32 %v7201_v36, %v7201_v36 }
 0x5d1   : > { %v2600_v52 = vpop.xlane.xlu0 %2599  ;;  %v2643_v44 = vadd.f32 1e-05, %v2627_v19  ;;  %v2612_v10 = vmul.f32 0.0078125, %v2598_v63  ;;  %5403 = vmatmul.mubr.bf16.vlgmr.msra.gmra.mxu1 %v2051_v58  ;;  %v2012_v31 = vmul.f32 %v5926_v57, %v1988_v61  ;;  %v1987_v57 = vsub.f32 %v7102_v45, %v7169_v15 }
 0x5d2   : > { %v2613_v8 = vmul.f32 0.0078125, %v2600_v52  ;;  %5435 = vmatpush3.bf16.msra.mxu1 %v7144_v38 }
 0x5d3   : > { %5933 = vrsqrt.f32 %v2643_v44  ;;  %v2628_v2 = vsub.f32 %v2612_v10, %v2620_v60  ;;  %5436 = vmatprep.subr.bf16.mxu1 %v5830_v48  ;;  %v2026_v24 = vmul.f32 %v7171_v13, %v2012_v31 }
 0x5d4   : > { %v2629_v11 = vsub.f32 %v2613_v8, %v2621_v20  ;;  %v5928_v6 = vpop.eup %5927  ;;  %v2602_v56 = vpop.xlane.xlu1 %2601 }
 0x5d5   : > { %v2576_v35 = vpop.xlane.xlu0 %2575  ;;  %v5930_v55 = vpop.eup %5929  ;;  %v2644_v38 = vadd.f32 1e-05, %v2628_v2  ;;  %v2614_v58 = vmul.f32 0.0078125, %v2602_v56  ;;  %v2013_v63 = vmul.f32 %v5928_v6, %v1989_v53  ;;  %v5833_v2 = vld [vmem:[#allocation8 + $0x18] sm:$0xff]  }
 0x5d6   : > { %v2645_v19 = vadd.f32 1e-05, %v2629_v11  ;;  %5437 = vmatpush3.bf16.msra.mxu1 %v5830_v48  ;;  %v2010_v20 = vmul.f32 %v5930_v55, %v1986_v54  ;;  %v7220_v15 = vmul.f32 0.0078125, %v2576_v35  ;;  %v2040_v11 = vadd.f32 %v7181_v42, %v2026_v24 }
 0x5d7   : > { %5935 = vrsqrt.f32 %v2644_v38  ;;  %v2630_v27 = vsub.f32 %v2614_v58, %v2622_v12  ;;  %5438 = vmatprep.subr.bf16.mxu1 %v5831_v37  ;;  %v2027_v44 = vmul.f32 %v7171_v13, %v2013_v63  ;;  %v2635_v38 = vsub.f32 %v7113_v26, %v7187_v1  ;;  %v7241_v26 = vld [vmem:[%s8476_s4] ss:$0 sm:$0xff] }
 0x5d8   : > { %v5932_v28 = vpop.eup %5931  ;;  %5937 = vrsqrt.f32 %v2645_v19  ;;  %v2578_v61 = vpop.xlane.xlu1 %2577  ;;  %v2024_v60 = vmul.f32 %v7171_v13, %v2010_v20  ;;  %v2625_v19 = vmul.f32 %v7220_v15, %v7220_v15  ;;  %v5834_v20 = vld [vmem:[#allocation8 + $0x10] sm:$0xff]  }
 0x5d9   : > { %v2572_v52 = vpop.xlane.xlu0 %2571  ;;  %v2646_v48 = vadd.f32 1e-05, %v2630_v27  ;;  %v2011_v8 = vmul.f32 %v5932_v28, %v1987_v57  ;;  %v2041_v45 = vadd.f32 %v7181_v42, %v2027_v44  ;;  %v7234_v57 = vmul.f32 0.0078125, %v2578_v61 }
 0x5da   : > { %v7217_v10 = vmul.f32 0.0078125, %v2572_v52  ;;  %5439 = vmatpush3.bf16.msra.mxu1 %v5831_v37  ;;  %v2038_v54 = vadd.f32 %v7181_v42, %v2024_v60  ;;  %v2636_v61 = vsub.f32 %v7122_v4, %v7195_v47 }
 0x5db   : > { %5939 = vrsqrt.f32 %v2646_v48  ;;  %5440 = vmatprep.subr.bf16.mxu1 %v5832_v29  ;;  %v2025_v53 = vmul.f32 %v7171_v13, %v2011_v8  ;;  %v2049_v12 = vmax.f32 %v2041_v45, 0.0  ;;  %v2048_v13 = vmax.f32 %v2040_v11, 0.0 }
 0x5dc   : > { %v2574_v31 = vpop.xlane.xlu1 %2573  ;;  %v2623_v56 = vmul.f32 %v7217_v10, %v7217_v10  ;;  %v2626_v4 = vmul.f32 %v7234_v57, %v7234_v57 }
 0x5dd   : > { %v2604_v6 = vpop.xlane.xlu0 %2603  ;;  %v7227_v55 = vmul.f32 0.0078125, %v2574_v31  ;;  %v2039_v35 = vadd.f32 %v7181_v42, %v2025_v53  ;;  %v2046_v42 = vmax.f32 %v2038_v54, 0.0  ;;  %v2053_v8 = vpack.c.bf16 %v2049_v12, %v2048_v13  ;;  %v5835_v31 = vld [vmem:[#allocation8 + $0x8] sm:$0xff]  }
 0x5de   : > { %v2615_v37 = vmul.f32 0.0078125, %v2604_v6  ;;  %5441 = vmatpush3.bf16.msra.mxu1 %v5832_v29  ;;  %v7248_v6 = vld [vmem:[%s8477_s5] ss:$0 sm:$0xff]  ;;  %v2638_v13 = vsub.f32 %v7116_v7, %v7201_v36 }
 0x5df   : > { %5442 = vmatprep.subr.bf16.mxu1 %v5833_v2  ;;  %v2624_v27 = vmul.f32 %v7227_v55, %v7227_v55  ;;  %v2047_v28 = vmax.f32 %v2039_v35, 0.0 }
 0x5e0   : > { %v2631_v58 = vsub.f32 %v2615_v37, %v2623_v56  ;;  %v5934_v63 = vpop.eup %5933  ;;  %v2606_v29 = vpop.xlane.xlu1 %2605  ;;  %v2637_v56 = vsub.f32 %v7109_v25, %v7191_v39  ;;  %v5836_v39 = vld [vmem:[#allocation8] sm:$0xff]  }
 0x5e1   : > { %v2608_v24 = vpop.xlane.xlu0 %2607  ;;  %v2616_v52 = vmul.f32 0.0078125, %v2606_v29  ;;  %v2659_v44 = vmul.f32 %v5934_v63, %v2635_v38  ;;  %v2052_v48 = vpack.c.bf16 %v2047_v28, %v2046_v42 }
 0x5e2   : > { %v2647_v1 = vadd.f32 1e-05, %v2631_v58  ;;  %v2617_v60 = vmul.f32 0.0078125, %v2608_v24  ;;  %5443 = vmatpush3.bf16.msra.mxu1 %v5833_v2 }
 0x5e3   : > { %v2632_v45 = vsub.f32 %v2616_v52, %v2624_v27  ;;  %5444 = vmatprep.subr.bf16.mxu1 %v5834_v20  ;;  %v2673_v53 = vmul.f32 %v7241_v26, %v2659_v44  ;;  %5406 = vmatprep.mubr.bf16.mxu1 %v2052_v48  ;;  %v2639_v44 = vsub.f32 %v7133_v16, %v7217_v10 }
 0x5e4   : > { %5941 = vrsqrt.f32 %v2647_v1  ;;  %v2633_v11 = vsub.f32 %v2617_v60, %v2625_v19  ;;  %v5936_v54 = vpop.eup %5935  ;;  %v2610_v47 = vpop.xlane.xlu1 %2609  ;;  %5407 = vmatmul.mubr.bf16.gmra.mxu1 %v2053_v8  ;;  %v2642_v16 = vsub.f32 %v7136_v46, %v7234_v57 }
 0x5e5   : > { %v5938_v2 = vpop.eup %5937  ;;  %v2648_v37 = vadd.f32 1e-05, %v2632_v45  ;;  %v2618_v12 = vmul.f32 0.0078125, %v2610_v47  ;;  %v2660_v38 = vmul.f32 %v5936_v54, %v2636_v61  ;;  %v2687_v19 = vadd.f32 %v7248_v6, %v2673_v53 }
 0x5e6   : > { %v2649_v35 = vadd.f32 1e-05, %v2633_v11  ;;  %5445 = vmatpush3.bf16.msra.mxu1 %v5834_v20  ;;  %v2661_v58 = vmul.f32 %v5938_v2, %v2637_v56  ;;  %v2641_v56 = vsub.f32 %v7129_v49, %v7220_v15 }
 0x5e7   : > { %5943 = vrsqrt.f32 %v2648_v37  ;;  %v2634_v25 = vsub.f32 %v2618_v12, %v2626_v4  ;;  %5446 = vmatprep.subr.bf16.mxu1 %v5835_v31  ;;  %v2674_v63 = vmul.f32 %v7241_v26, %v2660_v38  ;;  %v2695_v28 = vmax.f32 %v2687_v19, 0.0 }
 0x5e8   : > { %v5940_v27 = vpop.eup %5939  ;;  %5945 = vrsqrt.f32 %v2649_v35  ;;  %v2675_v29 = vmul.f32 %v7241_v26, %v2661_v58 }
 0x5e9   : > { %v2650_v24 = vadd.f32 1e-05, %v2634_v25  ;;  %v2688_v42 = vadd.f32 %v7248_v6, %v2674_v63  ;;  %v2662_v20 = vmul.f32 %v5940_v27, %v2638_v13 }
 0x5ea   : > { %5447 = vmatpush3.bf16.msra.mxu1 %v5835_v31  ;;  %v2689_v36 = vadd.f32 %v7248_v6, %v2675_v29  ;;  %v2640_v31 = vsub.f32 %v7142_v59, %v7227_v55 }
 0x5eb   : > { %5947 = vrsqrt.f32 %v2650_v24  ;;  %5448 = vmatprep.subr.bf16.mxu1 %v5836_v39  ;;  %v2696_v1 = vmax.f32 %v2688_v42, 0.0  ;;  %v2676_v7 = vmul.f32 %v7241_v26, %v2662_v20 }
 0x5ec   : > { %v2697_v61 = vmax.f32 %v2689_v36, 0.0 }
 0x5ed   : > { %v2703_v52 = vpack.c.bf16 %v2696_v1, %v2695_v28  ;;  %v2690_v60 = vadd.f32 %v7248_v6, %v2676_v7 }
 0x5ee   : > { %5449 = vmatpush3.bf16.msra.mxu1 %v5836_v39 }
 0x5ef   : > { %5450 = vmatprep.mubr.bf16.mxu1 %v2703_v52  ;;  %v2698_v48 = vmax.f32 %v2690_v60, 0.0 }
 0x5f1   : > { %v5942_v8 = vpop.eup %5941  ;;  %v2704_v45 = vpack.c.bf16 %v2698_v48, %v2697_v61 }
 0x5f2   : > { %v2663_v11 = vmul.f32 %v5942_v8, %v2639_v44 }
 0x5f3   : > { %5451 = vmatmul.mubr.bf16.vlgmr.msra.gmra.mxu1 %v2704_v45 }
 0x5f4   : > { %v2677_v53 = vmul.f32 %v7241_v26, %v2663_v11  ;;  %v5944_v54 = vpop.eup %5943 }
 0x5f5   : > { %v5946_v4 = vpop.eup %5945  ;;  %v2664_v47 = vmul.f32 %v5944_v54, %v2640_v31 }
 0x5f6   : > { %v2665_v2 = vmul.f32 %v5946_v4, %v2641_v56  ;;  %v2691_v37 = vadd.f32 %v7248_v6, %v2677_v53 }
 0x5f7   : > { %v2678_v10 = vmul.f32 %v7241_v26, %v2664_v47 }
 0x5f8   : > { %v5948_v35 = vpop.eup %5947  ;;  %v2679_v59 = vmul.f32 %v7241_v26, %v2665_v2  ;;  %v2699_v38 = vmax.f32 %v2691_v37, 0.0 }
 0x5f9   : > { %v2692_v55 = vadd.f32 %v7248_v6, %v2678_v10  ;;  %v2666_v12 = vmul.f32 %v5948_v35, %v2642_v16  ;;  %v5837_v10 = vld [vmem:[%s8481_s9 + $0x38] sm:$0xff]  }
 0x5fa   : > { %v2693_v15 = vadd.f32 %v7248_v6, %v2679_v59  ;;  %5458 = vmatprep.subr.bf16.mxu0 %v5837_v10  ;;  %v5838_v59 = vld [vmem:[%s8481_s9 + $0x30] sm:$0xff]  }
 0x5fb   : > { %v2700_v19 = vmax.f32 %v2692_v55, 0.0  ;;  %v2680_v49 = vmul.f32 %v7241_v26, %v2666_v12  ;;  %5459 = vmatpush3.bf16.msra.mxu0 %v5837_v10  ;;  %v5839_v12 = vld [vmem:[%s8481_s9 + $0x28] sm:$0xff]  }
 0x5fc   : > { %v2701_v46 = vmax.f32 %v2693_v15, 0.0  ;;  %5460 = vmatprep.subr.bf16.mxu0 %v5838_v59  ;;  %v5843_v15 = vld [vmem:[%s8481_s9 + $0x8] sm:$0xff]  }
 0x5fd   : > { %v2705_v58 = vpack.c.bf16 %v2700_v19, %v2699_v38  ;;  %v2694_v13 = vadd.f32 %v7248_v6, %v2680_v49  ;;  %v5840_v38 = vld [vmem:[%s8481_s9 + $0x20] sm:$0xff]   ;;  %v5841_v19 = vld [vmem:[%s8481_s9 + $0x18] sm:$0xff]   ;;  %v5842_v49 = vld [vmem:[%s8481_s9 + $0x10] sm:$0xff]  }
 0x5ff   : > { %5454 = vmatprep.mubr.bf16.mxu1 %v2705_v58  ;;  %v2702_v57 = vmax.f32 %v2694_v13, 0.0  ;;  %5461 = vmatpush3.bf16.msra.mxu0 %v5838_v59  ;;  %v5844_v58 = vld [vmem:[%s8481_s9] sm:$0xff]  }
 0x600   : > { %5462 = vmatprep.subr.bf16.mxu0 %v5839_v12  ;;  %v7368_v13 = vld [vmem:[#allocation6 + $0x38] sm:$0xff]  }
 0x601   : > { %v2706_v25 = vpack.c.bf16 %v2702_v57, %v2701_v46 }
 0x603   : > { %5455 = vmatmul.mubr.bf16.gmra.mxu1 %v2706_v25  ;;  %5463 = vmatpush3.bf16.msra.mxu0 %v5839_v12 }
 0x604   : > { %5464 = vmatprep.subr.bf16.mxu0 %v5840_v38 }
 0x607   : > { %5465 = vmatpush3.bf16.msra.mxu0 %v5840_v38 }
 0x608   : > { %5466 = vmatprep.subr.bf16.mxu0 %v5841_v19 }
 0x60b   : > { %5467 = vmatpush3.bf16.msra.mxu0 %v5841_v19 }
 0x60c   : > { %5468 = vmatprep.subr.bf16.mxu0 %v5842_v49 }
 0x60f   : > { %5469 = vmatpush3.bf16.msra.mxu0 %v5842_v49 }
 0x610   : > { %5470 = vmatprep.subr.bf16.mxu0 %v5843_v15 }
 0x613   : > { %5471 = vmatpush3.bf16.msra.mxu0 %v5843_v15 }
 0x614   : > { %5472 = vmatprep.subr.bf16.mxu0 %v5844_v58 }
 0x617   : > { %5473 = vmatpush3.bf16.msra.mxu0 %v5844_v58 }
 0x618   : > { %5506 = vmatprep.subr.bf16.mxu0 %v7368_v13 }
 0x691   : > { %v7280_v39 = vpop.f32.mrf.mxu1 }
 0x693   : > { %v7282_v63 = vpop.f32.mrf.mxu1 }
 0x695   : > { %v7284_v27 = vpop.f32.mrf.mxu1 }
 0x697   : > { %v7286_v29 = vpop.f32.mrf.mxu1 }
 0x6a4   : > { %v7288_v24 = vpop.f32.mrf.mxu1 }
 0x6a6   : > { %v7290_v26 = vpop.f32.mrf.mxu1 }
 0x6a8   : > { %v7292_v42 = vpop.f32.mrf.mxu1 }
 0x6aa   : > { %v7294_v6 = vpop.f32.mrf.mxu1 }
 0x6b3   : > { %v5452_v20 = vpop.f32.mrf.mxu1 }
 0x6b4   : > { %v7297_v28 = vadd.f32 %v5452_v20, %v6840_v18 }
 0x6b5   : > { %v2805_v1 = vpop.f32.mrf.mxu1 }
 0x6b6   : > { %2842 = vadd.xlane.f32.xlu0 %v7297_v28  ;;  %v7301_v36 = vadd.f32 %v2805_v1, %v6845_v21  ;;  %v2864_v8 = vmul.f32 %v7297_v28, %v7297_v28 }
 0x6b7   : > { %v5453_v7 = vpop.f32.mrf.mxu1 }
 0x6b8   : > { %v7304_v52 = vadd.f32 %v5453_v7, %v6847_v22  ;;  %v2862_v61 = vmul.f32 %v7301_v36, %v7301_v36 }
 0x6b9   : > { %v2808_v60 = vpop.f32.mrf.mxu1 }
 0x6ba   : > { %2844 = vadd.xlane.f32.xlu1 %v7304_v52  ;;  %2838 = vadd.xlane.f32.xlu0 %v7301_v36  ;;  %v7309_v44 = vadd.f32 %v2808_v60, %v6856_v23  ;;  %v2865_v31 = vmul.f32 %v7304_v52, %v7304_v52 }
 0x6bc   : > { %v2863_v48 = vmul.f32 %v7309_v44, %v7309_v44 }
 0x6be   : > { %2840 = vadd.xlane.f32.xlu1 %v7309_v44  ;;  %2870 = vadd.xlane.f32.xlu0 %v2862_v61 }
 0x6c2   : > { %2872 = vadd.xlane.f32.xlu1 %v2863_v48  ;;  %2874 = vadd.xlane.f32.xlu0 %v2864_v8 }
 0x6c3   : > { %v5456_v45 = vpop.f32.mrf.mxu1 }
 0x6c4   : > { %v7319_v11 = vadd.f32 %v5456_v45, %v6875_v34 }
 0x6c5   : > { %v2821_v53 = vpop.f32.mrf.mxu1 }
 0x6c6   : > { %2876 = vadd.xlane.f32.xlu1 %v2865_v31  ;;  %2850 = vadd.xlane.f32.xlu0 %v7319_v11  ;;  %v7325_v56 = vadd.f32 %v2821_v53, %v6885_v41  ;;  %v2868_v35 = vmul.f32 %v7319_v11, %v7319_v11 }
 0x6c7   : > { %v5457_v54 = vpop.f32.mrf.mxu1 }
 0x6c8   : > { %v7328_v4 = vadd.f32 %v5457_v54, %v6887_v30  ;;  %v2866_v16 = vmul.f32 %v7325_v56, %v7325_v56 }
 0x6c9   : > { %v2824_v47 = vpop.f32.mrf.mxu1 }
 0x6ca   : > { %2852 = vadd.xlane.f32.xlu1 %v7328_v4  ;;  %2846 = vadd.xlane.f32.xlu0 %v7325_v56  ;;  %v7333_v2 = vadd.f32 %v2824_v47, %v6903_v51  ;;  %v2869_v55 = vmul.f32 %v7328_v4, %v7328_v4 }
 0x6cc   : > { %v2867_v37 = vmul.f32 %v7333_v2, %v7333_v2 }
 0x6ce   : > { %2848 = vadd.xlane.f32.xlu1 %v7333_v2  ;;  %2878 = vadd.xlane.f32.xlu0 %v2866_v16 }
 0x6d2   : > { %2880 = vadd.xlane.f32.xlu1 %v2867_v37  ;;  %2882 = vadd.xlane.f32.xlu0 %v2868_v35 }
 0x6d6   : > { %2884 = vadd.xlane.f32.xlu1 %v2869_v55 }
 0x73f   : > { %v2843_v46 = vpop.xlane.xlu0 %2842 }
 0x740   : > { %v7371_v1 = vmul.f32 0.0078125, %v2843_v46 }
 0x742   : > { %v2896_v31 = vmul.f32 %v7371_v1, %v7371_v1 }
 0x743   : > { %v2845_v57 = vpop.xlane.xlu1 %2844  ;;  %v2839_v25 = vpop.xlane.xlu0 %2838 }
 0x744   : > { %v2854_v20 = vmul.f32 0.0078125, %v2839_v25  ;;  %v7375_v53 = vmul.f32 0.0078125, %v2845_v57 }
 0x746   : > { %v2894_v61 = vmul.f32 %v2854_v20, %v2854_v20  ;;  %v2897_v19 = vmul.f32 %v7375_v53, %v7375_v53 }
 0x747   : > { %v2841_v7 = vpop.xlane.xlu1 %2840  ;;  %v2871_v60 = vpop.xlane.xlu0 %2870 }
 0x748   : > { %v2855_v48 = vmul.f32 0.0078125, %v2841_v7  ;;  %v2886_v8 = vmul.f32 0.0078125, %v2871_v60 }
 0x74a   : > { %v2902_v45 = vsub.f32 %v2886_v8, %v2894_v61  ;;  %v2895_v16 = vmul.f32 %v2855_v48, %v2855_v48 }
 0x74b   : > { %v2873_v54 = vpop.xlane.xlu1 %2872  ;;  %v2875_v47 = vpop.xlane.xlu0 %2874 }
 0x74c   : > { %v2918_v10 = vadd.f32 1e-05, %v2902_v45  ;;  %v2887_v37 = vmul.f32 0.0078125, %v2873_v54  ;;  %v2888_v35 = vmul.f32 0.0078125, %v2875_v47 }
 0x74e   : > { %5949 = vrsqrt.f32 %v2918_v10  ;;  %v2903_v59 = vsub.f32 %v2887_v37, %v2895_v16  ;;  %v2904_v55 = vsub.f32 %v2888_v35, %v2896_v31  ;;  %v2910_v16 = vsub.f32 %v7301_v36, %v2854_v20 }
 0x74f   : > { %v2877_v12 = vpop.xlane.xlu1 %2876  ;;  %v2851_v38 = vpop.xlane.xlu0 %2850 }
 0x750   : > { %v2919_v49 = vadd.f32 1e-05, %v2903_v59  ;;  %v2920_v15 = vadd.f32 1e-05, %v2904_v55  ;;  %v2889_v58 = vmul.f32 0.0078125, %v2877_v12  ;;  %v7381_v61 = vmul.f32 0.0078125, %v2851_v38 }
 0x752   : > { %5951 = vrsqrt.f32 %v2919_v49  ;;  %v2905_v46 = vsub.f32 %v2889_v58, %v2897_v19  ;;  %v2900_v35 = vmul.f32 %v7381_v61, %v7381_v61  ;;  %v7397_v19 = vld [vmem:[%s8479_s7] ss:$0 sm:$0xff]  ;;  %v2911_v58 = vsub.f32 %v7309_v44, %v2855_v48 }
 0x753   : > { %5953 = vrsqrt.f32 %v2920_v15  ;;  %v2853_v57 = vpop.xlane.xlu1 %2852  ;;  %v2847_v25 = vpop.xlane.xlu0 %2846 }
 0x754   : > { %v2921_v7 = vadd.f32 1e-05, %v2905_v46  ;;  %v7379_v60 = vmul.f32 0.0078125, %v2847_v25  ;;  %v7390_v59 = vmul.f32 0.0078125, %v2853_v57  ;;  %v7403_v25 = vld [vmem:[%s8480_s8] ss:$0 sm:$0xff] }
 0x756   : > { %5955 = vrsqrt.f32 %v2921_v7  ;;  %v2898_v31 = vmul.f32 %v7379_v60, %v7379_v60 }
 0x757   : > { %v2849_v8 = vpop.xlane.xlu1 %2848  ;;  %v2879_v45 = vpop.xlane.xlu0 %2878 }
 0x758   : > { %v7385_v54 = vmul.f32 0.0078125, %v2849_v8  ;;  %v2890_v47 = vmul.f32 0.0078125, %v2879_v45  ;;  %v2912_v45 = vsub.f32 %v7297_v28, %v7371_v1 }
 0x75a   : > { %v2906_v10 = vsub.f32 %v2890_v47, %v2898_v31  ;;  %v2899_v55 = vmul.f32 %v7385_v54, %v7385_v54  ;;  %v2901_v31 = vmul.f32 %v7390_v59, %v7390_v59 }
 0x75b   : > { %v5950_v37 = vpop.eup %5949  ;;  %v2881_v12 = vpop.xlane.xlu1 %2880 }
 0x75c   : > { %v2883_v38 = vpop.xlane.xlu0 %2882  ;;  %v2922_v49 = vadd.f32 1e-05, %v2906_v10  ;;  %v2891_v15 = vmul.f32 0.0078125, %v2881_v12  ;;  %v2934_v20 = vmul.f32 %v5950_v37, %v2910_v16  ;;  %v2913_v12 = vsub.f32 %v7304_v52, %v7375_v53 }
 0x75d   : > { %v2892_v36 = vmul.f32 0.0078125, %v2883_v38 }
 0x75e   : > { %5957 = vrsqrt.f32 %v2922_v49  ;;  %v2907_v46 = vsub.f32 %v2891_v15, %v2899_v55  ;;  %v2948_v7 = vmul.f32 %v7397_v19, %v2934_v20 }
 0x75f   : > { %v2908_v57 = vsub.f32 %v2892_v36, %v2900_v35  ;;  %v5952_v8 = vpop.eup %5951  ;;  %v2885_v47 = vpop.xlane.xlu1 %2884 }
 0x760   : > { %v5954_v16 = vpop.eup %5953  ;;  %v2923_v44 = vadd.f32 1e-05, %v2907_v46  ;;  %v2893_v10 = vmul.f32 0.0078125, %v2885_v47  ;;  %v2935_v37 = vmul.f32 %v5952_v8, %v2911_v58  ;;  %v7411_v35 = vadd.f32 %v7403_v25, %v2948_v7 }
 0x761   : > { %v2924_v48 = vadd.f32 1e-05, %v2908_v57  ;;  %v2936_v55 = vmul.f32 %v5954_v16, %v2912_v45  ;;  %v2914_v8 = vsub.f32 %v7325_v56, %v7379_v60  ;;  %v2916_v60 = vsub.f32 %v7319_v11, %v7381_v61  ;;  %v5848_v11 = vld [vmem:[#allocation6 + $0x20] sm:$0xff]  }
 0x762   : > { %8572 = vst [vmem:[#allocation30_spill] sm:$0xff] %v7411_v35  ;;  %5959 = vrsqrt.f32 %v2923_v44  ;;  %v2909_v38 = vsub.f32 %v2893_v10, %v2901_v31  ;;  %v2949_v28 = vmul.f32 %v7397_v19, %v2935_v37  ;;  %v8517_v58 = vmax.f32 %v7411_v35, 0.0  ;;  %v5846_v44 = vld [vmem:[#allocation6 + $0x30] sm:$0xff]  }
 0x763   : > { %v5956_v1 = vpop.eup %5955  ;;  %5961 = vrsqrt.f32 %v2924_v48  ;;  %v2950_v49 = vmul.f32 %v7397_v19, %v2936_v55  ;;  %v2915_v10 = vsub.f32 %v7333_v2, %v7385_v54 }
 0x764   : > { %v2925_v15 = vadd.f32 1e-05, %v2909_v38  ;;  %v7418_v36 = vadd.f32 %v7403_v25, %v2949_v28  ;;  %v2937_v20 = vmul.f32 %v5956_v1, %v2913_v12  ;;  %v5847_v12 = vld [vmem:[#allocation6 + $0x28] sm:$0xff]   ;;  %v2917_v1 = vsub.f32 %v7328_v4, %v7390_v59 }
 0x765   : > { %v7424_v53 = vadd.f32 %v7403_v25, %v2950_v49 }
 0x766   : > { %8573 = vst [vmem:[#allocation31_spill] sm:$0xff] %v7418_v36  ;;  %5963 = vrsqrt.f32 %v2925_v15  ;;  %v8516_v46 = vmax.f32 %v7418_v36, 0.0  ;;  %v2951_v52 = vmul.f32 %v7397_v19, %v2937_v20 }
 0x767   : > { %8574 = vst [vmem:[#allocation32_spill] sm:$0xff] %v7424_v53  ;;  %v8515_v45 = vmax.f32 %v7424_v53, 0.0 }
 0x768   : > { %v2978_v57 = vpack.c.bf16 %v8516_v46, %v8517_v58  ;;  %v7431_v7 = vadd.f32 %v7403_v25, %v2951_v52 }
 0x76a   : > { %8575 = vst [vmem:[#allocation33_spill] sm:$0xff] %v7431_v7  ;;  %5474 = vmatprep.mubr.bf16.mxu0 %v2978_v57  ;;  %v8514_v31 = vmax.f32 %v7431_v7, 0.0 }
 0x76b   : > { %v5958_v47 = vpop.eup %5957 }
 0x76c   : > { %v2979_v16 = vpack.c.bf16 %v8514_v31, %v8515_v45  ;;  %v2938_v48 = vmul.f32 %v5958_v47, %v2914_v8  ;;  %v5849_v8 = vld [vmem:[#allocation6 + $0x18] sm:$0xff]  }
 0x76e   : > { %5475 = vmatmul.mubr.bf16.vlgmr.msra.gmra.mxu0 %v2979_v16  ;;  %v2952_v37 = vmul.f32 %v7397_v19, %v2938_v48  ;;  %v5850_v48 = vld [vmem:[#allocation6 + $0x10] sm:$0xff]  }
 0x76f   : > { %v5960_v56 = vpop.eup %5959  ;;  %5507 = vmatpush3.bf16.msra.mxu0 %v7368_v13 }
 0x770   : > { %v5962_v55 = vpop.eup %5961  ;;  %5508 = vmatprep.subr.bf16.mxu0 %v5846_v44  ;;  %v2939_v38 = vmul.f32 %v5960_v56, %v2915_v10  ;;  %v7451_v2 = vadd.f32 %v7403_v25, %v2952_v37  ;;  %v5852_v10 = vld [vmem:[#allocation6] sm:$0xff]  }
 0x771   : > { %v2940_v28 = vmul.f32 %v5962_v55, %v2916_v60 }
 0x772   : > { %v2953_v49 = vmul.f32 %v7397_v19, %v2939_v38  ;;  %8576 = vst [vmem:[#allocation34_spill] sm:$0xff] %v7451_v2  ;;  %v8513_v20 = vmax.f32 %v7451_v2, 0.0 }
 0x773   : > { %v5964_v54 = vpop.eup %5963  ;;  %5509 = vmatpush3.bf16.msra.mxu0 %v5846_v44  ;;  %v2954_v15 = vmul.f32 %v7397_v19, %v2940_v28 }
 0x774   : > { %5510 = vmatprep.subr.bf16.mxu0 %v5847_v12  ;;  %v7455_v13 = vadd.f32 %v7403_v25, %v2953_v49  ;;  %v2941_v61 = vmul.f32 %v5964_v54, %v2917_v1  ;;  %v5853_v54 = vld [vmem:[#allocation11 + $0x38] sm:$0xff]  }
 0x775   : > { %v7461_v59 = vadd.f32 %v7403_v25, %v2954_v15  ;;  %5482 = vmatprep.subr.bf16.mxu1 %v5853_v54 }
 0x776   : > { %8577 = vst [vmem:[#allocation35_spill] sm:$0xff] %v7455_v13  ;;  %v8512_v52 = vmax.f32 %v7455_v13, 0.0  ;;  %v2955_v4 = vmul.f32 %v7397_v19, %v2941_v61  ;;  %5483 = vmatpush3.bf16.msra.mxu1 %v5853_v54  ;;  %v5854_v61 = vld [vmem:[#allocation11 + $0x30] sm:$0xff]  }
 0x777   : > { %8578 = vst [vmem:[#allocation36_spill] sm:$0xff] %v7461_v59  ;;  %5511 = vmatpush3.bf16.msra.mxu0 %v5847_v12  ;;  %v8510_v16 = vmax.f32 %v7461_v59, 0.0  ;;  %5484 = vmatprep.subr.bf16.mxu1 %v5854_v61  ;;  %v5858_v54 = vld [vmem:[#allocation11 + $0x10] sm:$0xff]  }
 0x778   : > { %5512 = vmatprep.subr.bf16.mxu0 %v5848_v11  ;;  %v2980_v57 = vpack.c.bf16 %v8512_v52, %v8513_v20  ;;  %v7468_v47 = vadd.f32 %v7403_v25, %v2955_v4  ;;  %v5851_v25 = vld [vmem:[#allocation6 + $0x8] sm:$0xff]  }
 0x77a   : > { %8579 = vst [vmem:[#allocation37_spill] sm:$0xff] %v7468_v47  ;;  %5478 = vmatprep.mubr.bf16.mxu0 %v2980_v57  ;;  %v8511_v44 = vmax.f32 %v7468_v47, 0.0  ;;  %5485 = vmatpush3.bf16.msra.mxu1 %v5854_v61  ;;  %v5859_v61 = vld [vmem:[#allocation11 + $0x8] sm:$0xff]  }
 0x77b   : > { %5513 = vmatpush3.bf16.msra.mxu0 %v5848_v11 }
 0x77c   : > { %5514 = vmatprep.subr.bf16.mxu0 %v5849_v8  ;;  %v2981_v19 = vpack.c.bf16 %v8511_v44, %v8510_v16 }
 0x77e   : > { %5479 = vmatmul.mubr.bf16.gmra.mxu0 %v2981_v19 }
 0x77f   : > { %5515 = vmatpush3.bf16.msra.mxu0 %v5849_v8  ;;  %5522 = vmatprep.mubr.bf16.mxu0 %v7063_v17  ;;  %v5855_v8 = vld [vmem:[#allocation11 + $0x28] sm:$0xff]  }
 0x780   : > { %5516 = vmatprep.subr.bf16.mxu0 %v5850_v48  ;;  %5486 = vmatprep.subr.bf16.mxu1 %v5855_v8 }
 0x781   : > { %5487 = vmatpush3.bf16.msra.mxu1 %v5855_v8  ;;  %v5860_v8 = vld [vmem:[#allocation11] sm:$0xff]  }
 0x783   : > { %5517 = vmatpush3.bf16.msra.mxu0 %v5850_v48 }
 0x784   : > { %5518 = vmatprep.subr.bf16.mxu0 %v5851_v25 }
 0x787   : > { %5519 = vmatpush3.bf16.msra.mxu0 %v5851_v25  ;;  %v5856_v25 = vld [vmem:[#allocation11 + $0x20] sm:$0xff]  }
 0x788   : > { %5520 = vmatprep.subr.bf16.mxu0 %v5852_v10  ;;  %5488 = vmatprep.subr.bf16.mxu1 %v5856_v25 }
 0x789   : > { %5489 = vmatpush3.bf16.msra.mxu1 %v5856_v25 }
 0x78b   : > { %5521 = vmatpush3.bf16.msra.mxu0 %v5852_v10 }
 0x78e   : > { %5523 = vmatmul.mubr.bf16.vlgmr.msra.gmra.mxu0 %v7065_v14 }
 0x78f   : > { %5526 = vmatprep.mubr.bf16.mxu0 %v7067_v32 }
 0x796   : > { %5527 = vmatmul.mubr.bf16.gmra.mxu0 %v7069_v62 }
 0x82e   : > { %v7480_v37 = vpop.f32.mrf.mxu0 }
 0x82f   : > { %3117 = vadd.xlane.f32.xlu0 %v7480_v37  ;;  %v3139_v60 = vmul.f32 %v7480_v37, %v7480_v37 }
 0x830   : > { %v7483_v56 = vpop.f32.mrf.mxu0 }
 0x831   : > { %v3137_v32 = vmul.f32 %v7483_v56, %v7483_v56 }
 0x832   : > { %v7485_v17 = vpop.f32.mrf.mxu0 }
 0x833   : > { %3113 = vadd.xlane.f32.xlu0 %v7483_v56  ;;  %3119 = vadd.xlane.f32.xlu1 %v7485_v17  ;;  %v3140_v62 = vmul.f32 %v7485_v17, %v7485_v17 }
 0x834   : > { %v7491_v14 = vpop.f32.mrf.mxu0 }
 0x835   : > { %v3138_v55 = vmul.f32 %v7491_v14, %v7491_v14 }
 0x837   : > { %3149 = vadd.xlane.f32.xlu0 %v3139_v60  ;;  %3115 = vadd.xlane.f32.xlu1 %v7491_v14 }
 0x83b   : > { %3145 = vadd.xlane.f32.xlu0 %v3137_v32  ;;  %3151 = vadd.xlane.f32.xlu1 %v3140_v62  ;;  %v5857_v32 = vld [vmem:[#allocation11 + $0x18] sm:$0xff]  }
 0x83c   : > { %5490 = vmatprep.subr.bf16.mxu1 %v5857_v32 }
 0x83d   : > { %5491 = vmatpush3.bf16.msra.mxu1 %v5857_v32  ;;  %v7554_v32 = vld [vmem:[#allocation8 + $0x38] sm:$0xff]  }
 0x83e   : > { %v7500_v12 = vpop.f32.mrf.mxu0  ;;  %5492 = vmatprep.subr.bf16.mxu1 %v5858_v54 }
 0x83f   : > { %3147 = vadd.xlane.f32.xlu1 %v3138_v55  ;;  %3125 = vadd.xlane.f32.xlu0 %v7500_v12  ;;  %v3143_v1 = vmul.f32 %v7500_v12, %v7500_v12 }
 0x840   : > { %v7503_v38 = vpop.f32.mrf.mxu0 }
 0x841   : > { %v3141_v15 = vmul.f32 %v7503_v38, %v7503_v38  ;;  %5493 = vmatpush3.bf16.msra.mxu1 %v5858_v54 }
 0x842   : > { %v7505_v28 = vpop.f32.mrf.mxu0  ;;  %5494 = vmatprep.subr.bf16.mxu1 %v5859_v61 }
 0x843   : > { %3121 = vadd.xlane.f32.xlu0 %v7503_v38  ;;  %3127 = vadd.xlane.f32.xlu1 %v7505_v28  ;;  %v3144_v11 = vmul.f32 %v7505_v28, %v7505_v28 }
 0x844   : > { %v7511_v49 = vpop.f32.mrf.mxu0 }
 0x845   : > { %v3142_v4 = vmul.f32 %v7511_v49, %v7511_v49  ;;  %5495 = vmatpush3.bf16.msra.mxu1 %v5859_v61 }
 0x846   : > { %5496 = vmatprep.subr.bf16.mxu1 %v5860_v8 }
 0x847   : > { %3157 = vadd.xlane.f32.xlu0 %v3143_v1  ;;  %3123 = vadd.xlane.f32.xlu1 %v7511_v49 }
 0x849   : > { %5497 = vmatpush3.bf16.msra.mxu1 %v5860_v8 }
 0x84a   : > { %5530 = vmatprep.subr.bf16.mxu1 %v7554_v32 }
 0x84b   : > { %3153 = vadd.xlane.f32.xlu0 %v3141_v15  ;;  %3159 = vadd.xlane.f32.xlu1 %v3144_v11 }
 0x84e   : > { %v7520_v57 = vpop.f32.mrf.mxu0 }
 0x84f   : > { %3770 = vadd.xlane.f32.xlu0 %v7520_v57  ;;  %3155 = vadd.xlane.f32.xlu1 %v3142_v4  ;;  %v3792_v10 = vmul.f32 %v7520_v57, %v7520_v57 }
 0x850   : > { %v7523_v19 = vpop.f32.mrf.mxu0 }
 0x851   : > { %v3790_v62 = vmul.f32 %v7523_v19, %v7523_v19 }
 0x852   : > { %v7525_v48 = vpop.f32.mrf.mxu0 }
 0x853   : > { %3766 = vadd.xlane.f32.xlu0 %v7523_v19  ;;  %3772 = vadd.xlane.f32.xlu1 %v7525_v48  ;;  %v3793_v55 = vmul.f32 %v7525_v48, %v7525_v48 }
 0x854   : > { %v7531_v60 = vpop.f32.mrf.mxu0 }
 0x855   : > { %v3791_v15 = vmul.f32 %v7531_v60, %v7531_v60 }
 0x856   : > { %v7538_v1 = vpop.f32.mrf.mxu0 }
 0x857   : > { %3802 = vadd.xlane.f32.xlu0 %v3792_v10  ;;  %3768 = vadd.xlane.f32.xlu1 %v7531_v60 }
 0x858   : > { %v7542_v11 = vpop.f32.mrf.mxu0 }
 0x859   : > { %v3794_v25 = vmul.f32 %v7542_v11, %v7542_v11 }
 0x85a   : > { %v7545_v4 = vpop.f32.mrf.mxu0 }
 0x85b   : > { %3798 = vadd.xlane.f32.xlu0 %v3790_v62  ;;  %3804 = vadd.xlane.f32.xlu1 %v3793_v55  ;;  %v3796_v62 = vmul.f32 %v7538_v1, %v7538_v1  ;;  %v3797_v54 = vmul.f32 %v7545_v4, %v7545_v4 }
 0x85c   : > { %v7551_v10 = vpop.f32.mrf.mxu0 }
 0x85d   : > { %v3795_v55 = vmul.f32 %v7551_v10, %v7551_v10 }
 0x85f   : > { %3778 = vadd.xlane.f32.xlu0 %v7538_v1  ;;  %3800 = vadd.xlane.f32.xlu1 %v3791_v15 }
 0x863   : > { %3774 = vadd.xlane.f32.xlu0 %v7542_v11  ;;  %3780 = vadd.xlane.f32.xlu1 %v7545_v4 }
 0x867   : > { %3806 = vadd.xlane.f32.xlu0 %v3794_v25  ;;  %3776 = vadd.xlane.f32.xlu1 %v7551_v10 }
 0x86b   : > { %3810 = vadd.xlane.f32.xlu0 %v3796_v62  ;;  %3808 = vadd.xlane.f32.xlu1 %v3795_v55 }
 0x86f   : > { %3812 = vadd.xlane.f32.xlu1 %v3797_v54 }
 0x8b8   : > { %v3118_v15 = vpop.xlane.xlu0 %3117 }
 0x8b9   : > { %v3131_v25 = vmul.f32 0.0078125, %v3118_v15 }
 0x8bb   : > { %v3171_v31 = vmul.f32 %v3131_v25, %v3131_v25 }
 0x8bc   : > { %v3120_v61 = vpop.xlane.xlu1 %3119  ;;  %v3114_v8 = vpop.xlane.xlu0 %3113 }
 0x8bd   : > { %v7563_v16 = vmul.f32 0.0078125, %v3120_v61  ;;  %v7565_v44 = vmul.f32 0.0078125, %v3114_v8 }
 0x8bf   : > { %v3172_v62 = vmul.f32 %v7563_v16, %v7563_v16  ;;  %v3169_v55 = vmul.f32 %v7565_v44, %v7565_v44 }
 0x8c0   : > { %v3116_v52 = vpop.xlane.xlu1 %3115  ;;  %v3150_v20 = vpop.xlane.xlu0 %3149 }
 0x8c1   : > { %v3163_v45 = vmul.f32 0.0078125, %v3150_v20  ;;  %v7571_v59 = vmul.f32 0.0078125, %v3116_v52 }
 0x8c3   : > { %v3179_v46 = vsub.f32 %v3163_v45, %v3171_v31  ;;  %v3170_v45 = vmul.f32 %v7571_v59, %v7571_v59 }
 0x8c4   : > { %v3152_v54 = vpop.xlane.xlu1 %3151  ;;  %v3146_v58 = vpop.xlane.xlu0 %3145 }
 0x8c5   : > { %v3195_v15 = vadd.f32 1e-05, %v3179_v46  ;;  %v3164_v61 = vmul.f32 0.0078125, %v3152_v54  ;;  %v3161_v47 = vmul.f32 0.0078125, %v3146_v58 }
 0x8c7   : > { %5965 = vrsqrt.f32 %v3195_v15  ;;  %v3180_v8 = vsub.f32 %v3164_v61, %v3172_v62  ;;  %v3177_v13 = vsub.f32 %v3161_v47, %v3169_v55 }
 0x8c8   : > { %v3148_v2 = vpop.xlane.xlu1 %3147  ;;  %v3126_v7 = vpop.xlane.xlu0 %3125 }
 0x8c9   : > { %v3196_v31 = vadd.f32 1e-05, %v3180_v8  ;;  %v3193_v20 = vadd.f32 1e-05, %v3177_v13  ;;  %v3162_v53 = vmul.f32 0.0078125, %v3148_v2  ;;  %v7575_v46 = vmul.f32 0.0078125, %v3126_v7 }
 0x8cb   : > { %5967 = vrsqrt.f32 %v3196_v31  ;;  %v3178_v36 = vsub.f32 %v3162_v53, %v3170_v45  ;;  %v3175_v54 = vmul.f32 %v7575_v46, %v7575_v46  ;;  %v3187_v53 = vsub.f32 %v7480_v37, %v3131_v25 }
 0x8cc   : > { %5969 = vrsqrt.f32 %v3193_v20  ;;  %v3128_v33 = vpop.xlane.xlu1 %3127  ;;  %v3122_v52 = vpop.xlane.xlu0 %3121  ;;  %v3188_v37 = vsub.f32 %v7485_v17, %v7563_v16  ;;  %v3185_v25 = vsub.f32 %v7483_v56, %v7565_v44  ;;  %v3186_v16 = vsub.f32 %v7491_v14, %v7571_v59 }
 0x8cd   : > { %v3194_v35 = vadd.f32 1e-05, %v3178_v36  ;;  %v7577_v58 = vmul.f32 0.0078125, %v3128_v33  ;;  %v7579_v47 = vmul.f32 0.0078125, %v3122_v52 }
 0x8cf   : > { %5971 = vrsqrt.f32 %v3194_v35  ;;  %v3176_v36 = vmul.f32 %v7577_v58, %v7577_v58  ;;  %v3173_v35 = vmul.f32 %v7579_v47, %v7579_v47  ;;  %v3192_v5 = vsub.f32 %v7505_v28, %v7577_v58 }
 0x8d0   : > { %v3124_v62 = vpop.xlane.xlu1 %3123  ;;  %v3158_v55 = vpop.xlane.xlu0 %3157 }
 0x8d1   : > { %v3167_v13 = vmul.f32 0.0078125, %v3158_v55  ;;  %v7588_v61 = vmul.f32 0.0078125, %v3124_v62 }
 0x8d3   : > { %v3183_v2 = vsub.f32 %v3167_v13, %v3175_v54 }
 0x8d4   : > { %v5966_v15 = vpop.eup %5965  ;;  %v3160_v33 = vpop.xlane.xlu1 %3159 }
 0x8d5   : > { %v3154_v7 = vpop.xlane.xlu0 %3153  ;;  %v3199_v8 = vadd.f32 1e-05, %v3183_v2  ;;  %v3168_v45 = vmul.f32 0.0078125, %v3160_v33  ;;  %v3211_v55 = vmul.f32 %v5966_v15, %v3187_v53  ;;  %v3174_v2 = vmul.f32 %v7588_v61, %v7588_v61 }
 0x8d6   : > { %v3165_v31 = vmul.f32 0.0078125, %v3154_v7 }
 0x8d7   : > { %v3184_v20 = vsub.f32 %v3168_v45, %v3176_v36  ;;  %5973 = vrsqrt.f32 %v3199_v8  ;;  %v3225_v44 = vmul.f32 %v7594_v9, %v3211_v55  ;;  %v7604_v45 = vld [vmem:[%s8483_s11] ss:$0 sm:$0xff] }
 0x8d8   : > { %v3181_v52 = vsub.f32 %v3165_v31, %v3173_v35  ;;  %v5968_v54 = vpop.eup %5967  ;;  %v3156_v13 = vpop.xlane.xlu1 %3155 }
 0x8d9   : > { %v3771_v40 = vpop.xlane.xlu0 %3770  ;;  %v5970_v62 = vpop.eup %5969  ;;  %v3200_v33 = vadd.f32 1e-05, %v3184_v20  ;;  %v3166_v35 = vmul.f32 0.0078125, %v3156_v13  ;;  %v3212_v53 = vmul.f32 %v5968_v54, %v3188_v37  ;;  %v3239_v14 = vadd.f32 %v7604_v45, %v3225_v44 }
 0x8da   : > { %v3197_v36 = vadd.f32 1e-05, %v3181_v52  ;;  %v3209_v15 = vmul.f32 %v5970_v62, %v3185_v25  ;;  %v7608_v54 = vmul.f32 0.0078125, %v3771_v40 }
 0x8db   : > { %5975 = vrsqrt.f32 %v3200_v33  ;;  %v3182_v17 = vsub.f32 %v3166_v35, %v3174_v2  ;;  %v3226_v20 = vmul.f32 %v7594_v9, %v3212_v53  ;;  %v3247_v53 = vmax.f32 %v3239_v14, 0.0 }
 0x8dc   : > { %v5972_v56 = vpop.eup %5971  ;;  %5977 = vrsqrt.f32 %v3197_v36  ;;  %v3773_v7 = vpop.xlane.xlu1 %3772  ;;  %v3223_v31 = vmul.f32 %v7594_v9, %v3209_v15  ;;  %v3824_v40 = vmul.f32 %v7608_v54, %v7608_v54  ;;  %v3191_v14 = vsub.f32 %v7500_v12, %v7575_v46 }
 0x8dd   : > { %v3767_v8 = vpop.xlane.xlu0 %3766  ;;  %v3198_v52 = vadd.f32 1e-05, %v3182_v17  ;;  %v3210_v59 = vmul.f32 %v5972_v56, %v3186_v16  ;;  %v3240_v55 = vadd.f32 %v7604_v45, %v3226_v20  ;;  %v7612_v37 = vmul.f32 0.0078125, %v3773_v7 }
 0x8de   : > { %v7614_v25 = vmul.f32 0.0078125, %v3767_v8  ;;  %v3237_v33 = vadd.f32 %v7604_v45, %v3223_v31 }
 0x8df   : > { %5979 = vrsqrt.f32 %v3198_v52  ;;  %v3224_v2 = vmul.f32 %v7594_v9, %v3210_v59  ;;  %v3248_v16 = vmax.f32 %v3240_v55, 0.0  ;;  %v3825_v17 = vmul.f32 %v7612_v37, %v7612_v37 }
 0x8e0   : > { %v3769_v13 = vpop.xlane.xlu1 %3768  ;;  %v3822_v44 = vmul.f32 %v7614_v25, %v7614_v25  ;;  %v3245_v8 = vmax.f32 %v3237_v33, 0.0  ;;  %v3189_v33 = vsub.f32 %v7503_v38, %v7579_v47  ;;  %v3190_v38 = vsub.f32 %v7511_v49, %v7588_v61  ;;  %v5863_v47 = vld [vmem:[#allocation8 + $0x28] sm:$0xff]   ;;  %v5864_v49 = vld [vmem:[#allocation8 + $0x20] sm:$0xff]  }
 0x8e1   : > { %v3803_v62 = vpop.xlane.xlu0 %3802  ;;  %v3238_v35 = vadd.f32 %v7604_v45, %v3224_v2  ;;  %v7625_v52 = vmul.f32 0.0078125, %v3769_v13 }
 0x8e2   : > { %v3816_v36 = vmul.f32 0.0078125, %v3803_v62 }
 0x8e3   : > { %v3246_v20 = vmax.f32 %v3238_v35, 0.0  ;;  %v3823_v12 = vmul.f32 %v7625_v52, %v7625_v52 }
 0x8e4   : > { %v3832_v15 = vsub.f32 %v3816_v36, %v3824_v40  ;;  %v3805_v56 = vpop.xlane.xlu1 %3804  ;;  %v5974_v31 = vpop.eup %5973  ;;  %v3254_v36 = vpack.c.bf16 %v3248_v16, %v3247_v53 }
 0x8e5   : > { %v3799_v7 = vpop.xlane.xlu0 %3798  ;;  %v3817_v62 = vmul.f32 0.0078125, %v3805_v56  ;;  %v3253_v55 = vpack.c.bf16 %v3246_v20, %v3245_v8 }
 0x8e6   : > { %v3848_v59 = vadd.f32 1e-05, %v3832_v15  ;;  %v3814_v0 = vmul.f32 0.0078125, %v3799_v7  ;;  %v3215_v15 = vmul.f32 %v5974_v31, %v3191_v14 }
 0x8e7   : > { %v3833_v2 = vsub.f32 %v3817_v62, %v3825_v17  ;;  %5498 = vmatprep.mubr.bf16.mxu1 %v3253_v55 }
 0x8e8   : > { %v3830_v40 = vsub.f32 %v3814_v0, %v3822_v44  ;;  %v5976_v3 = vpop.eup %5975  ;;  %5981 = vrsqrt.f32 %v3848_v59  ;;  %v3801_v13 = vpop.xlane.xlu1 %3800  ;;  %5499 = vmatmul.mubr.bf16.vlgmr.msra.gmra.mxu1 %v3254_v36  ;;  %v3229_v20 = vmul.f32 %v7594_v9, %v3215_v15 }
 0x8e9   : > { %v3779_v35 = vpop.xlane.xlu0 %3778  ;;  %v5978_v56 = vpop.eup %5977  ;;  %v3849_v46 = vadd.f32 1e-05, %v3833_v2  ;;  %v3815_v53 = vmul.f32 0.0078125, %v3801_v13  ;;  %5531 = vmatpush3.bf16.msra.mxu1 %v7554_v32  ;;  %v3216_v28 = vmul.f32 %v5976_v3, %v3192_v5 }
 0x8ea   : > { %v3846_v0 = vadd.f32 1e-05, %v3830_v40  ;;  %v3213_v16 = vmul.f32 %v5978_v56, %v3189_v33  ;;  %5532 = vmatprep.subr.bf16.mxu1 %v5862_v50  ;;  %v7643_v5 = vmul.f32 0.0078125, %v3779_v35  ;;  %v3243_v40 = vadd.f32 %v7604_v45, %v3229_v20 }
 0x8eb   : > { %5983 = vrsqrt.f32 %v3849_v46  ;;  %v3831_v58 = vsub.f32 %v3815_v53, %v3823_v12  ;;  %v3230_v31 = vmul.f32 %v7594_v9, %v3216_v28 }
 0x8ec   : > { %v5980_v17 = vpop.eup %5979  ;;  %5985 = vrsqrt.f32 %v3846_v0  ;;  %v3781_v44 = vpop.xlane.xlu1 %3780  ;;  %v3227_v8 = vmul.f32 %v7594_v9, %v3213_v16  ;;  %v3828_v35 = vmul.f32 %v7643_v5, %v7643_v5  ;;  %v3251_v28 = vmax.f32 %v3243_v40, 0.0  ;;  %v5129_v40 = vld [vmem:[%s8476_s4] ss:$0 sm:$0xff] }
 0x8ed   : > { %v3775_v7 = vpop.xlane.xlu0 %3774  ;;  %v3847_v32 = vadd.f32 1e-05, %v3831_v58  ;;  %v3214_v3 = vmul.f32 %v5980_v17, %v3190_v38  ;;  %5533 = vmatpush3.bf16.msra.mxu1 %v5862_v50  ;;  %v3244_v61 = vadd.f32 %v7604_v45, %v3230_v31  ;;  %v7656_v12 = vmul.f32 0.0078125, %v3781_v44 }
 0x8ee   : > { %v7641_v59 = vmul.f32 0.0078125, %v3775_v7  ;;  %5534 = vmatprep.subr.bf16.mxu1 %v5863_v47  ;;  %v3241_v2 = vadd.f32 %v7604_v45, %v3227_v8  ;;  %v3840_v7 = vsub.f32 %v7520_v57, %v7608_v54  ;;  %v3841_v8 = vsub.f32 %v7525_v48, %v7612_v37 }
 0x8ef   : > { %5987 = vrsqrt.f32 %v3847_v32  ;;  %v3228_v55 = vmul.f32 %v7594_v9, %v3214_v3  ;;  %v3252_v56 = vmax.f32 %v3244_v61, 0.0  ;;  %v5865_v9 = vld [vmem:[#allocation8 + $0x18] sm:$0xff]   ;;  %v5866_v3 = vld [vmem:[#allocation8 + $0x10] sm:$0xff]  }
 0x8f0   : > { %v3777_v62 = vpop.xlane.xlu1 %3776  ;;  %v3826_v36 = vmul.f32 %v7641_v59, %v7641_v59  ;;  %v3249_v53 = vmax.f32 %v3241_v2, 0.0 }
 0x8f1   : > { %v3807_v14 = vpop.xlane.xlu0 %3806  ;;  %v7651_v33 = vmul.f32 0.0078125, %v3777_v62  ;;  %5535 = vmatpush3.bf16.msra.mxu1 %v5863_v47  ;;  %v3242_v13 = vadd.f32 %v7604_v45, %v3228_v55  ;;  %v3256_v32 = vpack.c.bf16 %v3252_v56, %v3251_v28  ;;  %v3838_v62 = vsub.f32 %v7523_v19, %v7614_v25 }
 0x8f2   : > { %v3818_v50 = vmul.f32 0.0078125, %v3807_v14  ;;  %5536 = vmatprep.subr.bf16.mxu1 %v5864_v49  ;;  %v3829_v14 = vmul.f32 %v7656_v12, %v7656_v12  ;;  %v3839_v19 = vsub.f32 %v7531_v60, %v7625_v52 }
 0x8f3   : > { %v3250_v16 = vmax.f32 %v3242_v13, 0.0  ;;  %v3827_v58 = vmul.f32 %v7651_v33, %v7651_v33 }
 0x8f4   : > { %v3834_v15 = vsub.f32 %v3818_v50, %v3826_v36  ;;  %v3809_v46 = vpop.xlane.xlu1 %3808  ;;  %v5867_v50 = vld [vmem:[#allocation8 + $0x8] sm:$0xff]  }
 0x8f5   : > { %v3811_v0 = vpop.xlane.xlu0 %3810  ;;  %v5982_v38 = vpop.eup %5981  ;;  %v3819_v45 = vmul.f32 0.0078125, %v3809_v46  ;;  %5537 = vmatpush3.bf16.msra.mxu1 %v5864_v49  ;;  %v3255_v44 = vpack.c.bf16 %v3250_v16, %v3249_v53  ;;  %v5868_v53 = vld [vmem:[#allocation8] sm:$0xff]  }
 0x8f6   : > { %v3850_v47 = vadd.f32 1e-05, %v3834_v15  ;;  %v3820_v17 = vmul.f32 0.0078125, %v3811_v0  ;;  %5538 = vmatprep.subr.bf16.mxu1 %v5865_v9  ;;  %v3864_v54 = vmul.f32 %v5982_v38, %v3840_v7 }
 0x8f7   : > { %v3835_v20 = vsub.f32 %v3819_v45, %v3827_v58  ;;  %5502 = vmatprep.mubr.bf16.mxu1 %v3255_v44  ;;  %v3842_v58 = vsub.f32 %v7542_v11, %v7641_v59 }
 0x8f8   : > { %5989 = vrsqrt.f32 %v3850_v47  ;;  %v3836_v31 = vsub.f32 %v3820_v17, %v3828_v35  ;;  %v5984_v61 = vpop.eup %5983  ;;  %v3813_v57 = vpop.xlane.xlu1 %3812  ;;  %5503 = vmatmul.mubr.bf16.gmra.mxu1 %v3256_v32  ;;  %v3878_v0 = vmul.f32 %v5129_v40, %v3864_v54 }
 0x8f9   : > { %v5986_v55 = vpop.eup %5985  ;;  %v3851_v48 = vadd.f32 1e-05, %v3835_v20  ;;  %v3821_v49 = vmul.f32 0.0078125, %v3813_v57  ;;  %v3865_v2 = vmul.f32 %v5984_v61, %v3841_v8  ;;  %5539 = vmatpush3.bf16.msra.mxu1 %v5865_v9  ;;  %v5130_v9 = vld [vmem:[%s8477_s5] ss:$0 sm:$0xff]  ;;  %v3845_v57 = vsub.f32 %v7545_v4, %v7656_v12 }
 0x8fa   : > { %v3852_v37 = vadd.f32 1e-05, %v3836_v31  ;;  %v3862_v36 = vmul.f32 %v5986_v55, %v3838_v62  ;;  %5540 = vmatprep.subr.bf16.mxu1 %v5866_v3  ;;  %v3892_v38 = vadd.f32 %v5130_v9, %v3878_v0  ;;  %v3843_v31 = vsub.f32 %v7551_v10, %v7651_v33 }
 0x8fb   : > { %5991 = vrsqrt.f32 %v3851_v48  ;;  %v3837_v25 = vsub.f32 %v3821_v49, %v3829_v14  ;;  %v3879_v13 = vmul.f32 %v5129_v40, %v3865_v2  ;;  %v3844_v62 = vsub.f32 %v7538_v1, %v7643_v5 }
 0x8fc   : > { %v5988_v35 = vpop.eup %5987  ;;  %5993 = vrsqrt.f32 %v3852_v37  ;;  %v3876_v15 = vmul.f32 %v5129_v40, %v3862_v36  ;;  %v3900_v44 = vmax.f32 %v3892_v38, 0.0 }
 0x8fd   : > { %v3853_v56 = vadd.f32 1e-05, %v3837_v25  ;;  %v3863_v46 = vmul.f32 %v5988_v35, %v3839_v19  ;;  %5541 = vmatpush3.bf16.msra.mxu1 %v5866_v3  ;;  %v3893_v16 = vadd.f32 %v5130_v9, %v3879_v13 }
 0x8fe   : > { %5542 = vmatprep.subr.bf16.mxu1 %v5867_v50  ;;  %v3890_v52 = vadd.f32 %v5130_v9, %v3876_v15 }
 0x8ff   : > { %5995 = vrsqrt.f32 %v3853_v56  ;;  %v3877_v60 = vmul.f32 %v5129_v40, %v3863_v46  ;;  %v3901_v17 = vmax.f32 %v3893_v16, 0.0 }
 0x900   : > { %v3898_v47 = vmax.f32 %v3890_v52, 0.0 }
 0x901   : > { %v3891_v28 = vadd.f32 %v5130_v9, %v3877_v60  ;;  %5543 = vmatpush3.bf16.msra.mxu1 %v5867_v50  ;;  %v3907_v32 = vpack.c.bf16 %v3901_v17, %v3900_v44 }
 0x902   : > { %5544 = vmatprep.subr.bf16.mxu1 %v5868_v53 }
 0x903   : > { %v3899_v45 = vmax.f32 %v3891_v28, 0.0 }
 0x905   : > { %v5990_v7 = vpop.eup %5989  ;;  %v3906_v8 = vpack.c.bf16 %v3899_v45, %v3898_v47  ;;  %5545 = vmatpush3.bf16.msra.mxu1 %v5868_v53 }
 0x906   : > { %v3866_v20 = vmul.f32 %v5990_v7, %v3842_v58 }
 0x907   : > { %5546 = vmatprep.mubr.bf16.mxu1 %v3906_v8 }
 0x908   : > { %v3880_v3 = vmul.f32 %v5129_v40, %v3866_v20  ;;  %v5992_v61 = vpop.eup %5991  ;;  %5547 = vmatmul.mubr.bf16.vlgmr.msra.gmra.mxu1 %v3907_v32 }
 0x909   : > { %v5994_v11 = vpop.eup %5993  ;;  %v3867_v59 = vmul.f32 %v5992_v61, %v3843_v31  ;;  %v5871_v61 = vld [vmem:[%s8481_s9 + $0x28] sm:$0xff]  }
 0x90a   : > { %v3868_v14 = vmul.f32 %v5994_v11, %v3844_v62  ;;  %v3894_v55 = vadd.f32 %v5130_v9, %v3880_v3  ;;  %v5872_v62 = vld [vmem:[%s8481_s9 + $0x20] sm:$0xff]   ;;  %v5873_v11 = vld [vmem:[%s8481_s9 + $0x18] sm:$0xff]  }
 0x90b   : > { %v3881_v54 = vmul.f32 %v5129_v40, %v3867_v59  ;;  %v5874_v59 = vld [vmem:[%s8481_s9 + $0x10] sm:$0xff]  }
 0x90c   : > { %v5996_v48 = vpop.eup %5995  ;;  %v3882_v37 = vmul.f32 %v5129_v40, %v3868_v14  ;;  %v3902_v33 = vmax.f32 %v3894_v55, 0.0  ;;  %v5875_v14 = vld [vmem:[%s8481_s9 + $0x8] sm:$0xff]  }
 0x90d   : > { %v3895_v49 = vadd.f32 %v5130_v9, %v3881_v54  ;;  %v3869_v10 = vmul.f32 %v5996_v48, %v3845_v57  ;;  %v5876_v57 = vld [vmem:[%s8481_s9] sm:$0xff]  }
 0x90e   : > { %v3896_v19 = vadd.f32 %v5130_v9, %v3882_v37 }
 0x90f   : > { %v3903_v2 = vmax.f32 %v3895_v49, 0.0  ;;  %v3883_v36 = vmul.f32 %v5129_v40, %v3869_v10 }
 0x910   : > { %v3904_v1 = vmax.f32 %v3896_v19, 0.0 }
 0x911   : > { %v3908_v25 = vpack.c.bf16 %v3903_v2, %v3902_v33  ;;  %v3897_v50 = vadd.f32 %v5130_v9, %v3883_v36 }
 0x913   : > { %5550 = vmatprep.mubr.bf16.mxu1 %v3908_v25  ;;  %v3905_v5 = vmax.f32 %v3897_v50, 0.0 }
 0x915   : > { %v3909_v13 = vpack.c.bf16 %v3905_v5, %v3904_v1 }
 0x917   : > { %5551 = vmatmul.mubr.bf16.gmra.mxu1 %v3909_v13 }
 0x9a8   : > { %v7684_v35 = vpop.f32.mrf.mxu1 }
 0x9aa   : > { %v7686_v4 = vpop.f32.mrf.mxu1 }
 0x9ac   : > { %v7688_v12 = vpop.f32.mrf.mxu1 }
 0x9ae   : > { %v7690_v15 = vpop.f32.mrf.mxu1 }
 0x9b8   : > { %v7692_v56 = vpop.f32.mrf.mxu1 }
 0x9ba   : > { %v7694_v46 = vpop.f32.mrf.mxu1 }
 0x9bc   : > { %v7696_v40 = vpop.f32.mrf.mxu1 }
 0x9be   : > { %v7698_v0 = vpop.f32.mrf.mxu1 }
 0x9c8   : > { %v5548_v9 = vpop.f32.mrf.mxu1 }
 0x9c9   : > { %v7701_v53 = vadd.f32 %v5548_v9, %v6840_v18 }
 0x9ca   : > { %v4008_v60 = vpop.f32.mrf.mxu1 }
 0x9cb   : > { %4045 = vadd.xlane.f32.xlu0 %v7701_v53  ;;  %v7705_v16 = vadd.f32 %v4008_v60, %v6845_v21  ;;  %v4067_v18 = vmul.f32 %v7701_v53, %v7701_v53 }
 0x9cc   : > { %v5549_v52 = vpop.f32.mrf.mxu1 }
 0x9cd   : > { %v7708_v28 = vadd.f32 %v5549_v52, %v6847_v22  ;;  %v4065_v22 = vmul.f32 %v7705_v16, %v7705_v16 }
 0x9ce   : > { %v4011_v38 = vpop.f32.mrf.mxu1 }
 0x9cf   : > { %4047 = vadd.xlane.f32.xlu1 %v7708_v28  ;;  %4041 = vadd.xlane.f32.xlu0 %v7705_v16  ;;  %v7713_v58 = vadd.f32 %v4011_v38, %v6856_v23  ;;  %v4068_v21 = vmul.f32 %v7708_v28, %v7708_v28 }
 0x9d1   : > { %v4066_v17 = vmul.f32 %v7713_v58, %v7713_v58 }
 0x9d3   : > { %4043 = vadd.xlane.f32.xlu1 %v7713_v58  ;;  %4077 = vadd.xlane.f32.xlu0 %v4067_v18 }
 0x9d7   : > { %v5552_v47 = vpop.f32.mrf.mxu1  ;;  %4079 = vadd.xlane.f32.xlu1 %v4068_v21  ;;  %4073 = vadd.xlane.f32.xlu0 %v4065_v22 }
 0x9d8   : > { %v7723_v45 = vadd.f32 %v5552_v47, %v6875_v34 }
 0x9d9   : > { %v4024_v23 = vpop.f32.mrf.mxu1 }
 0x9da   : > { %v7732_v44 = vadd.f32 %v4024_v23, %v6885_v41  ;;  %v4071_v32 = vmul.f32 %v7723_v45, %v7723_v45 }
 0x9db   : > { %v5553_v7 = vpop.f32.mrf.mxu1  ;;  %4075 = vadd.xlane.f32.xlu1 %v4066_v17  ;;  %4053 = vadd.xlane.f32.xlu0 %v7723_v45 }
 0x9dc   : > { %v7729_v8 = vadd.f32 %v5553_v7, %v6887_v30  ;;  %v4069_v31 = vmul.f32 %v7732_v44, %v7732_v44  ;;  %v5869_v30 = vld [vmem:[%s8481_s9 + $0x38] sm:$0xff]  }
 0x9dd   : > { %v4027_v20 = vpop.f32.mrf.mxu1  ;;  %5554 = vmatprep.subr.bf16.mxu0 %v5869_v30 }
 0x9de   : > { %v7737_v34 = vadd.f32 %v4027_v20, %v6903_v51  ;;  %5555 = vmatpush3.bf16.msra.mxu0 %v5869_v30  ;;  %v5870_v51 = vld [vmem:[%s8481_s9 + $0x30] sm:$0xff]   ;;  %v4072_v3 = vmul.f32 %v7729_v8, %v7729_v8 }
 0x9df   : > { %4055 = vadd.xlane.f32.xlu1 %v7729_v8  ;;  %4049 = vadd.xlane.f32.xlu0 %v7732_v44 }
 0x9e0   : > { %v4070_v41 = vmul.f32 %v7737_v34, %v7737_v34  ;;  %5556 = vmatprep.subr.bf16.mxu0 %v5870_v51 }
 0x9e2   : > { %5557 = vmatpush3.bf16.msra.mxu0 %v5870_v51 }
 0x9e3   : > { %4051 = vadd.xlane.f32.xlu1 %v7737_v34  ;;  %4081 = vadd.xlane.f32.xlu0 %v4069_v31 }
 0x9e4   : > { %5558 = vmatprep.subr.bf16.mxu0 %v5871_v61 }
 0x9e6   : > { %5559 = vmatpush3.bf16.msra.mxu0 %v5871_v61 }
 0x9e7   : > { %4083 = vadd.xlane.f32.xlu1 %v4070_v41  ;;  %4085 = vadd.xlane.f32.xlu0 %v4071_v32 }
 0x9e8   : > { %5560 = vmatprep.subr.bf16.mxu0 %v5872_v62 }
 0x9ea   : > { %5561 = vmatpush3.bf16.msra.mxu0 %v5872_v62 }
 0x9eb   : > { %4087 = vadd.xlane.f32.xlu1 %v4072_v3  ;;  %5562 = vmatprep.subr.bf16.mxu0 %v5873_v11 }
 0x9ee   : > { %5563 = vmatpush3.bf16.msra.mxu0 %v5873_v11 }
 0x9ef   : > { %5564 = vmatprep.subr.bf16.mxu0 %v5874_v59 }
 0x9f2   : > { %5565 = vmatpush3.bf16.msra.mxu0 %v5874_v59 }
 0x9f3   : > { %5566 = vmatprep.subr.bf16.mxu0 %v5875_v14 }
 0x9f6   : > { %5567 = vmatpush3.bf16.msra.mxu0 %v5875_v14 }
 0x9f7   : > { %5568 = vmatprep.subr.bf16.mxu0 %v5876_v57 }
 0x9fa   : > { %5569 = vmatpush3.bf16.msra.mxu0 %v5876_v57 }
 0xa54   : > { %v4046_v54 = vpop.xlane.xlu0 %4045 }
 0xa55   : > { %v4059_v37 = vmul.f32 0.0078125, %v4046_v54 }
 0xa57   : > { %v4099_v36 = vmul.f32 %v4059_v37, %v4059_v37 }
 0xa58   : > { %v4048_v55 = vpop.xlane.xlu1 %4047  ;;  %v4042_v48 = vpop.xlane.xlu0 %4041 }
 0xa59   : > { %v7772_v49 = vmul.f32 0.0078125, %v4048_v55  ;;  %v7774_v10 = vmul.f32 0.0078125, %v4042_v48 }
 0xa5b   : > { %v4100_v50 = vmul.f32 %v7772_v49, %v7772_v49  ;;  %v4097_v1 = vmul.f32 %v7774_v10, %v7774_v10 }
 0xa5c   : > { %v4044_v33 = vpop.xlane.xlu1 %4043  ;;  %v4078_v2 = vpop.xlane.xlu0 %4077 }
 0xa5d   : > { %v4091_v19 = vmul.f32 0.0078125, %v4078_v2  ;;  %v7780_v9 = vmul.f32 0.0078125, %v4044_v33 }
 0xa5f   : > { %v4107_v25 = vsub.f32 %v4091_v19, %v4099_v36  ;;  %v4098_v23 = vmul.f32 %v7780_v9, %v7780_v9 }
 0xa60   : > { %v4080_v5 = vpop.xlane.xlu1 %4079  ;;  %v4074_v13 = vpop.xlane.xlu0 %4073 }
 0xa61   : > { %v4123_v60 = vadd.f32 1e-05, %v4107_v25  ;;  %v4092_v52 = vmul.f32 0.0078125, %v4080_v5  ;;  %v4089_v38 = vmul.f32 0.0078125, %v4074_v13  ;;  %v4116_v5 = vsub.f32 %v7708_v28, %v7772_v49 }
 0xa63   : > { %v4108_v18 = vsub.f32 %v4092_v52, %v4100_v50  ;;  %v4105_v21 = vsub.f32 %v4089_v38, %v4097_v1  ;;  %5997 = vrsqrt.f32 %v4123_v60  ;;  %v4115_v1 = vsub.f32 %v7701_v53, %v4059_v37 }
 0xa64   : > { %v4076_v22 = vpop.xlane.xlu1 %4075  ;;  %v4054_v47 = vpop.xlane.xlu0 %4053  ;;  %v4113_v38 = vsub.f32 %v7705_v16, %v7774_v10 }
 0xa65   : > { %v4124_v17 = vadd.f32 1e-05, %v4108_v18  ;;  %v4121_v7 = vadd.f32 1e-05, %v4105_v21  ;;  %v4090_v20 = vmul.f32 0.0078125, %v4076_v22  ;;  %v7784_v3 = vmul.f32 0.0078125, %v4054_v47 }
 0xa66   : > { %v5139_v22 = vld [vmem:[%s8479_s7] ss:$0 sm:$0xff] }
 0xa67   : > { %5999 = vrsqrt.f32 %v4124_v17  ;;  %v4106_v31 = vsub.f32 %v4090_v20, %v4098_v23  ;;  %v4103_v54 = vmul.f32 %v7784_v3, %v7784_v3 }
 0xa68   : > { %6001 = vrsqrt.f32 %v4121_v7  ;;  %v4056_v30 = vpop.xlane.xlu1 %4055  ;;  %v4050_v41 = vpop.xlane.xlu0 %4049  ;;  %v4114_v7 = vsub.f32 %v7713_v58, %v7780_v9 }
 0xa69   : > { %v4122_v32 = vadd.f32 1e-05, %v4106_v31  ;;  %v4061_v51 = vmul.f32 0.0078125, %v4050_v41  ;;  %v7790_v55 = vmul.f32 0.0078125, %v4056_v30 }
 0xa6b   : > { %6003 = vrsqrt.f32 %v4122_v32  ;;  %v4101_v11 = vmul.f32 %v4061_v51, %v4061_v51  ;;  %v4104_v18 = vmul.f32 %v7790_v55, %v7790_v55  ;;  %v5140_v32 = vld [vmem:[%s8480_s8] ss:$0 sm:$0xff] }
 0xa6c   : > { %v4052_v61 = vpop.xlane.xlu1 %4051  ;;  %v4082_v62 = vpop.xlane.xlu0 %4081 }
 0xa6d   : > { %v7786_v59 = vmul.f32 0.0078125, %v4052_v61  ;;  %v4093_v14 = vmul.f32 0.0078125, %v4082_v62 }
 0xa6f   : > { %v4109_v57 = vsub.f32 %v4093_v14, %v4101_v11  ;;  %v4102_v36 = vmul.f32 %v7786_v59, %v7786_v59 }
 0xa70   : > { %v4084_v48 = vpop.xlane.xlu1 %4083  ;;  %v4086_v33 = vpop.xlane.xlu0 %4085 }
 0xa71   : > { %v5998_v2 = vpop.eup %5997  ;;  %v4125_v19 = vadd.f32 1e-05, %v4109_v57  ;;  %v4094_v25 = vmul.f32 0.0078125, %v4084_v48  ;;  %v4095_v50 = vmul.f32 0.0078125, %v4086_v33 }
 0xa72   : > { %v4139_v47 = vmul.f32 %v5998_v2, %v4115_v1 }
 0xa73   : > { %6005 = vrsqrt.f32 %v4125_v19  ;;  %v4110_v13 = vsub.f32 %v4094_v25, %v4102_v36  ;;  %v4111_v60 = vsub.f32 %v4095_v50, %v4103_v54  ;;  %v4117_v54 = vsub.f32 %v7732_v44, %v4061_v51 }
 0xa74   : > { %v6000_v52 = vpop.eup %5999  ;;  %v4088_v21 = vpop.xlane.xlu1 %4087  ;;  %v4153_v30 = vmul.f32 %v5139_v22, %v4139_v47  ;;  %v4118_v44 = vsub.f32 %v7737_v34, %v7786_v59 }
 0xa75   : > { %v6002_v53 = vpop.eup %6001  ;;  %v4126_v37 = vadd.f32 1e-05, %v4110_v13  ;;  %v4127_v23 = vadd.f32 1e-05, %v4111_v60  ;;  %v4096_v28 = vmul.f32 0.0078125, %v4088_v21  ;;  %v4140_v49 = vmul.f32 %v6000_v52, %v4116_v5 }
 0xa76   : > { %v4137_v17 = vmul.f32 %v6002_v53, %v4113_v38  ;;  %v7813_v58 = vadd.f32 %v5140_v32, %v4153_v30  ;;  %v4119_v5 = vsub.f32 %v7723_v45, %v7784_v3  ;;  %v4120_v38 = vsub.f32 %v7729_v8, %v7790_v55 }
 0xa77   : > { %6007 = vrsqrt.f32 %v4126_v37  ;;  %v4112_v16 = vsub.f32 %v4096_v28, %v4104_v18  ;;  %v4154_v10 = vmul.f32 %v5139_v22, %v4140_v49 }
 0xa78   : > { %v6004_v20 = vpop.eup %6003  ;;  %6009 = vrsqrt.f32 %v4127_v23  ;;  %v4151_v31 = vmul.f32 %v5139_v22, %v4137_v17  ;;  %v4175_v36 = vmax.f32 %v7813_v58, 0.0 }
 0xa79   : > { %v4128_v41 = vadd.f32 1e-05, %v4112_v16  ;;  %v4138_v61 = vmul.f32 %v6004_v20, %v4114_v7  ;;  %v7809_v62 = vadd.f32 %v5140_v32, %v4154_v10 }
 0xa7a   : > { %v7811_v14 = vadd.f32 %v5140_v32, %v4151_v31 }
 0xa7b   : > { %6011 = vrsqrt.f32 %v4128_v41  ;;  %v4152_v11 = vmul.f32 %v5139_v22, %v4138_v61  ;;  %v8538_v57 = vmax.f32 %v7809_v62, 0.0 }
 0xa7c   : > { %v8539_v48 = vmax.f32 %v7811_v14, 0.0  ;;  %v8609_v58 = vmax.f32 %v7811_v14, 0.0 }
 0xa7d   : > { %v7815_v9 = vadd.f32 %v5140_v32, %v4152_v11  ;;  %v4182_v50 = vpack.c.bf16 %v8538_v57, %v4175_v36 }
 0xa7f   : > { %v8537_v33 = vmax.f32 %v7815_v9, 0.0 }
 0xa80   : > { %v6006_v2 = vpop.eup %6005 }
 0xa81   : > { %v4181_v19 = vpack.c.bf16 %v8537_v33, %v8539_v48  ;;  %v4141_v25 = vmul.f32 %v6006_v2, %v4117_v54  ;;  %v5149_v33 = vld [vmem:[#allocation9] ss:$0 sm:$0xff] }
 0xa83   : > { %5570 = vmatprep.mubr.bf16.mxu0 %v4181_v19  ;;  %v4155_v51 = vmul.f32 %v5139_v22, %v4141_v25  ;;  %v5877_v19 = vld [vmem:[#allocation11 + $0x38] sm:$0xff]  }
 0xa84   : > { %v6008_v1 = vpop.eup %6007  ;;  %5571 = vmatmul.mubr.bf16.vlgmr.msra.gmra.mxu0 %v4182_v50  ;;  %5578 = vmatprep.subr.bf16.mxu0 %v5877_v19 }
 0xa85   : > { %v6010_v13 = vpop.eup %6009  ;;  %v4142_v60 = vmul.f32 %v6008_v1, %v4118_v44  ;;  %v7836_v21 = vadd.f32 %v5140_v32, %v4155_v51  ;;  %5602 = vmatprep.subr.bf16.mxu1 %v5877_v19  ;;  %5579 = vmatpush3.bf16.msra.mxu0 %v5877_v19  ;;  %v5878_v44 = vld [vmem:[#allocation11 + $0x30] sm:$0xff]   ;;  %v5879_v1 = vld [vmem:[#allocation11 + $0x28] sm:$0xff]  }
 0xa86   : > { %v4143_v52 = vmul.f32 %v6010_v13, %v4119_v5  ;;  %5610 = vmatpush3.bf16.msra.mxu1 %v5877_v19  ;;  %5580 = vmatprep.subr.bf16.mxu0 %v5878_v44  ;;  %v5880_v5 = vld [vmem:[#allocation11 + $0x20] sm:$0xff]   ;;  %v5881_v13 = vld [vmem:[#allocation11 + $0x18] sm:$0xff]   ;;  %v3416_v19 = vmul.f32 %v7694_v46, %v7694_v46 }
 0xa87   : > { %v4156_v18 = vmul.f32 %v5139_v22, %v4142_v60  ;;  %v8535_v59 = vmax.f32 %v7836_v21, 0.0  ;;  %5603 = vmatprep.subr.bf16.mxu1 %v5878_v44  ;;  %v5882_v60 = vld [vmem:[#allocation11 + $0x10] sm:$0xff]  }
 0xa88   : > { %v6012_v47 = vpop.eup %6011  ;;  %v4157_v53 = vmul.f32 %v5139_v22, %v4143_v52  ;;  %v5883_v52 = vld [vmem:[#allocation11 + $0x8] sm:$0xff]  }
 0xa89   : > { %v7838_v37 = vadd.f32 %v5140_v32, %v4156_v18  ;;  %v4144_v34 = vmul.f32 %v6012_v47, %v4120_v38  ;;  %5581 = vmatpush3.bf16.msra.mxu0 %v5878_v44  ;;  %v5884_v38 = vld [vmem:[#allocation11] sm:$0xff]   ;;  %v2209_v18 = vmul.f32 %v7282_v63, %v7282_v63  ;;  %v2211_v47 = vmul.f32 %v7280_v39, %v7280_v39 }
 0xa8a   : > { %v7842_v3 = vadd.f32 %v5140_v32, %v4157_v53  ;;  %5611 = vmatpush3.bf16.msra.mxu1 %v5878_v44  ;;  %5582 = vmatprep.subr.bf16.mxu0 %v5879_v1  ;;  %v2210_v53 = vmul.f32 %v7286_v29, %v7286_v29  ;;  %v3419_v44 = vmul.f32 %v7696_v40, %v7696_v40 }
 0xa8b   : > { %v8533_v23 = vmax.f32 %v7838_v37, 0.0  ;;  %v4158_v45 = vmul.f32 %v5139_v22, %v4144_v34  ;;  %5604 = vmatprep.subr.bf16.mxu1 %v5879_v1  ;;  %v2212_v34 = vmul.f32 %v7284_v27, %v7284_v27 }
 0xa8c   : > { %v8536_v28 = vmax.f32 %v7842_v3, 0.0 }
 0xa8d   : > { %v4183_v8 = vpack.c.bf16 %v8533_v23, %v8535_v59  ;;  %v7848_v55 = vadd.f32 %v5140_v32, %v4158_v45  ;;  %5583 = vmatpush3.bf16.msra.mxu0 %v5879_v1  ;;  %v2213_v45 = vmul.f32 %v7290_v26, %v7290_v26 }
 0xa8e   : > { %5612 = vmatpush3.bf16.msra.mxu1 %v5879_v1  ;;  %5584 = vmatprep.subr.bf16.mxu0 %v5880_v5 }
 0xa8f   : > { %5574 = vmatprep.mubr.bf16.mxu0 %v4183_v8  ;;  %v8534_v49 = vmax.f32 %v7848_v55, 0.0  ;;  %5605 = vmatprep.subr.bf16.mxu1 %v5880_v5  ;;  %v2215_v8 = vmul.f32 %v7288_v24, %v7288_v24 }
 0xa91   : > { %v4184_v17 = vpack.c.bf16 %v8534_v49, %v8536_v28  ;;  %5585 = vmatpush3.bf16.msra.mxu0 %v5880_v5 }
 0xa92   : > { %5613 = vmatpush3.bf16.msra.mxu1 %v5880_v5  ;;  %5586 = vmatprep.subr.bf16.mxu0 %v5881_v13 }
 0xa93   : > { %5575 = vmatmul.mubr.bf16.gmra.mxu0 %v4184_v17  ;;  %5606 = vmatprep.subr.bf16.mxu1 %v5881_v13  ;;  %v2214_v17 = vmul.f32 %v7294_v6, %v7294_v6 }
 0xa95   : > { %5587 = vmatpush3.bf16.msra.mxu0 %v5881_v13 }
 0xa96   : > { %5614 = vmatpush3.bf16.msra.mxu1 %v5881_v13  ;;  %5588 = vmatprep.subr.bf16.mxu0 %v5882_v60 }
 0xa97   : > { %5607 = vmatprep.subr.bf16.mxu1 %v5882_v60 }
 0xa99   : > { %5589 = vmatpush3.bf16.msra.mxu0 %v5882_v60 }
 0xa9a   : > { %5615 = vmatpush3.bf16.msra.mxu1 %v5882_v60  ;;  %5590 = vmatprep.subr.bf16.mxu0 %v5883_v52 }
 0xa9b   : > { %5608 = vmatprep.subr.bf16.mxu1 %v5883_v52 }
 0xa9d   : > { %5591 = vmatpush3.bf16.msra.mxu0 %v5883_v52 }
 0xa9e   : > { %5616 = vmatpush3.bf16.msra.mxu1 %v5883_v52  ;;  %5592 = vmatprep.subr.bf16.mxu0 %v5884_v38 }
 0xa9f   : > { %5609 = vmatprep.subr.bf16.mxu1 %v5884_v38 }
 0xaa1   : > { %5593 = vmatpush3.bf16.msra.mxu0 %v5884_v38 }
 0xaa2   : > { %5617 = vmatpush3.bf16.msra.mxu1 %v5884_v38 }
 0xb44   : > { %v7856_v22 = vpop.f32.mrf.mxu0 }
 0xb45   : > { %4320 = vadd.xlane.f32.xlu0 %v7856_v22  ;;  %v4342_v10 = vmul.f32 %v7856_v22, %v7856_v22 }
 0xb46   : > { %v7859_v7 = vpop.f32.mrf.mxu0 }
 0xb47   : > { %v4340_v31 = vmul.f32 %v7859_v7, %v7859_v7 }
 0xb48   : > { %v7861_v16 = vpop.f32.mrf.mxu0 }
 0xb49   : > { %4316 = vadd.xlane.f32.xlu0 %v7859_v7  ;;  %4322 = vadd.xlane.f32.xlu1 %v7861_v16  ;;  %v4343_v30 = vmul.f32 %v7861_v16, %v7861_v16 }
 0xb4a   : > { %v7867_v20 = vpop.f32.mrf.mxu0 }
 0xb4b   : > { %v4341_v41 = vmul.f32 %v7867_v20, %v7867_v20 }
 0xb4d   : > { %4352 = vadd.xlane.f32.xlu0 %v4342_v10  ;;  %4318 = vadd.xlane.f32.xlu1 %v7867_v20  ;;  %v2216_v10 = vmul.f32 %v7292_v42, %v7292_v42 }
 0xb51   : > { %4348 = vadd.xlane.f32.xlu0 %v4340_v31  ;;  %4354 = vadd.xlane.f32.xlu1 %v4343_v30  ;;  %v3412_v31 = vmul.f32 %v7686_v4, %v7686_v4  ;;  %v3414_v30 = vmul.f32 %v7684_v35, %v7684_v35 }
 0xb53   : > { %v7876_v32 = vpop.f32.mrf.mxu0 }
 0xb54   : > { %v4346_v25 = vmul.f32 %v7876_v32, %v7876_v32 }
 0xb55   : > { %4350 = vadd.xlane.f32.xlu1 %v4341_v41  ;;  %4328 = vadd.xlane.f32.xlu0 %v7876_v32  ;;  %v7879_v61 = vpop.f32.mrf.mxu0  ;;  %v3413_v41 = vmul.f32 %v7690_v15, %v7690_v15 }
 0xb56   : > { %v4344_v54 = vmul.f32 %v7879_v61, %v7879_v61 }
 0xb57   : > { %v7881_v11 = vpop.f32.mrf.mxu0 }
 0xb58   : > { %v4347_v51 = vmul.f32 %v7881_v11, %v7881_v11 }
 0xb59   : > { %4324 = vadd.xlane.f32.xlu0 %v7879_v61  ;;  %4330 = vadd.xlane.f32.xlu1 %v7881_v11  ;;  %v7887_v2 = vpop.f32.mrf.mxu0 }
 0xb5a   : > { %v4345_v50 = vmul.f32 %v7887_v2, %v7887_v2 }
 0xb5d   : > { %4356 = vadd.xlane.f32.xlu0 %v4344_v54  ;;  %4326 = vadd.xlane.f32.xlu1 %v7887_v2  ;;  %v3415_v54 = vmul.f32 %v7688_v12, %v7688_v12 }
 0xb61   : > { %4360 = vadd.xlane.f32.xlu0 %v4346_v25  ;;  %4358 = vadd.xlane.f32.xlu1 %v4345_v50  ;;  %v3418_v25 = vmul.f32 %v7692_v56, %v7692_v56  ;;  %v3417_v50 = vmul.f32 %v7698_v0, %v7698_v0 }
 0xb65   : > { %2185 = vadd.xlane.f32.xlu0 %v7282_v63  ;;  %4362 = vadd.xlane.f32.xlu1 %v4347_v51 }
 0xb69   : > { %2189 = vadd.xlane.f32.xlu0 %v7280_v39  ;;  %2187 = vadd.xlane.f32.xlu1 %v7286_v29 }
 0xb6d   : > { %2193 = vadd.xlane.f32.xlu0 %v7290_v26  ;;  %2191 = vadd.xlane.f32.xlu1 %v7284_v27 }
 0xb71   : > { %2197 = vadd.xlane.f32.xlu0 %v7288_v24  ;;  %2195 = vadd.xlane.f32.xlu1 %v7294_v6 }
 0xb75   : > { %3388 = vadd.xlane.f32.xlu0 %v7686_v4  ;;  %2199 = vadd.xlane.f32.xlu1 %v7292_v42 }
 0xb79   : > { %3392 = vadd.xlane.f32.xlu0 %v7684_v35  ;;  %3390 = vadd.xlane.f32.xlu1 %v7690_v15 }
 0xb7d   : > { %3396 = vadd.xlane.f32.xlu0 %v7694_v46  ;;  %3394 = vadd.xlane.f32.xlu1 %v7688_v12 }
 0xb81   : > { %3400 = vadd.xlane.f32.xlu0 %v7692_v56  ;;  %3398 = vadd.xlane.f32.xlu1 %v7698_v0 }
 0xb85   : > { %2217 = vadd.xlane.f32.xlu0 %v2209_v18  ;;  %3402 = vadd.xlane.f32.xlu1 %v7696_v40 }
 0xb89   : > { %2221 = vadd.xlane.f32.xlu0 %v2211_v47  ;;  %2219 = vadd.xlane.f32.xlu1 %v2210_v53 }
 0xb8d   : > { %2225 = vadd.xlane.f32.xlu0 %v2213_v45  ;;  %2223 = vadd.xlane.f32.xlu1 %v2212_v34 }
 0xb91   : > { %2229 = vadd.xlane.f32.xlu0 %v2215_v8  ;;  %2227 = vadd.xlane.f32.xlu1 %v2214_v17 }
 0xb95   : > { %3420 = vadd.xlane.f32.xlu0 %v3412_v31  ;;  %2231 = vadd.xlane.f32.xlu1 %v2216_v10 }
 0xb99   : > { %3424 = vadd.xlane.f32.xlu0 %v3414_v30  ;;  %3422 = vadd.xlane.f32.xlu1 %v3413_v41 }
 0xb9d   : > { %3428 = vadd.xlane.f32.xlu0 %v3416_v19  ;;  %3426 = vadd.xlane.f32.xlu1 %v3415_v54 }
 0xba1   : > { %3432 = vadd.xlane.f32.xlu0 %v3418_v25  ;;  %3430 = vadd.xlane.f32.xlu1 %v3417_v50 }
 0xba5   : > { %3434 = vadd.xlane.f32.xlu1 %v3419_v44 }
 0xbce   : > { %v4321_v51 = vpop.xlane.xlu0 %4320 }
 0xbcf   : > { %v4334_v13 = vmul.f32 0.0078125, %v4321_v51 }
 0xbd1   : > { %v4374_v18 = vmul.f32 %v4334_v13, %v4334_v13 }
 0xbd2   : > { %v4323_v1 = vpop.xlane.xlu1 %4322  ;;  %v4317_v5 = vpop.xlane.xlu0 %4316 }
 0xbd3   : > { %v7944_v60 = vmul.f32 0.0078125, %v4323_v1  ;;  %v4332_v47 = vmul.f32 0.0078125, %v4317_v5 }
 0xbd5   : > { %v4375_v45 = vmul.f32 %v7944_v60, %v7944_v60  ;;  %v4372_v31 = vmul.f32 %v4332_v47, %v4332_v47 }
 0xbd6   : > { %v4319_v52 = vpop.xlane.xlu1 %4318  ;;  %v4353_v38 = vpop.xlane.xlu0 %4352 }
 0xbd7   : > { %v4366_v53 = vmul.f32 0.0078125, %v4353_v38  ;;  %v7948_v8 = vmul.f32 0.0078125, %v4319_v52 }
 0xbd9   : > { %v4382_v34 = vsub.f32 %v4366_v53, %v4374_v18  ;;  %v4373_v50 = vmul.f32 %v7948_v8, %v7948_v8 }
 0xbda   : > { %v4355_v17 = vpop.xlane.xlu1 %4354  ;;  %v4349_v10 = vpop.xlane.xlu0 %4348 }
 0xbdb   : > { %v4398_v30 = vadd.f32 1e-05, %v4382_v34  ;;  %v4367_v41 = vmul.f32 0.0078125, %v4355_v17  ;;  %v4364_v54 = vmul.f32 0.0078125, %v4349_v10 }
 0xbdd   : > { %v4383_v19 = vsub.f32 %v4367_v41, %v4375_v45  ;;  %v4380_v25 = vsub.f32 %v4364_v54, %v4372_v31  ;;  %6013 = vrsqrt.f32 %v4398_v30 }
 0xbde   : > { %v4351_v44 = vpop.xlane.xlu1 %4350  ;;  %v4329_v51 = vpop.xlane.xlu0 %4328 }
 0xbdf   : > { %v4399_v1 = vadd.f32 1e-05, %v4383_v19  ;;  %v4396_v5 = vadd.f32 1e-05, %v4380_v25  ;;  %v4365_v38 = vmul.f32 0.0078125, %v4351_v44  ;;  %v7952_v17 = vmul.f32 0.0078125, %v4329_v51 }
 0xbe1   : > { %6015 = vrsqrt.f32 %v4399_v1  ;;  %v4381_v52 = vsub.f32 %v4365_v38, %v4373_v50  ;;  %v4378_v19 = vmul.f32 %v7952_v17, %v7952_v17 }
 0xbe2   : > { %6017 = vrsqrt.f32 %v4396_v5  ;;  %v4331_v18 = vpop.xlane.xlu1 %4330  ;;  %v4325_v53 = vpop.xlane.xlu0 %4324 }
 0xbe3   : > { %v4397_v23 = vadd.f32 1e-05, %v4381_v52  ;;  %v4336_v34 = vmul.f32 0.0078125, %v4325_v53  ;;  %v7958_v25 = vmul.f32 0.0078125, %v4331_v18  ;;  %v4390_v52 = vsub.f32 %v7856_v22, %v4334_v13 }
 0xbe4   : > { %v4388_v18 = vsub.f32 %v7859_v7, %v4332_v47 }
 0xbe5   : > { %6019 = vrsqrt.f32 %v4397_v23  ;;  %v4376_v31 = vmul.f32 %v4336_v34, %v4336_v34 }
 0xbe6   : > { %v4327_v45 = vpop.xlane.xlu1 %4326  ;;  %v4357_v10 = vpop.xlane.xlu0 %4356 }
 0xbe7   : > { %v7954_v41 = vmul.f32 0.0078125, %v4327_v45  ;;  %v4368_v54 = vmul.f32 0.0078125, %v4357_v10 }
 0xbe9   : > { %v4384_v30 = vsub.f32 %v4368_v54, %v4376_v31  ;;  %v4377_v1 = vmul.f32 %v7954_v41, %v7954_v41  ;;  %v4391_v31 = vsub.f32 %v7861_v16, %v7944_v60  ;;  %v4379_v54 = vmul.f32 %v7958_v25, %v7958_v25 }
 0xbea   : > { %v4359_v50 = vpop.xlane.xlu1 %4358  ;;  %v4361_v44 = vpop.xlane.xlu0 %4360 }
 0xbeb   : > { %v4400_v23 = vadd.f32 1e-05, %v4384_v30  ;;  %v4369_v51 = vmul.f32 0.0078125, %v4359_v50  ;;  %v4370_v5 = vmul.f32 0.0078125, %v4361_v44  ;;  %v6014_v38 = vpop.eup %6013 }
 0xbec   : > { %v4414_v30 = vmul.f32 %v6014_v38, %v4390_v52 }
 0xbed   : > { %6021 = vrsqrt.f32 %v4400_v23  ;;  %v4385_v53 = vsub.f32 %v4369_v51, %v4377_v1  ;;  %v4386_v45 = vsub.f32 %v4370_v5, %v4378_v19  ;;  %v4389_v19 = vsub.f32 %v7867_v20, %v7948_v8  ;;  %v5150_v5 = vld [vmem:[%s8483_s11] ss:$0 sm:$0xff] }
 0xbee   : > { %v6016_v10 = vpop.eup %6015  ;;  %v4363_v49 = vpop.xlane.xlu1 %4362  ;;  %v4428_v51 = vmul.f32 %v5149_v33, %v4414_v30  ;;  %v4392_v20 = vsub.f32 %v7879_v61, %v4336_v34  ;;  %v4393_v30 = vsub.f32 %v7887_v2, %v7954_v41 }
 0xbef   : > { %v6018_v59 = vpop.eup %6017  ;;  %v4401_v50 = vadd.f32 1e-05, %v4385_v53  ;;  %v4402_v44 = vadd.f32 1e-05, %v4386_v45  ;;  %v4371_v28 = vmul.f32 0.0078125, %v4363_v49  ;;  %v4415_v13 = vmul.f32 %v6016_v10, %v4391_v31 }
 0xbf0   : > { %v4412_v22 = vmul.f32 %v6018_v59, %v4388_v18  ;;  %v4442_v52 = vadd.f32 %v5150_v5, %v4428_v51 }
 0xbf1   : > { %6023 = vrsqrt.f32 %v4401_v50  ;;  %v4387_v1 = vsub.f32 %v4371_v28, %v4379_v54  ;;  %v4429_v60 = vmul.f32 %v5149_v33, %v4415_v13 }
 0xbf2   : > { %v6020_v16 = vpop.eup %6019  ;;  %6025 = vrsqrt.f32 %v4402_v44  ;;  %v4426_v7 = vmul.f32 %v5149_v33, %v4412_v22  ;;  %v4450_v31 = vmax.f32 %v4442_v52, 0.0  ;;  %v4394_v22 = vsub.f32 %v7876_v32, %v7952_v17 }
 0xbf3   : > { %v4403_v47 = vadd.f32 1e-05, %v4387_v1  ;;  %v4413_v23 = vmul.f32 %v6020_v16, %v4389_v19  ;;  %v4443_v49 = vadd.f32 %v5150_v5, %v4429_v60  ;;  %v4395_v1 = vsub.f32 %v7881_v11, %v7958_v25 }
 0xbf4   : > { %v4440_v38 = vadd.f32 %v5150_v5, %v4426_v7 }
 0xbf5   : > { %6027 = vrsqrt.f32 %v4403_v47  ;;  %v4427_v59 = vmul.f32 %v5149_v33, %v4413_v23  ;;  %v4451_v28 = vmax.f32 %v4443_v49, 0.0 }
 0xbf6   : > { %v4448_v45 = vmax.f32 %v4440_v38, 0.0 }
 0xbf7   : > { %v4441_v53 = vadd.f32 %v5150_v5, %v4427_v59  ;;  %v4457_v50 = vpack.c.bf16 %v4451_v28, %v4450_v31  ;;  %v2188_v28 = vpop.xlane.xlu1 %2187 }
 0xbf9   : > { %v4449_v10 = vmax.f32 %v4441_v53, 0.0 }
 0xbfa   : > { %v6022_v8 = vpop.eup %6021 }
 0xbfb   : > { %v4416_v18 = vmul.f32 %v6022_v8, %v4392_v20  ;;  %v4456_v54 = vpack.c.bf16 %v4449_v10, %v4448_v45  ;;  %v2186_v20 = vpop.xlane.xlu0 %2185  ;;  %v2192_v25 = vpop.xlane.xlu1 %2191 }
 0xbfd   : > { %5594 = vmatprep.mubr.bf16.mxu0 %v4456_v54  ;;  %v4430_v13 = vmul.f32 %v5149_v33, %v4416_v18 }
 0xbfe   : > { %v6024_v44 = vpop.eup %6023  ;;  %5595 = vmatmul.mubr.bf16.vlgmr.msra.gmra.mxu0 %v4457_v50 }
 0xbff   : > { %v6026_v19 = vpop.eup %6025  ;;  %v4417_v61 = vmul.f32 %v6024_v44, %v4393_v30  ;;  %v4444_v60 = vadd.f32 %v5150_v5, %v4430_v13  ;;  %v2190_v11 = vpop.xlane.xlu0 %2189 }
 0xc00   : > { %v4418_v34 = vmul.f32 %v6026_v19, %v4394_v22  ;;  %v2196_v45 = vpop.xlane.xlu1 %2195 }
 0xc01   : > { %v4431_v7 = vmul.f32 %v5149_v33, %v4417_v61  ;;  %v4452_v41 = vmax.f32 %v4444_v60, 0.0  ;;  %v7998_v60 = vmul.f32 0.0078125, %v2192_v25 }
 0xc02   : > { %v6028_v16 = vpop.eup %6027  ;;  %v4432_v47 = vmul.f32 %v5149_v33, %v4418_v34  ;;  %v7994_v34 = vmul.f32 0.0078125, %v2188_v28  ;;  %v8008_v28 = vmul.f32 0.0078125, %v2190_v11 }
 0xc03   : > { %v4419_v23 = vmul.f32 %v6028_v16, %v4395_v1  ;;  %v4445_v2 = vadd.f32 %v5150_v5, %v4431_v7  ;;  %v2194_v8 = vpop.xlane.xlu0 %2193 }
 0xc04   : > { %v4446_v59 = vadd.f32 %v5150_v5, %v4432_v47  ;;  %v2200_v31 = vpop.xlane.xlu1 %2199  ;;  %v2242_v7 = vmul.f32 %v7994_v34, %v7994_v34 }
 0xc05   : > { %v4453_v51 = vmax.f32 %v4445_v2, 0.0  ;;  %v4433_v49 = vmul.f32 %v5149_v33, %v4419_v23 }
 0xc06   : > { %v4454_v38 = vmax.f32 %v4446_v59, 0.0  ;;  %v8004_v59 = vmul.f32 0.0078125, %v2196_v45 }
 0xc07   : > { %v4458_v32 = vpack.c.bf16 %v4453_v51, %v4452_v41  ;;  %v4447_v17 = vadd.f32 %v5150_v5, %v4433_v49  ;;  %v2198_v10 = vpop.xlane.xlu0 %2197  ;;  %v8000_v51 = vmul.f32 0.0078125, %v2186_v20  ;;  %v2244_v49 = vmul.f32 %v7998_v60, %v7998_v60 }
 0xc08   : > { %v7980_v54 = vpop.xlane.xlu1 %3390  ;;  %v2246_v20 = vmul.f32 %v8004_v59, %v8004_v59 }
 0xc09   : > { %5598 = vmatprep.mubr.bf16.mxu1 %v4458_v32  ;;  %v4455_v52 = vmax.f32 %v4447_v17, 0.0 }
 0xc0b   : > { %v4459_v53 = vpack.c.bf16 %v4455_v52, %v4454_v38  ;;  %v3389_v18 = vpop.xlane.xlu0 %3388 }
 0xc0c   : > { %v7984_v30 = vpop.xlane.xlu1 %3394  ;;  %v8020_v57 = vmul.f32 0.0078125, %v3389_v18 }
 0xc0d   : > { %5599 = vmatmul.mubr.bf16.vlgmr.msra.gmra.mxu1 %v4459_v53  ;;  %v2241_v53 = vmul.f32 %v8000_v51, %v8000_v51 }
 0xc0f   : > { %v7982_v33 = vpop.xlane.xlu0 %3392 }
 0xc10   : > { %v7988_v50 = vpop.xlane.xlu1 %3398 }
 0xc13   : > { %v7986_v5 = vpop.xlane.xlu0 %3396 }
 0xc14   : > { %v7992_v22 = vpop.xlane.xlu1 %3402 }
 0xc17   : > { %v7990_v44 = vpop.xlane.xlu0 %3400 }
 0xc18   : > { %v2220_v19 = vpop.xlane.xlu1 %2219 }
 0xc19   : > { %v2234_v16 = vmul.f32 0.0078125, %v2220_v19 }
 0xc1b   : > { %v2218_v13 = vpop.xlane.xlu0 %2217  ;;  %v2250_v23 = vsub.f32 %v2234_v16, %v2242_v7 }
 0xc1c   : > { %v2224_v1 = vpop.xlane.xlu1 %2223  ;;  %v2233_v32 = vmul.f32 0.0078125, %v2218_v13  ;;  %v2243_v13 = vmul.f32 %v8008_v28, %v8008_v28 }
 0xc1d   : > { %v2236_v2 = vmul.f32 0.0078125, %v2224_v1  ;;  %v2266_v17 = vadd.f32 1e-05, %v2250_v23  ;;  %v8012_v1 = vmul.f32 0.0078125, %v2200_v31 }
 0xc1e   : > { %v2249_v16 = vsub.f32 %v2233_v32, %v2241_v53 }
 0xc1f   : > { %v2222_v61 = vpop.xlane.xlu0 %2221  ;;  %v2252_v38 = vsub.f32 %v2236_v2, %v2244_v49  ;;  %6029 = vrsqrt.f32 %v2266_v17  ;;  %v8016_v49 = vmul.f32 0.0078125, %v2194_v8  ;;  %v3444_v8 = vmul.f32 %v8020_v57, %v8020_v57 }
 0xc20   : > { %v2228_v41 = vpop.xlane.xlu1 %2227  ;;  %v2235_v7 = vmul.f32 0.0078125, %v2222_v61  ;;  %v2265_v48 = vadd.f32 1e-05, %v2249_v16 }
 0xc21   : > { %v2238_v25 = vmul.f32 0.0078125, %v2228_v41  ;;  %v2268_v45 = vadd.f32 1e-05, %v2252_v38  ;;  %v2248_v41 = vmul.f32 %v8012_v1, %v8012_v1  ;;  %v2245_v53 = vmul.f32 %v8016_v49, %v8016_v49 }
 0xc22   : > { %v2251_v31 = vsub.f32 %v2235_v7, %v2243_v13 }
 0xc23   : > { %v2226_v47 = vpop.xlane.xlu0 %2225  ;;  %v2254_v23 = vsub.f32 %v2238_v25, %v2246_v20  ;;  %6031 = vrsqrt.f32 %v2268_v45  ;;  %v8024_v25 = vmul.f32 0.0078125, %v2198_v10 }
 0xc24   : > { %v2232_v19 = vpop.xlane.xlu1 %2231  ;;  %v2237_v32 = vmul.f32 0.0078125, %v2226_v47  ;;  %6033 = vrsqrt.f32 %v2265_v48 }
 0xc25   : > { %v2240_v2 = vmul.f32 0.0078125, %v2232_v19  ;;  %v2270_v61 = vadd.f32 1e-05, %v2254_v23  ;;  %v2267_v19 = vadd.f32 1e-05, %v2251_v31  ;;  %v2247_v47 = vmul.f32 %v8024_v25, %v8024_v25 }
 0xc26   : > { %v2253_v20 = vsub.f32 %v2237_v32, %v2245_v53  ;;  %v2260_v32 = vsub.f32 %v7284_v27, %v7998_v60 }
 0xc27   : > { %v2230_v52 = vpop.xlane.xlu0 %2229  ;;  %v2256_v17 = vsub.f32 %v2240_v2, %v2248_v41  ;;  %6035 = vrsqrt.f32 %v2270_v61  ;;  %v2258_v2 = vsub.f32 %v7286_v29, %v7994_v34  ;;  %v8049_v34 = vld [vmem:[%s8485_s13] ss:$0 sm:$0xff] }
 0xc28   : > { %v2239_v18 = vmul.f32 0.0078125, %v2230_v52  ;;  %6037 = vrsqrt.f32 %v2267_v19  ;;  %v2269_v45 = vadd.f32 1e-05, %v2253_v20  ;;  %v3423_v61 = vpop.xlane.xlu1 %3422 }
 0xc29   : > { %v2272_v16 = vadd.f32 1e-05, %v2256_v17  ;;  %v3437_v19 = vmul.f32 0.0078125, %v3423_v61 }
 0xc2a   : > { %v2255_v13 = vsub.f32 %v2239_v18, %v2247_v47 }
 0xc2b   : > { %v3421_v11 = vpop.xlane.xlu0 %3420  ;;  %6039 = vrsqrt.f32 %v2272_v16  ;;  %v2259_v16 = vsub.f32 %v7280_v39, %v8008_v28  ;;  %v8076_v28 = vmul.f32 0.0078125, %v7984_v30  ;;  %v2264_v30 = vsub.f32 %v7292_v42, %v8012_v1 }
 0xc2c   : > { %v3436_v38 = vmul.f32 0.0078125, %v3421_v11  ;;  %v6030_v23 = vpop.eup %6029  ;;  %6041 = vrsqrt.f32 %v2269_v45  ;;  %v2271_v48 = vadd.f32 1e-05, %v2255_v13 }
 0xc2d   : > { %v2282_v41 = vmul.f32 %v6030_v23, %v2258_v2 }
 0xc2e   : > { %v3452_v7 = vsub.f32 %v3436_v38, %v3444_v8  ;;  %v8042_v38 = vmul.f32 0.0078125, %v7980_v54  ;;  %v8052_v8 = vmul.f32 0.0078125, %v7982_v33  ;;  %v2257_v54 = vsub.f32 %v7282_v63, %v8000_v51  ;;  %v8071_v63 = vld [vmem:[%s8486_s14] ss:$0 sm:$0xff] }
 0xc2f   : > { %v3425_v29 = vpop.xlane.xlu0 %3424  ;;  %v2296_v27 = vmul.f32 %v8049_v34, %v2282_v41  ;;  %v2262_v33 = vsub.f32 %v7294_v6, %v8004_v59  ;;  %v3427_v6 = vpop.xlane.xlu1 %3426 }
 0xc30   : > { %v3468_v10 = vadd.f32 1e-05, %v3452_v7  ;;  %v6032_v31 = vpop.eup %6031  ;;  %v3438_v7 = vmul.f32 0.0078125, %v3425_v29  ;;  %v3445_v45 = vmul.f32 %v8042_v38, %v8042_v38  ;;  %v3446_v39 = vmul.f32 %v8052_v8, %v8052_v8 }
 0xc31   : > { %v6034_v53 = vpop.eup %6033  ;;  %v2284_v60 = vmul.f32 %v6032_v31, %v2260_v32  ;;  %v2310_v59 = vadd.f32 %v8071_v63, %v2296_v27  ;;  %v2261_v32 = vsub.f32 %v7290_v26, %v8016_v49  ;;  %v3439_v29 = vmul.f32 0.0078125, %v3427_v6 }
 0xc32   : > { %6043 = vrsqrt.f32 %v3468_v10  ;;  %v2281_v51 = vmul.f32 %v6034_v53, %v2257_v54  ;;  %v3453_v10 = vsub.f32 %v3437_v19, %v3445_v45  ;;  %v3454_v61 = vsub.f32 %v3438_v7, %v3446_v39 }
 0xc33   : > { %6045 = vrsqrt.f32 %v2271_v48  ;;  %v2298_v23 = vmul.f32 %v8049_v34, %v2284_v60  ;;  %v3429_v53 = vpop.xlane.xlu0 %3428  ;;  %v3447_v54 = vmul.f32 %v8076_v28, %v8076_v28  ;;  %v8092_v19 = vmul.f32 0.0078125, %v7986_v5  ;;  %v3431_v39 = vpop.xlane.xlu1 %3430 }
 0xc34   : > { %v6036_v18 = vpop.eup %6035  ;;  %v2295_v27 = vmul.f32 %v8049_v34, %v2281_v51  ;;  %v3469_v42 = vadd.f32 1e-05, %v3453_v10  ;;  %v3460_v5 = vsub.f32 %v7686_v4, %v8020_v57  ;;  %v8105_v51 = vmul.f32 0.0078125, %v7988_v50  ;;  %v8581_v57 = vld [vmem:[#allocation25_spill] sm:$0xff] }
 0xc35   : > { %v6038_v13 = vpop.eup %6037  ;;  %v2286_v41 = vmul.f32 %v6036_v18, %v2262_v33  ;;  %v2312_v49 = vadd.f32 %v8071_v63, %v2298_v23  ;;  %v3455_v6 = vsub.f32 %v3439_v29, %v3447_v54  ;;  %v8582_v50 = vmax.f32 %v8581_v57, 0.0 }
 0xc36   : > { %v2283_v60 = vmul.f32 %v6038_v13, %v2259_v16  ;;  %v3440_v13 = vmul.f32 0.0078125, %v3429_v53  ;;  %v2309_v23 = vadd.f32 %v8071_v63, %v2295_v27  ;;  %6047 = vrsqrt.f32 %v3469_v42 }
 0xc37   : > { %v2300_v16 = vmul.f32 %v8049_v34, %v2286_v41  ;;  %v2263_v27 = vsub.f32 %v7288_v24, %v8024_v25  ;;  %v3435_v25 = vpop.xlane.xlu1 %3434 }
 0xc38   : > { %v6040_v31 = vpop.eup %6039  ;;  %v2297_v10 = vmul.f32 %v8049_v34, %v2283_v60  ;;  %v3449_v60 = vmul.f32 %v8105_v51, %v8105_v51  ;;  %v3443_v57 = vmul.f32 0.0078125, %v3435_v25 }
 0xc39   : > { %v6042_v18 = vpop.eup %6041  ;;  %v2288_v33 = vmul.f32 %v6040_v31, %v2264_v30  ;;  %v2314_v30 = vadd.f32 %v8071_v63, %v2300_v16 }
 0xc3a   : > { %v2285_v41 = vmul.f32 %v6042_v18, %v2261_v32  ;;  %v8129_v32 = vld [vmem:[%s8487_s15] ss:$0 sm:$0xff]  ;;  %v2311_v24 = vadd.f32 %v8071_v63, %v2297_v10 }
 0xc3b   : > { %v2302_v29 = vmul.f32 %v8049_v34, %v2288_v33 }
 0xc3c   : > { %v2299_v33 = vmul.f32 %v8049_v34, %v2285_v41  ;;  %v8587_v41 = vld [vmem:[#allocation24_spill] sm:$0xff] }
 0xc3f   : > { %v6044_v45 = vpop.eup %6043 }
 0xc40   : > { %v6046_v31 = vpop.eup %6045  ;;  %v3484_v53 = vmul.f32 %v6044_v45, %v3460_v5 }
 0xc41   : > { %v2287_v45 = vmul.f32 %v6046_v31, %v2263_v27  ;;  %v8588_v31 = vmax.f32 %v8587_v41, 0.0 }
 0xc43   : > { %v2319_v27 = vadd.f32 %v2311_v24, %v8588_v31 }
 0xc45   : > { %v2327_v25 = vmax.f32 %v2319_v27, 0.0  ;;  %v8595_v27 = vld [vmem:[#allocation28_spill] sm:$0xff] }
 0xcbe   : > { %v8032_v11 = vpop.f32.mrf.mxu0 }
 0xcbf   : > { %4595 = vadd.xlane.f32.xlu0 %v8032_v11  ;;  %v4617_v20 = vmul.f32 %v8032_v11, %v8032_v11 }
 0xcc0   : > { %v8035_v52 = vpop.f32.mrf.mxu0 }
 0xcc1   : > { %v4615_v2 = vmul.f32 %v8035_v52, %v8035_v52 }
 0xcc2   : > { %v8039_v17 = vpop.f32.mrf.mxu0 }
 0xcc3   : > { %4591 = vadd.xlane.f32.xlu0 %v8035_v52  ;;  %4597 = vadd.xlane.f32.xlu1 %v8039_v17  ;;  %v4618_v48 = vmul.f32 %v8039_v17, %v8039_v17 }
 0xcc4   : > { %v8061_v47 = vpop.f32.mrf.mxu0 }
 0xcc5   : > { %v4616_v1 = vmul.f32 %v8061_v47, %v8061_v47 }
 0xcc7   : > { %4627 = vadd.xlane.f32.xlu0 %v4617_v20  ;;  %4593 = vadd.xlane.f32.xlu1 %v8061_v47  ;;  %v8580_v20 = vmax.f32 %v6997_v43, 0.0  ;;  %v3470_v43 = vadd.f32 1e-05, %v3454_v61 }
 0xcc9   : > { %v2318_v26 = vadd.f32 %v2310_v59, %v8580_v20  ;;  %6049 = vrsqrt.f32 %v3470_v43  ;;  %v3471_v20 = vadd.f32 1e-05, %v3455_v6  ;;  %v8585_v43 = vld [vmem:[#allocation27_spill] sm:$0xff]  ;;  %v2316_v6 = vadd.f32 %v8071_v63, %v2302_v29 }
 0xcca   : > { %v2301_v29 = vmul.f32 %v8049_v34, %v2287_v45 }
 0xccb   : > { %4623 = vadd.xlane.f32.xlu0 %v4615_v2  ;;  %4629 = vadd.xlane.f32.xlu1 %v4618_v48  ;;  %v3448_v2 = vmul.f32 %v8092_v19, %v8092_v19  ;;  %v2326_v4 = vmax.f32 %v2318_v26, 0.0  ;;  %v2320_v48 = vadd.f32 %v2312_v49, %v8582_v50  ;;  %v3441_v26 = vmul.f32 0.0078125, %v3431_v39  ;;  %v8583_v49 = vld [vmem:[#allocation23_spill] sm:$0xff] }
 0xccc   : > { %v8584_v18 = vmax.f32 %v8583_v49, 0.0  ;;  %6051 = vrsqrt.f32 %v3471_v20 }
 0xccd   : > { %v8099_v7 = vpop.f32.mrf.mxu1  ;;  %v3456_v54 = vsub.f32 %v3440_v13, %v3448_v2  ;;  %v2328_v16 = vmax.f32 %v2320_v48, 0.0  ;;  %v8586_v13 = vmax.f32 %v8585_v43, 0.0  ;;  %v3498_v2 = vmul.f32 %v8049_v34, %v3484_v53  ;;  %v8593_v43 = vld [vmem:[#allocation30_spill] sm:$0xff] }
 0xcce   : > { %v2317_v42 = vadd.f32 %v2309_v23, %v8584_v18  ;;  %v8143_v23 = vmul.f32 0.0078125, %v7992_v22  ;;  %v4621_v22 = vmul.f32 %v8099_v7, %v8099_v7 }
 0xccf   : > { %4625 = vadd.xlane.f32.xlu1 %v4616_v1  ;;  %4603 = vadd.xlane.f32.xlu0 %v8099_v7  ;;  %v8108_v59 = vpop.f32.mrf.mxu1  ;;  %v2341_v1 = vmul.f32 %v8129_v32, %v2326_v4  ;;  %v2322_v39 = vadd.f32 %v2314_v30, %v8586_v13  ;;  %v3472_v10 = vadd.f32 1e-05, %v3456_v54  ;;  %v3457_v4 = vsub.f32 %v3441_v26, %v3449_v60  ;;  %v8589_v54 = vld [vmem:[#allocation29_spill] sm:$0xff] }
 0xcd0   : > { %v4619_v5 = vmul.f32 %v8108_v59, %v8108_v59  ;;  %v2325_v50 = vmax.f32 %v2317_v42, 0.0  ;;  %v2343_v48 = vmul.f32 %v8129_v32, %v2328_v16  ;;  %v2313_v30 = vadd.f32 %v8071_v63, %v2299_v33 }
 0xcd1   : > { %v8116_v61 = vpop.f32.mrf.mxu1  ;;  %v2330_v53 = vmax.f32 %v2322_v39, 0.0  ;;  %v8590_v20 = vmax.f32 %v8589_v54, 0.0  ;;  %v3512_v26 = vadd.f32 %v8071_v63, %v3498_v2  ;;  %v3451_v49 = vmul.f32 %v8143_v23, %v8143_v23  ;;  %v6048_v2 = vpop.eup %6047 }
 0xcd2   : > { %6053 = vrsqrt.f32 %v3472_v10  ;;  %v2340_v18 = vmul.f32 %v8129_v32, %v2325_v50  ;;  %v3473_v42 = vadd.f32 1e-05, %v3457_v4  ;;  %v8594_v13 = vmax.f32 %v8593_v43, 0.0 }
 0xcd3   : > { %4599 = vadd.xlane.f32.xlu0 %v8108_v59  ;;  %4605 = vadd.xlane.f32.xlu1 %v8116_v61  ;;  %v2324_v60 = vadd.f32 %v2316_v6, %v8590_v20  ;;  %v3459_v24 = vsub.f32 %v3443_v57, %v3451_v49  ;;  %v2345_v45 = vmul.f32 %v8129_v32, %v2330_v53 }
 0xcd4   : > { %v3520_v39 = vadd.f32 %v3512_v26, %v8594_v13  ;;  %v2315_v6 = vadd.f32 %v8071_v63, %v2301_v29  ;;  %6055 = vrsqrt.f32 %v3473_v42  ;;  %v2342_v57 = vmul.f32 %v8129_v32, %v2327_v25 }
 0xcd5   : > { %v3475_v4 = vadd.f32 1e-05, %v3459_v24  ;;  %v3462_v29 = vsub.f32 %v7684_v35, %v8052_v8  ;;  %v3463_v49 = vsub.f32 %v7688_v12, %v8076_v28  ;;  %v3464_v25 = vsub.f32 %v7694_v46, %v8092_v19  ;;  %v8599_v19 = vld [vmem:[#allocation32_spill] sm:$0xff] }
 0xcd6   : > { %v6050_v10 = vpop.eup %6049  ;;  %v3528_v31 = vmax.f32 %v3520_v39, 0.0  ;;  %v3465_v46 = vsub.f32 %v7698_v0, %v8105_v51  ;;  %v8600_v39 = vmax.f32 %v8599_v19, 0.0 }
 0xcd7   : > { %4631 = vadd.xlane.f32.xlu0 %v4619_v5  ;;  %2350 = vadd.xlane.f32.xlu1 %v2341_v1  ;;  %v8591_v1 = vld [vmem:[#allocation26_spill] sm:$0xff]  ;;  %v2332_v5 = vmax.f32 %v2324_v60, 0.0  ;;  %6057 = vrsqrt.f32 %v3475_v4 }
 0xcd8   : > { %v8592_v16 = vmax.f32 %v8591_v1, 0.0  ;;  %v3543_v20 = vmul.f32 %v8129_v32, %v3528_v31  ;;  %v8182_v1 = vpop.f32.mrf.mxu1 }
 0xcd9   : > { %v2347_v41 = vmul.f32 %v8129_v32, %v2332_v5 }
 0xcda   : > { %v2321_v33 = vadd.f32 %v2313_v30, %v8592_v16  ;;  %v8596_v30 = vmax.f32 %v8595_v27, 0.0  ;;  %v8601_v27 = vld [vmem:[#allocation33_spill] sm:$0xff] }
 0xcdb   : > { %4635 = vadd.xlane.f32.xlu0 %v4621_v22  ;;  %2354 = vadd.xlane.f32.xlu1 %v2343_v48  ;;  %v3461_v48 = vsub.f32 %v7690_v15, %v8042_v38  ;;  %v6052_v15 = vpop.eup %6051  ;;  %v3486_v38 = vmul.f32 %v6050_v10, %v3462_v29 }
 0xcdc   : > { %v2329_v50 = vmax.f32 %v2321_v33, 0.0  ;;  %v2323_v22 = vadd.f32 %v2315_v6, %v8596_v30  ;;  %v3487_v24 = vmul.f32 %v6052_v15, %v3463_v49  ;;  %v4622_v33 = vmul.f32 %v8116_v61, %v8116_v61 }
 0xcdd   : > { %v3485_v53 = vmul.f32 %v6048_v2, %v3461_v48  ;;  %v3500_v35 = vmul.f32 %v8049_v34, %v3486_v38  ;;  %v4620_v48 = vmul.f32 %v8182_v1, %v8182_v1  ;;  %v8602_v30 = vmax.f32 %v8601_v27, 0.0 }
 0xcde   : > { %v2344_v54 = vmul.f32 %v8129_v32, %v2329_v50  ;;  %v2331_v60 = vmax.f32 %v2323_v22, 0.0  ;;  %v3501_v13 = vmul.f32 %v8049_v34, %v3487_v24 }
 0xcdf   : > { %2358 = vadd.xlane.f32.xlu1 %v2345_v45  ;;  %2348 = vadd.xlane.f32.xlu0 %v2340_v18  ;;  %v3499_v26 = vmul.f32 %v8049_v34, %v3485_v53  ;;  %v6054_v18 = vpop.eup %6053  ;;  %v3514_v12 = vadd.f32 %v8071_v63, %v3500_v35  ;;  %v8597_v45 = vld [vmem:[#allocation31_spill] sm:$0xff] }
 0xce0   : > { %v2346_v8 = vmul.f32 %v8129_v32, %v2331_v60  ;;  %v3488_v28 = vmul.f32 %v6054_v18, %v3464_v25  ;;  %v8598_v5 = vmax.f32 %v8597_v45, 0.0  ;;  %v8605_v18 = vld [vmem:[#allocation35_spill] sm:$0xff] }
 0xce1   : > { %v3513_v42 = vadd.f32 %v8071_v63, %v3499_v26  ;;  %v6056_v16 = vpop.eup %6055  ;;  %v3522_v6 = vadd.f32 %v3514_v12, %v8600_v39  ;;  %v8606_v35 = vmax.f32 %v8605_v18, 0.0  ;;  %v8607_v12 = vld [vmem:[#allocation37_spill] sm:$0xff] }
 0xce2   : > { %v3502_v2 = vmul.f32 %v8049_v34, %v3488_v28  ;;  %v3489_v50 = vmul.f32 %v6056_v16, %v3465_v46  ;;  %v8608_v28 = vmax.f32 %v8607_v12, 0.0 }
 0xce3   : > { %2362 = vadd.xlane.f32.xlu1 %v2347_v41  ;;  %2352 = vadd.xlane.f32.xlu0 %v2342_v57  ;;  %v3521_v43 = vadd.f32 %v3513_v42, %v8598_v5  ;;  %v3515_v57 = vadd.f32 %v8071_v63, %v3501_v13  ;;  %v3467_v41 = vsub.f32 %v7696_v40, %v8143_v23  ;;  %v3530_v31 = vmax.f32 %v3522_v6, 0.0 }
 0xce4   : > { %v6058_v10 = vpop.eup %6057  ;;  %v3516_v0 = vadd.f32 %v8071_v63, %v3502_v2  ;;  %v3503_v53 = vmul.f32 %v8049_v34, %v3489_v50 }
 0xce5   : > { %v3529_v4 = vmax.f32 %v3521_v43, 0.0  ;;  %v3523_v22 = vadd.f32 %v3515_v57, %v8602_v30  ;;  %v3491_v29 = vmul.f32 %v6058_v10, %v3467_v41  ;;  %v3545_v15 = vmul.f32 %v8129_v32, %v3530_v31  ;;  %v3433_v43 = vpop.xlane.xlu0 %3432 }
 0xce6   : > { %v3517_v40 = vadd.f32 %v8071_v63, %v3503_v53 }
 0xce7   : > { %2356 = vadd.xlane.f32.xlu0 %v2344_v54  ;;  %3551 = vadd.xlane.f32.xlu1 %v3543_v20  ;;  %v3544_v51 = vmul.f32 %v8129_v32, %v3529_v4  ;;  %v3531_v38 = vmax.f32 %v3523_v22, 0.0  ;;  %v8603_v54 = vld [vmem:[#allocation34_spill] sm:$0xff]  ;;  %v3505_v23 = vmul.f32 %v8049_v34, %v3491_v29  ;;  %v8231_v29 = vmul.f32 0.0078125, %v7990_v44 }
 0xce8   : > { %v8604_v20 = vmax.f32 %v8603_v54, 0.0  ;;  %v3442_v54 = vmul.f32 0.0078125, %v3433_v43 }
 0xce9   : > { %v3546_v26 = vmul.f32 %v8129_v32, %v3531_v38  ;;  %v3519_v42 = vadd.f32 %v8071_v63, %v3505_v23  ;;  %v3450_v18 = vmul.f32 %v8231_v29, %v8231_v29 }
 0xcea   : > { %v3524_v60 = vadd.f32 %v3516_v0, %v8604_v20 }
 0xceb   : > { %2360 = vadd.xlane.f32.xlu0 %v2346_v8  ;;  %4601 = vadd.xlane.f32.xlu1 %v8182_v1  ;;  %v3525_v8 = vadd.f32 %v3517_v40, %v8606_v35  ;;  %v3527_v16 = vadd.f32 %v3519_v42, %v8608_v28 }
 0xcec   : > { %v3532_v49 = vmax.f32 %v3524_v60, 0.0 }
 0xced   : > { %v3533_v25 = vmax.f32 %v3525_v8, 0.0  ;;  %v3535_v45 = vmax.f32 %v3527_v16, 0.0  ;;  %v3458_v8 = vsub.f32 %v3442_v54, %v3450_v18 }
 0xcee   : > { %v3547_v24 = vmul.f32 %v8129_v32, %v3532_v49 }
 0xcef   : > { %4637 = vadd.xlane.f32.xlu1 %v4622_v33  ;;  %v3548_v33 = vmul.f32 %v8129_v32, %v3533_v25  ;;  %v3550_v5 = vmul.f32 %v8129_v32, %v3535_v45  ;;  %v3474_v12 = vadd.f32 1e-05, %v3458_v8 }
 0xcf3   : > { %4633 = vadd.xlane.f32.xlu1 %v4620_v48 }
 0xcf7   : > { %3553 = vadd.xlane.f32.xlu1 %v3544_v51 }
 0xcfb   : > { %3555 = vadd.xlane.f32.xlu1 %v3545_v15 }
 0xcff   : > { %3557 = vadd.xlane.f32.xlu1 %v3546_v26 }
 0xd03   : > { %3559 = vadd.xlane.f32.xlu1 %v3547_v24 }
 0xd07   : > { %3561 = vadd.xlane.f32.xlu1 %v3548_v33 }
 0xd0b   : > { %3565 = vadd.xlane.f32.xlu1 %v3550_v5 }
 0xd48   : > { %v4596_v13 = vpop.xlane.xlu0 %4595 }
 0xd49   : > { %v4609_v39 = vmul.f32 0.0078125, %v4596_v13 }
 0xd4b   : > { %v4649_v4 = vmul.f32 %v4609_v39, %v4609_v39  ;;  %v4665_v43 = vsub.f32 %v8032_v11, %v4609_v39 }
 0xd4c   : > { %v4598_v46 = vpop.xlane.xlu1 %4597  ;;  %v4592_v19 = vpop.xlane.xlu0 %4591 }
 0xd4d   : > { %v8220_v6 = vmul.f32 0.0078125, %v4598_v46  ;;  %v8222_v2 = vmul.f32 0.0078125, %v4592_v19 }
 0xd4f   : > { %v4650_v41 = vmul.f32 %v8220_v6, %v8220_v6  ;;  %v4647_v31 = vmul.f32 %v8222_v2, %v8222_v2  ;;  %v4666_v11 = vsub.f32 %v8039_v17, %v8220_v6  ;;  %v4663_v39 = vsub.f32 %v8035_v52, %v8222_v2 }
 0xd50   : > { %v4594_v10 = vpop.xlane.xlu1 %4593  ;;  %v4628_v48 = vpop.xlane.xlu0 %4627 }
 0xd51   : > { %v4641_v57 = vmul.f32 0.0078125, %v4628_v48  ;;  %v8228_v27 = vmul.f32 0.0078125, %v4594_v10 }
 0xd53   : > { %v4657_v50 = vsub.f32 %v4641_v57, %v4649_v4  ;;  %v4648_v40 = vmul.f32 %v8228_v27, %v8228_v27 }
 0xd54   : > { %v4630_v0 = vpop.xlane.xlu1 %4629  ;;  %v4624_v51 = vpop.xlane.xlu0 %4623 }
 0xd55   : > { %v4673_v30 = vadd.f32 1e-05, %v4657_v50  ;;  %v4642_v22 = vmul.f32 0.0078125, %v4630_v0  ;;  %v4639_v53 = vmul.f32 0.0078125, %v4624_v51  ;;  %v8257_v51 = vld [vmem:[#allocation2] ss:$0 sm:$0xff] }
 0xd57   : > { %6059 = vrsqrt.f32 %v4673_v30  ;;  %v4658_v15 = vsub.f32 %v4642_v22, %v4650_v41  ;;  %v4655_v38 = vsub.f32 %v4639_v53, %v4647_v31 }
 0xd58   : > { %v4626_v20 = vpop.xlane.xlu1 %4625  ;;  %v4604_v60 = vpop.xlane.xlu0 %4603 }
 0xd59   : > { %v4674_v23 = vadd.f32 1e-05, %v4658_v15  ;;  %v4671_v26 = vadd.f32 1e-05, %v4655_v38  ;;  %v4640_v49 = vmul.f32 0.0078125, %v4626_v20  ;;  %v8243_v33 = vmul.f32 0.0078125, %v4604_v60 }
 0xd5b   : > { %6061 = vrsqrt.f32 %v4674_v23  ;;  %v4656_v35 = vsub.f32 %v4640_v49, %v4648_v40  ;;  %v4653_v48 = vmul.f32 %v8243_v33, %v8243_v33  ;;  %v4664_v40 = vsub.f32 %v8061_v47, %v8228_v27 }
 0xd5c   : > { %6063 = vrsqrt.f32 %v4671_v26  ;;  %v8237_v44 = vpop.xlane.xlu1 %4605  ;;  %v4600_v42 = vpop.xlane.xlu0 %4599 }
 0xd5d   : > { %v4672_v24 = vadd.f32 1e-05, %v4656_v35  ;;  %v8239_v25 = vmul.f32 0.0078125, %v4600_v42  ;;  %v8610_v42 = vmax.f32 %v7809_v62, 0.0 }
 0xd5f   : > { %6065 = vrsqrt.f32 %v4672_v24  ;;  %v4651_v45 = vmul.f32 %v8239_v25, %v8239_v25 }
 0xd60   : > { %v8241_v28 = vpop.xlane.xlu1 %2350  ;;  %v4632_v16 = vpop.xlane.xlu0 %4631  ;;  %6067 = vrsqrt.f32 %v3474_v12 }
 0xd61   : > { %v4643_v5 = vmul.f32 0.0078125, %v4632_v16 }
 0xd63   : > { %v4659_v13 = vsub.f32 %v4643_v5, %v4651_v45  ;;  %v3466_v45 = vsub.f32 %v7692_v56, %v8231_v29  ;;  %v4669_v56 = vsub.f32 %v8099_v7, %v8243_v33 }
 0xd64   : > { %v6060_v46 = vpop.eup %6059  ;;  %v8248_v19 = vpop.xlane.xlu1 %2354 }
 0xd65   : > { %v4636_v10 = vpop.xlane.xlu0 %4635  ;;  %v4675_v4 = vadd.f32 1e-05, %v4659_v13  ;;  %v4689_v50 = vmul.f32 %v6060_v46, %v4665_v43  ;;  %v4667_v43 = vsub.f32 %v8108_v59, %v8239_v25 }
 0xd66   : > { %v4645_v57 = vmul.f32 0.0078125, %v4636_v10 }
 0xd67   : > { %6069 = vrsqrt.f32 %v4675_v4  ;;  %v4703_v31 = vmul.f32 %v8049_v34, %v4689_v50 }
 0xd68   : > { %v4661_v41 = vsub.f32 %v4645_v57, %v4653_v48  ;;  %v6062_v0 = vpop.eup %6061  ;;  %v8259_v30 = vpop.xlane.xlu1 %2358  ;;  %v8611_v48 = vmax.f32 %v7815_v9, 0.0  ;;  %v4614_v57 = vmul.f32 0.0078125, %v8237_v44 }
 0xd69   : > { %v2349_v22 = vpop.xlane.xlu0 %2348  ;;  %v6064_v53 = vpop.eup %6063  ;;  %v4717_v54 = vadd.f32 %v8071_v63, %v4703_v31  ;;  %v4690_v60 = vmul.f32 %v6062_v0, %v4666_v11 }
 0xd6a   : > { %v4677_v15 = vadd.f32 1e-05, %v4661_v41  ;;  %v2371_v38 = vadd.f32 %v8257_v51, %v2349_v22  ;;  %v4687_v20 = vmul.f32 %v6064_v53, %v4663_v39  ;;  %v4654_v11 = vmul.f32 %v4614_v57, %v4614_v57 }
 0xd6b   : > { %v4725_v52 = vadd.f32 %v4717_v54, %v4175_v36  ;;  %v4704_v23 = vmul.f32 %v8049_v34, %v4690_v60  ;;  %v8612_v54 = vmax.f32 %v7842_v3, 0.0  ;;  %v8613_v60 = vmax.f32 %v7836_v21, 0.0 }
 0xd6c   : > { %6071 = vrsqrt.f32 %v4677_v15  ;;  %2387 = vrot.lane.b32.xlu0 %v2371_v38, %s6297_s23  ;;  %v6066_v17 = vpop.eup %6065  ;;  %v8268_v6 = vpop.xlane.xlu1 %2362  ;;  %v4701_v2 = vmul.f32 %v8049_v34, %v4687_v20  ;;  %v4670_v3 = vsub.f32 %v8116_v61, %v4614_v57  ;;  %v2372_v61 = vadd.f32 %v8257_v51, %v8241_v28 }
 0xd6d   : > { %v4733_v26 = vmax.f32 %v4725_v52, 0.0  ;;  %v4688_v49 = vmul.f32 %v6066_v17, %v4664_v40  ;;  %v4718_v47 = vadd.f32 %v8071_v63, %v4704_v23  ;;  %v6068_v12 = vpop.eup %6067  ;;  %v8614_v52 = vld [vmem:[#allocation36_spill] sm:$0xff] }
 0xd6e   : > { %v4715_v18 = vadd.f32 %v8071_v63, %v4701_v2  ;;  %v3490_v4 = vmul.f32 %v6068_v12, %v3466_v45  ;;  %v8615_v17 = vmax.f32 %v8614_v52, 0.0  ;;  %v8616_v45 = vmax.f32 %v7848_v55, 0.0 }
 0xd6f   : > { %v4748_v27 = vmul.f32 %v8129_v32, %v4733_v26  ;;  %v4702_v35 = vmul.f32 %v8049_v34, %v4688_v49  ;;  %v4726_v24 = vadd.f32 %v4718_v47, %v8610_v42 }
 0xd70   : > { %v8276_v8 = vpop.xlane.xlu1 %3551  ;;  %v4723_v36 = vadd.f32 %v4715_v18, %v8609_v58  ;;  %v3504_v0 = vmul.f32 %v8049_v34, %v3490_v4 }
 0xd71   : > { %4758 = vadd.xlane.f32.xlu1 %v4748_v27  ;;  %v4716_v16 = vadd.f32 %v8071_v63, %v4702_v35  ;;  %v4734_v14 = vmax.f32 %v4726_v24, 0.0 }
 0xd72   : > { %v4731_v5 = vmax.f32 %v4723_v36, 0.0  ;;  %v3518_v33 = vadd.f32 %v8071_v63, %v3504_v0 }
 0xd73   : > { %v4724_v62 = vadd.f32 %v4716_v16, %v8611_v48  ;;  %v4749_v25 = vmul.f32 %v8129_v32, %v4734_v14 }
 0xd74   : > { %v6070_v13 = vpop.eup %6069  ;;  %v4602_v46 = vpop.xlane.xlu1 %4601  ;;  %v4746_v10 = vmul.f32 %v8129_v32, %v4731_v5  ;;  %v3526_v2 = vadd.f32 %v3518_v33, %v8615_v17 }
 0xd75   : > { %v4691_v50 = vmul.f32 %v6070_v13, %v4667_v43  ;;  %v4732_v31 = vmax.f32 %v4724_v62, 0.0  ;;  %v4612_v36 = vmul.f32 0.0078125, %v4602_v46  ;;  %v2374_v46 = vadd.f32 %v8257_v51, %v8248_v19  ;;  %v2353_v62 = vpop.xlane.xlu0 %2352 }
 0xd76   : > { %4754 = vadd.xlane.f32.xlu1 %v4746_v10  ;;  %v3534_v18 = vmax.f32 %v3526_v2, 0.0  ;;  %v2376_v19 = vadd.f32 %v8257_v51, %v8259_v30 }
 0xd77   : > { %v4705_v29 = vmul.f32 %v8049_v34, %v4691_v50  ;;  %v4747_v7 = vmul.f32 %v8129_v32, %v4732_v31  ;;  %v4652_v16 = vmul.f32 %v4612_v36, %v4612_v36  ;;  %v4668_v4 = vsub.f32 %v8182_v1, %v4612_v36 }
 0xd78   : > { %v4638_v59 = vpop.xlane.xlu1 %4637  ;;  %v3549_v27 = vmul.f32 %v8129_v32, %v3534_v18 }
 0xd79   : > { %v6072_v41 = vpop.eup %6071  ;;  %v4646_v9 = vmul.f32 0.0078125, %v4638_v59  ;;  %v4719_v53 = vadd.f32 %v8071_v63, %v4705_v29  ;;  %v2378_v59 = vadd.f32 %v8257_v51, %v8268_v6 }
 0xd7a   : > { %v4693_v39 = vmul.f32 %v6072_v41, %v4669_v56  ;;  %4760 = vadd.xlane.f32.xlu1 %v4749_v25  ;;  %v2373_v56 = vadd.f32 %v8257_v51, %v2353_v62  ;;  %v8617_v25 = vmax.f32 %v7838_v37, 0.0 }
 0xd7b   : > { %v4662_v22 = vsub.f32 %v4646_v9, %v4654_v11  ;;  %v4727_v40 = vadd.f32 %v4719_v53, %v8613_v60 }
 0xd7c   : > { %v4707_v44 = vmul.f32 %v8049_v34, %v4693_v39  ;;  %v4634_v21 = vpop.xlane.xlu1 %4633  ;;  %v2357_v39 = vpop.xlane.xlu0 %2356 }
 0xd7d   : > { %v4678_v15 = vadd.f32 1e-05, %v4662_v22  ;;  %v4735_v49 = vmax.f32 %v4727_v40, 0.0  ;;  %v4644_v24 = vmul.f32 0.0078125, %v4634_v21  ;;  %v2375_v22 = vadd.f32 %v8257_v51, %v2357_v39 }
 0xd7e   : > { %v4721_v38 = vadd.f32 %v8071_v63, %v4707_v44  ;;  %4756 = vadd.xlane.f32.xlu1 %v4747_v7 }
 0xd7f   : > { %6073 = vrsqrt.f32 %v4678_v15  ;;  %v4750_v47 = vmul.f32 %v8129_v32, %v4735_v49  ;;  %v4660_v43 = vsub.f32 %v4644_v24, %v4652_v16 }
 0xd80   : > { %v4729_v20 = vadd.f32 %v4721_v38, %v8612_v54  ;;  %v3554_v48 = vpop.xlane.xlu1 %3553  ;;  %v2361_v44 = vpop.xlane.xlu0 %2360 }
 0xd81   : > { %v4676_v14 = vadd.f32 1e-05, %v4660_v43  ;;  %v3575_v0 = vadd.f32 %v8257_v51, %v3554_v48  ;;  %v2377_v53 = vadd.f32 %v8257_v51, %v2361_v44 }
 0xd82   : > { %v4737_v23 = vmax.f32 %v4729_v20, 0.0 }
 0xd83   : > { %6075 = vrsqrt.f32 %v4676_v14 }
 0xd84   : > { %v4752_v26 = vmul.f32 %v8129_v32, %v4737_v23  ;;  %v3556_v57 = vpop.xlane.xlu1 %3555 }
 0xd85   : > { %v3576_v7 = vadd.f32 %v8257_v51, %v3556_v57 }
 0xd86   : > { %4766 = vadd.xlane.f32.xlu1 %v4752_v26 }
 0xd88   : > { %v3558_v28 = vpop.xlane.xlu1 %3557 }
 0xd89   : > { %v3577_v11 = vadd.f32 %v8257_v51, %v3558_v28 }
 0xd8a   : > { %4762 = vadd.xlane.f32.xlu1 %v4750_v47 }
 0xd8b   : > { %3563 = vadd.xlane.f32.xlu0 %v3549_v27 }
 0xd8c   : > { %v6074_v35 = vpop.eup %6073  ;;  %v3560_v1 = vpop.xlane.xlu1 %3559 }
 0xd8d   : > { %v4694_v58 = vmul.f32 %v6074_v35, %v4670_v3  ;;  %v3578_v15 = vadd.f32 %v8257_v51, %v3560_v1 }
 0xd8f   : > { %v4708_v42 = vmul.f32 %v8049_v34, %v4694_v58 }
 0xd90   : > { %v6076_v55 = vpop.eup %6075 }
 0xd91   : > { %v4722_v12 = vadd.f32 %v8071_v63, %v4708_v42  ;;  %v4692_v50 = vmul.f32 %v6076_v55, %v4668_v4 }
 0xd93   : > { %v4730_v5 = vadd.f32 %v4722_v12, %v8616_v45  ;;  %v4706_v29 = vmul.f32 %v8049_v34, %v4692_v50  ;;  %v3562_v34 = vpop.xlane.xlu1 %3561 }
 0xd94   : > { %v3579_v6 = vadd.f32 %v8257_v51, %v3562_v34 }
 0xd95   : > { %v4738_v13 = vmax.f32 %v4730_v5, 0.0  ;;  %v4720_v41 = vadd.f32 %v8071_v63, %v4706_v29 }
 0xd97   : > { %v4753_v10 = vmul.f32 %v8129_v32, %v4738_v13  ;;  %v4728_v31 = vadd.f32 %v4720_v41, %v8617_v25  ;;  %v3566_v9 = vpop.xlane.xlu1 %3565 }
 0xd98   : > { %v3581_v37 = vadd.f32 %v8257_v51, %v3566_v9 }
 0xd99   : > { %4768 = vadd.xlane.f32.xlu0 %v4753_v10  ;;  %v4736_v30 = vmax.f32 %v4728_v31, 0.0 }
 0xd9b   : > { %2389 = vrot.lane.b32.xlu1 %v2372_v61, %s6297_s23  ;;  %v4751_v63 = vmul.f32 %v8129_v32, %v4736_v30  ;;  %v3574_v32 = vadd.f32 %v8257_v51, %v8276_v8 }
 0xd9f   : > { %2393 = vrot.lane.b32.xlu1 %v2374_v46, %s6297_s23 }
 0xdaf   : > { %2391 = vrot.lane.b32.xlu0 %v2373_v56, %s6297_s23 }
 0xdb3   : > { %2397 = vrot.lane.b32.xlu0 %v2376_v19, %s6297_s23 }
 0xdb7   : > { %2401 = vrot.lane.b32.xlu0 %v2378_v59, %s6297_s23 }
 0xdbb   : > { %3592 = vrot.lane.b32.xlu0 %v3575_v0, %s6298_s1 }
 0xdbf   : > { %3596 = vrot.lane.b32.xlu0 %v3577_v11, %s6298_s1 }
 0xdc3   : > { %4764 = vadd.xlane.f32.xlu1 %v4751_v63  ;;  %3600 = vrot.lane.b32.xlu0 %v3579_v6, %s6298_s1 }
 0xdc7   : > { %3604 = vrot.lane.b32.xlu0 %v3581_v37, %s6298_s1 }
 0xdd4   : > { %2395 = vrot.lane.b32.xlu1 %v2375_v22, %s6297_s23 }
 0xdd8   : > { %2399 = vrot.lane.b32.xlu1 %v2377_v53, %s6297_s23  ;;  %s6221_s23 = scalar_lea.vmem %s6220_s18, 2048 }
 0xdd9   : > { %p6223_p1 = scmp.lt.s32.totalorder %s6221_s23, %s6215_s16 }
 0xddb   : > { %p6224_p3 = por %p6223_p1, %p6222_p9 }
 0xddc   : > { %3590 = vrot.lane.b32.xlu1 %v3574_v32, %s6298_s1 }
 0xddd   : > { %p6225_p13 = pnand %p6224_p3, %p6218_p2 }
 0xdde   : > { %v2388_v33 = vpop.permute.xlu0 %2387 }
 0xddf   : > { %2412 = vst.msk [vmem:[%s6803_s22] sm:$0xff] %vm2411_vm2, %v2388_v33 }
 0xde0   : > { %3594 = vrot.lane.b32.xlu1 %v3576_v7, %s6298_s1 }
 0xde4   : > { %3598 = vrot.lane.b32.xlu1 %v3578_v15, %s6298_s1 }
 0xdfa   : > { %v4759_v38 = vpop.xlane.xlu1 %4758 }
 0xdfb   : > { %v4779_v49 = vadd.f32 %v8257_v51, %v4759_v38 }
 0xdff   : > { %v4755_v54 = vpop.xlane.xlu1 %4754 }
 0xe00   : > { %v4777_v47 = vadd.f32 %v8257_v51, %v4755_v54 }
 0xe03   : > { %v4761_v20 = vpop.xlane.xlu1 %4760 }
 0xe04   : > { %v4780_v8 = vadd.f32 %v8257_v51, %v4761_v20 }
 0xe06   : > { %4799 = vrot.lane.b32.xlu0 %v4780_v8, %s6299_s28 }
 0xe07   : > { %v4757_v60 = vpop.xlane.xlu1 %4756 }
 0xe08   : > { %v4778_v40 = vadd.f32 %v8257_v51, %v4757_v60 }
 0xe0a   : > { %4795 = vrot.lane.b32.xlu0 %v4778_v40, %s6299_s28 }
 0xe0f   : > { %v4767_v52 = vpop.xlane.xlu1 %4766 }
 0xe10   : > { %v4783_v35 = vadd.f32 %v8257_v51, %v4767_v52 }
 0xe13   : > { %v4763_v17 = vpop.xlane.xlu1 %4762 }
 0xe14   : > { %v3564_v2 = vpop.xlane.xlu0 %3563  ;;  %v4781_v27 = vadd.f32 %v8257_v51, %v4763_v17 }
 0xe15   : > { %v3580_v23 = vadd.f32 %v8257_v51, %v3564_v2 }
 0xe17   : > { %v2390_v26 = vpop.permute.xlu1 %2389  ;;  %3602 = vrot.lane.b32.xlu1 %v3580_v23, %s6298_s1 }
 0xe18   : > { %2413 = vst.msk [vmem:[%s6803_s22 + $0x8] sm:$0xff] %vm2411_vm2, %v2390_v26 }
 0xe1b   : > { %v2394_v18 = vpop.permute.xlu1 %2393  ;;  %4797 = vrot.lane.b32.xlu1 %v4779_v49, %s6299_s28 }
 0xe1c   : > { %2415 = vst.msk [vmem:[%s6803_s22 + $0x18] sm:$0xff] %vm2411_vm2, %v2394_v18 }
 0xe1f   : > { %4793 = vrot.lane.b32.xlu1 %v4777_v47, %s6299_s28 }
 0xe22   : > { %v4769_v3 = vpop.xlane.xlu0 %4768 }
 0xe23   : > { %4801 = vrot.lane.b32.xlu1 %v4781_v27, %s6299_s28  ;;  %v4784_v13 = vadd.f32 %v8257_v51, %v4769_v3 }
 0xe26   : > { %v2392_v21 = vpop.permute.xlu0 %2391 }
 0xe27   : > { %4805 = vrot.lane.b32.xlu1 %v4783_v35, %s6299_s28  ;;  %2414 = vst.msk [vmem:[%s6803_s22 + $0x10] sm:$0xff] %vm2411_vm2, %v2392_v21 }
 0xe2a   : > { %v2398_v58 = vpop.permute.xlu0 %2397 }
 0xe2b   : > { %2417 = vst.msk [vmem:[%s6803_s22 + $0x28] sm:$0xff] %vm2411_vm2, %v2398_v58 }
 0xe2e   : > { %v2402_v36 = vpop.permute.xlu0 %2401 }
 0xe2f   : > { %2419 = vst.msk [vmem:[%s6803_s22 + $0x38] sm:$0xff] %vm2411_vm2, %v2402_v36 }
 0xe32   : > { %v3593_v42 = vpop.permute.xlu0 %3592 }
 0xe33   : > { %3616 = vst.msk [vmem:[%s6803_s22 + $0x8] sm:$0xff] %vm3614_vm3, %v3593_v42 }
 0xe36   : > { %v3597_v24 = vpop.permute.xlu0 %3596 }
 0xe37   : > { %3618 = vst.msk [vmem:[%s6803_s22 + $0x18] sm:$0xff] %vm3614_vm3, %v3597_v24 }
 0xe3a   : > { %v3601_v12 = vpop.permute.xlu0 %3600 }
 0xe3b   : > { %3620 = vst.msk [vmem:[%s6803_s22 + $0x28] sm:$0xff] %vm3614_vm3, %v3601_v12 }
 0xe3e   : > { %v3605_v16 = vpop.permute.xlu0 %3604 }
 0xe3f   : > { %3622 = vst.msk [vmem:[%s6803_s22 + $0x38] sm:$0xff] %vm3614_vm3, %v3605_v16 }
 0xe4c   : > { %v4765_v45 = vpop.xlane.xlu1 %4764 }
 0xe4d   : > { %v4782_v5 = vadd.f32 %v8257_v51, %v4765_v45 }
 0xe4f   : > { %4803 = vrot.lane.b32.xlu0 %v4782_v5, %s6299_s28 }
 0xe50   : > { %v2396_v43 = vpop.permute.xlu1 %2395 }
 0xe51   : > { %2416 = vst.msk [vmem:[%s6803_s22 + $0x20] sm:$0xff] %vm2411_vm2, %v2396_v43 }
 0xe53   : > { %4807 = vrot.lane.b32.xlu0 %v4784_v13, %s6299_s28 }
 0xe54   : > { %v2400_v10 = vpop.permute.xlu1 %2399 }
 0xe55   : > { %2418 = vst.msk [vmem:[%s6803_s22 + $0x30] sm:$0xff] %vm2411_vm2, %v2400_v10 }
 0xe58   : > { %v3591_v61 = vpop.permute.xlu1 %3590 }
 0xe59   : > { %3615 = vst.msk [vmem:[%s6803_s22] sm:$0xff] %vm3614_vm3, %v3591_v61 }
 0xe5c   : > { %v3595_v14 = vpop.permute.xlu1 %3594 }
 0xe5d   : > { %3617 = vst.msk [vmem:[%s6803_s22 + $0x10] sm:$0xff] %vm3614_vm3, %v3595_v14 }
 0xe60   : > { %v3599_v46 = vpop.permute.xlu1 %3598 }
 0xe61   : > { %3619 = vst.msk [vmem:[%s6803_s22 + $0x20] sm:$0xff] %vm3614_vm3, %v3599_v46 }
 0xe78   : > { %v4800_v51 = vpop.permute.xlu0 %4799 }
 0xe79   : > { %4821 = vst.msk [vmem:[%s6803_s22 + $0x18] sm:$0xff] %vm4817_vm4, %v4800_v51 }
 0xe7c   : > { %v4796_v48 = vpop.permute.xlu0 %4795 }
 0xe7d   : > { %4819 = vst.msk [vmem:[%s6803_s22 + $0x8] sm:$0xff] %vm4817_vm4, %v4796_v48 }
 0xe89   : > { %v3603_v55 = vpop.permute.xlu1 %3602 }
 0xe8a   : > { %3621 = vst.msk [vmem:[%s6803_s22 + $0x30] sm:$0xff] %vm3614_vm3, %v3603_v55 }
 0xe8d   : > { %v4798_v62 = vpop.permute.xlu1 %4797 }
 0xe8e   : > { %4820 = vst.msk [vmem:[%s6803_s22 + $0x10] sm:$0xff] %vm4817_vm4, %v4798_v62 }
 0xe91   : > { %v4794_v4 = vpop.permute.xlu1 %4793 }
 0xe92   : > { %4818 = vst.msk [vmem:[%s6803_s22] sm:$0xff] %vm4817_vm4, %v4794_v4 }
 0xe95   : > { %v4802_v57 = vpop.permute.xlu1 %4801 }
 0xe96   : > { %4822 = vst.msk [vmem:[%s6803_s22 + $0x20] sm:$0xff] %vm4817_vm4, %v4802_v57 }
 0xe99   : > { %v4806_v50 = vpop.permute.xlu1 %4805 }
 0xe9a   : > { %4824 = vst.msk [vmem:[%s6803_s22 + $0x30] sm:$0xff] %vm4817_vm4, %v4806_v50 }
 0xec1   : > { %v4804_v56 = vpop.permute.xlu0 %4803 }
 0xec2   : > { %4823 = vst.msk [vmem:[%s6803_s22 + $0x28] sm:$0xff] %vm4817_vm4, %v4804_v56 }
 0xec5   : > { %v4808_v28 = vpop.permute.xlu0 %4807 }
 0xec6   : > { %4825 = vst.msk [vmem:[%s6803_s22 + $0x38] sm:$0xff] %vm4817_vm4, %v4808_v28 }
 0xec7   : > { %6228 = shalt.err (!%p6225_p13)
}
 0xec8   : > { %s6229_s0 = scalar_lea.hbm %s8424_s30, 1024  ;;  %s6233_s28 = scalar_lea.hbm %s8618_s25, 4096 }
 0xec9   : > { %p6230_p6 = scmp.ne.s32.totalorder %s8424_s30, %s6229_s0  ;;  %p6234_p7 = scmp.lt.s32.totalorder %s8424_s30, %s8618_s25 }
 0xeca   : > { %p6235_p12 = scmp.lt.s32.totalorder %s6233_s28, %s6229_s0 }
 0xecb   : > { %p6231_p5 = pnand %p6230_p6, %p8619_p11 }
 0xecc   : > { %p6236_p10 = por %p6235_p12, %p6234_p7 }
 0xecd   : > { %p6232_p4 = pneg %p6231_p5 }
 0xecf   : > { %p6237_p8 = pnand %p6236_p10, %p6232_p4 }
 0xed1   : > { %6240 = shalt.err (!%p6237_p8)
}
 0xed2   : > { %s6301_s24 = smov 128   ;;  %s6302_s16 = smov 8  }
 0xed3   : > { %5638 = dma.vmem_to_hbm [thread:$0]  (%p8619_p11), %s8426_s26, 1024, %s8424_s30, %s8432_s17, %s6301_s24, %s6301_s24, %s6302_s16  }
 0xed4 PF: > { %s8620_s29 = sld [smem:[#allocation19_spill]] }
 0xed5   : > { %s8621_s18 = sld [smem:[#allocation17_spill]] }
 0xed6   : > { %s8622_s23 = sld [smem:[#allocation22_spill]] }
 0xeda   : > { %p5670_p0 = scmp.ge.s32.totalorder %s8620_s29, 2 }
 0xedb   : > { %s4855_s22 = sand.u32 1, %s8621_s18  }
 0xedc   : > { %p8623_p2 = scmp.ne.s32.totalorder %s8622_s23, 0  ;;  %s4856_s0 = scalar_lea.sflag [#allocation5], %s4855_s22 }
 0xede   : > { %p5657_p9 = pnand %p5670_p0, %p8623_p2 }
 0xee0   : > { %p5658_p1 = pneg %p5657_p9 }
 0xee2   : > { %6270 = dma.done.wait (%p5658_p1), %s4856_s0, 1024  }
 0xee3   : > { %6272 = vsyncadd (%p5658_p1), %s4856_s0, 4294966272  ;;  %s8624_s29 = sld [smem:[#allocation20_spill]]  ;;  %s8627_s26 = smov %s6279_s27 }
 0xee4   : > { %s8625_s1 = sld [smem:[#allocation18_spill]] }
 0xee5   : > { %s8626_s28 = sld [smem:[#allocation21_spill]] }
 0xee9   : > { %p32_p3 = scmp.ge.s32.totalorder %s8624_s29, 6  }
 0xeea   : > { %s8628_s27 = smov %s8625_s1 }
 0xeeb   :  { %34 = sbr.rel (!%p32_p3) target bundleno = 11 (0xb), region = 144 }
 0xef0   :  { %4861 = vsyncpa [#allocation4], 1 }
 0xef1   :  { %4863 = vsyncpa [#allocation4 + $0x1], 1 }
 0xef2   :  { %4864 = vsyncpa [#allocation7], 1 }
 0xef3   :  { %4865 = vsyncpa [#allocation10], 1 }
 0xef4   :  { %4866 = vsyncpa [#allocation5], 1 }
 0xef5   :  { %4868 = vsyncpa [#allocation5 + $0x1], 1 }

</bundles_post_ra>
